<compile_context>
chip_gen: v6e
topology: v6e:2x2x1
jax: 0.10.0
libtpu: 0.0.40
codegen_flags: <defaults>
</compile_context>

<pallas_src>
import jax
import jax.numpy as jnp
from jax import lax
from jax.experimental import pallas as pl
from jax.experimental.pallas import tpu as pltpu


# -----------------------------------------------------------------------------
# Kernel
# -----------------------------------------------------------------------------
def lstm_pool_kernel(seq_ref, seq_e_ref, seq_t_ref, src_ref,
                     wih_f_ref, wih_e_ref, wih_t_ref, whh_ref, b_ref,
                     w1h_ref, w1s_ref, b1_ref, w2_ref, b2_ref,
                     out_ref):
    """One batch tile: full LSTM scan over time + MergeLayer MLP.

    seq_ref   : [Bt, T, Df]   node features
    seq_e_ref : [Bt, T, De]   edge features
    seq_t_ref : [Bt, T, Dt]   time features
    src_ref   : [Bt, F]
    wih_*_ref : [D*, 4*Hp]    per-stream input->gate weights, gate blocks
                              padded to Hp (=128-multiple) lanes each
    whh_ref   : [Hp, 4*Hp]    hidden->gate weights (rows/cols zero-padded)
    b_ref     : [1, 4*Hp]     b_ih + b_hh (zero-padded per gate)
    w1h_ref   : [Hp, F]       fc1 rows acting on hn (zero-padded rows)
    w1s_ref   : [F, F]        fc1 rows acting on src
    b1_ref    : [1, F]
    w2_ref    : [F, F], b2_ref: [1, F]
    out_ref   : [Bt, F]
    """
    Bt = seq_ref.shape[0]
    T = seq_ref.shape[1]
    Df = seq_ref.shape[2]
    De = seq_e_ref.shape[2]
    Dt = seq_t_ref.shape[2]
    Hp = whh_ref.shape[0]          # padded hidden size (multiple of 128)

    whh = whh_ref[...]

    # ---- hoisted input projection: one MXU pass per input stream, completely
    # off the recurrent dependency chain.  gx: [Bt, T, 4*Hp]
    x_f = seq_ref[...].reshape(Bt * T, Df)
    x_e = seq_e_ref[...].reshape(Bt * T, De)
    x_t = seq_t_ref[...].reshape(Bt * T, Dt)
    gx = (jnp.dot(x_f, wih_f_ref[...], preferred_element_type=jnp.float32)
          + jnp.dot(x_e, wih_e_ref[...], preferred_element_type=jnp.float32)
          + jnp.dot(x_t, wih_t_ref[...], preferred_element_type=jnp.float32)
          + b_ref[...])                                   # [Bt*T, 4*Hp]
    gx = gx.reshape(Bt, T, 4 * Hp)

    # ---- recurrence, fully unrolled (T is small & static).  Per step the only
    # thing on the serial chain is h @ W_hh plus EUP/VPU gate math; all gate
    # slices below are 128-lane aligned static views.
    h = jnp.zeros((Bt, Hp), jnp.float32)
    c = jnp.zeros((Bt, Hp), jnp.float32)
    for t in range(T):
        gates = gx[:, t, :] + jnp.dot(h, whh,
                                      preferred_element_type=jnp.float32)
        i = jax.nn.sigmoid(gates[:, 0 * Hp:1 * Hp])
        f = jax.nn.sigmoid(gates[:, 1 * Hp:2 * Hp])
        g = jnp.tanh(gates[:, 2 * Hp:3 * Hp])
        o = jax.nn.sigmoid(gates[:, 3 * Hp:4 * Hp])
        c = f * c + i * g
        h = o * jnp.tanh(c)

    # ---- MergeLayer without the lane-concat: fc1 split into hn/src halves.
    h1 = jnp.maximum(
        jnp.dot(h, w1h_ref[...], preferred_element_type=jnp.float32)
        + jnp.dot(src_ref[...], w1s_ref[...], preferred_element_type=jnp.float32)
        + b1_ref[...],
        0.0)
    out_ref[...] = (jnp.dot(h1, w2_ref[...], preferred_element_type=jnp.float32)
                    + b2_ref[...])


# -----------------------------------------------------------------------------
# Wrapper
# -----------------------------------------------------------------------------
def lstm_pool_forward(params, src, src_t, seq, seq_t, seq_e, mask):
    """Matches LSTMPool.forward signature; src_t and mask are unused (as in the
    reference forward)."""
    del src_t, mask

    B, F = src.shape
    _, T, Df = seq.shape
    De = seq_e.shape[2]
    Dt = seq_t.shape[2]

    # batch tiling: whole batch in one tile while it fits a vreg-friendly size,
    # otherwise tile by 128 rows (kept VMEM-light for v7x's 64 MiB VMEM).
    B_TILE = B if B <= 128 else 128
    assert B % B_TILE == 0, "batch must be a multiple of the batch tile"
    grid = (B // B_TILE,)

    def seq_spec(d):
        return pl.BlockSpec((B_TILE, T, d), lambda i: (i, 0, 0))

    def const_spec(arr):
        nd = arr.ndim
        return pl.BlockSpec(arr.shape, lambda i: (0,) * nd)

    # advisory cost estimate (unpadded math sizes)
    param_bytes = sum(int(v.size) for v in params.values()) * 4
    flops = (2 * B * T * (Df + De + Dt) * 4 * F       # input projection
             + 2 * T * B * F * 4 * F                  # recurrence
             + 2 * B * (F * F * 3))                   # merger
    transcendentals = T * B * (4 * F + F)
    bytes_accessed = 4 * (B * T * (Df + De + Dt) + 2 * B * F) + param_bytes

    out = pl.pallas_call(
        lstm_pool_kernel,
        out_shape=jax.ShapeDtypeStruct((B, F), jnp.float32),
        grid=grid,
        in_specs=[
            seq_spec(Df),                                    # seq
            seq_spec(De),                                    # seq_e
            seq_spec(Dt),                                    # seq_t
            pl.BlockSpec((B_TILE, F), lambda i: (i, 0)),     # src
            const_spec(params["wih_f"]),
            const_spec(params["wih_e"]),
            const_spec(params["wih_t"]),
            const_spec(params["whh"]),
            const_spec(params["b_lstm"]),
            const_spec(params["w1h"]),
            const_spec(params["w1s"]),
            const_spec(params["b1"]),
            const_spec(params["w2"]),
            const_spec(params["b2"]),
        ],
        out_specs=pl.BlockSpec((B_TILE, F), lambda i: (i, 0)),
        compiler_params=pltpu.CompilerParams(
            dimension_semantics=("parallel",)),
        cost_estimate=pl.CostEstimate(
            flops=flops, transcendentals=transcendentals,
            bytes_accessed=bytes_accessed),
    )(seq.astype(jnp.float32),
      seq_e.astype(jnp.float32),
      seq_t.astype(jnp.float32),
      src.astype(jnp.float32),
      params["wih_f"], params["wih_e"], params["wih_t"],
      params["whh"], params["b_lstm"],
      params["w1h"], params["w1s"], params["b1"],
      params["w2"], params["b2"])
    return out, None


# -----------------------------------------------------------------------------
# Parameter init (PyTorch-equivalent) and packing into kernel layout
# -----------------------------------------------------------------------------
def init_params(key, feat_dim, edge_dim, time_dim):
    """Raw PyTorch-layout parameters (LSTM default init, xavier_normal merger)."""
    att_dim = feat_dim + edge_dim + time_dim
    H = feat_dim
    ks = jax.random.split(key, 8)
    bound = 1.0 / (H ** 0.5)
    w_ih = jax.random.uniform(ks[0], (4 * H, att_dim), jnp.float32, -bound, bound)
    w_hh = jax.random.uniform(ks[1], (4 * H, H), jnp.float32, -bound, bound)
    b_ih = jax.random.uniform(ks[2], (4 * H,), jnp.float32, -bound, bound)
    b_hh = jax.random.uniform(ks[3], (4 * H,), jnp.float32, -bound, bound)
    std1 = (2.0 / (2 * feat_dim + feat_dim)) ** 0.5
    std2 = (2.0 / (feat_dim + feat_dim)) ** 0.5
    fc1_w = std1 * jax.random.normal(ks[4], (feat_dim, 2 * feat_dim), jnp.float32)
    fc2_w = std2 * jax.random.normal(ks[5], (feat_dim, feat_dim), jnp.float32)
    bnd1 = 1.0 / ((2 * feat_dim) ** 0.5)
    bnd2 = 1.0 / (feat_dim ** 0.5)
    fc1_b = jax.random.uniform(ks[6], (feat_dim,), jnp.float32, -bnd1, bnd1)
    fc2_b = jax.random.uniform(ks[7], (feat_dim,), jnp.float32, -bnd2, bnd2)
    return {"w_ih": w_ih, "w_hh": w_hh, "b_ih": b_ih, "b_hh": b_hh,
            "fc1_w": fc1_w, "fc1_b": fc1_b, "fc2_w": fc2_w, "fc2_b": fc2_b}


def pack_params(raw, feat_dim, edge_dim, time_dim):
    """Transpose to [in, out], split W_ih per input stream and fc1 per half,
    and zero-pad each gate block / the hidden dim to a 128-lane multiple."""
    H = feat_dim
    Hp = ((H + 127) // 128) * 128
    Df, De, Dt = feat_dim, edge_dim, time_dim

    w_ih_T = jnp.transpose(raw["w_ih"])          # [A, 4H]
    w_hh_T = jnp.transpose(raw["w_hh"])          # [H, 4H]
    b = (raw["b_ih"] + raw["b_hh"])[None, :]     # [1, 4H]

    def pad_gate_cols(w):
        # [D, 4H] -> [D, 4Hp]; each gate block starts at a 128-lane boundary.
        D = w.shape[0]
        out = jnp.zeros((D, 4 * Hp), jnp.float32)
        for k in range(4):
            out = out.at[:, k * Hp:k * Hp + H].set(w[:, k * H:(k + 1) * H])
        return out

    wih_f = pad_gate_cols(w_ih_T[:Df])
    wih_e = pad_gate_cols(w_ih_T[Df:Df + De])
    wih_t = pad_gate_cols(w_ih_T[Df + De:])
    whh = jnp.zeros((Hp, 4 * Hp), jnp.float32).at[:H].set(pad_gate_cols(w_hh_T))
    b_p = pad_gate_cols(b)                       # [1, 4Hp]

    w1_T = jnp.transpose(raw["fc1_w"])           # [2F, F]
    w1h = jnp.zeros((Hp, H), jnp.float32).at[:H].set(w1_T[:H])   # hn half
    w1s = w1_T[H:]                                               # src half

    return {
        "wih_f": wih_f, "wih_e": wih_e, "wih_t": wih_t,
        "whh": whh, "b_lstm": b_p,
        "w1h": w1h, "w1s": w1s, "b1": raw["fc1_b"][None, :],
        "w2": jnp.transpose(raw["fc2_w"]), "b2": raw["fc2_b"][None, :],
    }


# -----------------------------------------------------------------------------
# Pure-JAX reference (PyTorch semantics) for a correctness check
# -----------------------------------------------------------------------------
def lstm_pool_reference(raw, src, seq, seq_t, seq_e):
    seq_x = jnp.concatenate([seq, seq_e, seq_t], axis=2)   # [B, T, A]
    H = src.shape[1]
    B = src.shape[0]
    w_ih, w_hh = raw["w_ih"], raw["w_hh"]
    b = raw["b_ih"] + raw["b_hh"]

    def step(carry, x_t):
        h, c = carry
        gates = x_t @ w_ih.T + h @ w_hh.T + b
        i = jax.nn.sigmoid(gates[:, 0 * H:1 * H])
        f = jax.nn.sigmoid(gates[:, 1 * H:2 * H])
        g = jnp.tanh(gates[:, 2 * H:3 * H])
        o = jax.nn.sigmoid(gates[:, 3 * H:4 * H])
        c = f * c + i * g
        h = o * jnp.tanh(c)
        return (h, c), None

    (hn, _), _ = lax.scan(step,
                          (jnp.zeros((B, H), jnp.float32),
                           jnp.zeros((B, H), jnp.float32)),
                          jnp.transpose(seq_x, (1, 0, 2)))
    x = jnp.concatenate([hn, src], axis=1)
    h1 = jnp.maximum(x @ raw["fc1_w"].T + raw["fc1_b"], 0.0)
    return h1 @ raw["fc2_w"].T + raw["fc2_b"]


# -----------------------------------------------------------------------------
if __name__ == "__main__":
    feat_dim, edge_dim, time_dim = 32, 16, 16
    B, T = 2, 8

    key = jax.random.PRNGKey(0)
    k_param, k_src, k_srct, k_seq, k_seqt, k_seqe = jax.random.split(key, 6)

    raw = init_params(k_param, feat_dim, edge_dim, time_dim)
    params = pack_params(raw, feat_dim, edge_dim, time_dim)

    src = jax.random.normal(k_src, (B, feat_dim), jnp.float32)
    src_t = jax.random.normal(k_srct, (B, 1, time_dim), jnp.float32)   # unused
    seq = jax.random.normal(k_seq, (B, T, feat_dim), jnp.float32)
    seq_t = jax.random.normal(k_seqt, (B, T, time_dim), jnp.float32)
    seq_e = jax.random.normal(k_seqe, (B, T, edge_dim), jnp.float32)
    mask = jnp.zeros((B, T), jnp.float32)                               # unused

    out, _ = lstm_pool_forward(params, src, src_t, seq, seq_t, seq_e, mask)
    out = jax.block_until_ready(out)
    assert out.shape == (B, feat_dim)

    ref = lstm_pool_reference(raw, src, seq, seq_t, seq_e)
    assert jnp.allclose(out, ref, rtol=1e-4, atol=1e-4), \
        float(jnp.max(jnp.abs(out - ref)))

    print("KERNEL_OK")
</pallas_src>

<mosaic_0001>
module attributes {stable_mosaic.version = 11 : i64} {
  func.func @lstm_pool_kernel(%arg0: i32, %arg1: memref<2x8x32xf32, #tpu.memory_space<vmem>>, %arg2: memref<2x8x16xf32, #tpu.memory_space<vmem>>, %arg3: memref<2x8x16xf32, #tpu.memory_space<vmem>>, %arg4: memref<2x32xf32, #tpu.memory_space<vmem>>, %arg5: memref<32x512xf32, #tpu.memory_space<vmem>>, %arg6: memref<16x512xf32, #tpu.memory_space<vmem>>, %arg7: memref<16x512xf32, #tpu.memory_space<vmem>>, %arg8: memref<128x512xf32, #tpu.memory_space<vmem>>, %arg9: memref<1x512xf32, #tpu.memory_space<vmem>>, %arg10: memref<128x32xf32, #tpu.memory_space<vmem>>, %arg11: memref<32x32xf32, #tpu.memory_space<vmem>>, %arg12: memref<1x32xf32, #tpu.memory_space<vmem>>, %arg13: memref<32x32xf32, #tpu.memory_space<vmem>>, %arg14: memref<1x32xf32, #tpu.memory_space<vmem>>, %arg15: memref<2x32xf32, #tpu.memory_space<vmem>>) attributes {dimension_semantics = [#tpu.dimension_semantics<parallel>], iteration_bounds = array<i64: 1>, scalar_prefetch = 0 : i64, scratch_operands = 0 : i64, tpu.core_type = #tpu.core_type<tc>, window_params = [{transform_indices = @transform_0, window_bounds = array<i64: 2, 8, 32>}, {transform_indices = @transform_1, window_bounds = array<i64: 2, 8, 16>}, {transform_indices = @transform_2, window_bounds = array<i64: 2, 8, 16>}, {transform_indices = @transform_3, window_bounds = array<i64: 2, 32>}, {pipeline_mode = #tpu.pipeline_mode<synchronous>, transform_indices = @transform_4, window_bounds = array<i64: 32, 512>}, {pipeline_mode = #tpu.pipeline_mode<synchronous>, transform_indices = @transform_5, window_bounds = array<i64: 16, 512>}, {pipeline_mode = #tpu.pipeline_mode<synchronous>, transform_indices = @transform_6, window_bounds = array<i64: 16, 512>}, {pipeline_mode = #tpu.pipeline_mode<synchronous>, transform_indices = @transform_7, window_bounds = array<i64: 128, 512>}, {pipeline_mode = #tpu.pipeline_mode<synchronous>, transform_indices = @transform_8, window_bounds = array<i64: 1, 512>}, {pipeline_mode = #tpu.pipeline_mode<synchronous>, transform_indices = @transform_9, window_bounds = array<i64: 128, 32>}, {pipeline_mode = #tpu.pipeline_mode<synchronous>, transform_indices = @transform_10, window_bounds = array<i64: 32, 32>}, {pipeline_mode = #tpu.pipeline_mode<synchronous>, transform_indices = @transform_11, window_bounds = array<i64: 1, 32>}, {pipeline_mode = #tpu.pipeline_mode<synchronous>, transform_indices = @transform_12, window_bounds = array<i64: 32, 32>}, {pipeline_mode = #tpu.pipeline_mode<synchronous>, transform_indices = @transform_13, window_bounds = array<i64: 1, 32>}, {transform_indices = @transform_14, window_bounds = array<i64: 2, 32>}]} {
    %c0 = arith.constant 0 : index
    %c0_0 = arith.constant 0 : index
    %0 = vector.load %arg8[%c0, %c0_0] : memref<128x512xf32, #tpu.memory_space<vmem>>, vector<128x512xf32>
    %c0_1 = arith.constant 0 : index
    %c0_2 = arith.constant 0 : index
    %c0_3 = arith.constant 0 : index
    %1 = vector.load %arg1[%c0_1, %c0_2, %c0_3] : memref<2x8x32xf32, #tpu.memory_space<vmem>>, vector<2x8x32xf32>
    %2 = vector.shape_cast %1 : vector<2x8x32xf32> to vector<16x32xf32>
    %c0_4 = arith.constant 0 : index
    %c0_5 = arith.constant 0 : index
    %c0_6 = arith.constant 0 : index
    %3 = vector.load %arg2[%c0_4, %c0_5, %c0_6] : memref<2x8x16xf32, #tpu.memory_space<vmem>>, vector<2x8x16xf32>
    %4 = vector.shape_cast %3 : vector<2x8x16xf32> to vector<16x16xf32>
    %c0_7 = arith.constant 0 : index
    %c0_8 = arith.constant 0 : index
    %c0_9 = arith.constant 0 : index
    %5 = vector.load %arg3[%c0_7, %c0_8, %c0_9] : memref<2x8x16xf32, #tpu.memory_space<vmem>>, vector<2x8x16xf32>
    %6 = vector.shape_cast %5 : vector<2x8x16xf32> to vector<16x16xf32>
    %c0_10 = arith.constant 0 : index
    %c0_11 = arith.constant 0 : index
    %7 = vector.load %arg5[%c0_10, %c0_11] : memref<32x512xf32, #tpu.memory_space<vmem>>, vector<32x512xf32>
    %cst = arith.constant dense<0.000000e+00> : vector<16x512xf32>
    %8 = tpu.matmul %2, %7, %cst {dimension_numbers = #tpu.dot_dimension_numbers<[1], [0], [0], [1], [0, 0, 1, 1], [], []>} : vector<16x32xf32>, vector<32x512xf32>, vector<16x512xf32> -> vector<16x512xf32>
    %c0_12 = arith.constant 0 : index
    %c0_13 = arith.constant 0 : index
    %9 = vector.load %arg6[%c0_12, %c0_13] : memref<16x512xf32, #tpu.memory_space<vmem>>, vector<16x512xf32>
    %cst_14 = arith.constant dense<0.000000e+00> : vector<16x512xf32>
    %10 = tpu.matmul %4, %9, %cst_14 {dimension_numbers = #tpu.dot_dimension_numbers<[1], [0], [0], [1], [0, 0, 1, 1], [], []>} : vector<16x16xf32>, vector<16x512xf32>, vector<16x512xf32> -> vector<16x512xf32>
    %11 = arith.addf %8, %10 : vector<16x512xf32>
    %c0_15 = arith.constant 0 : index
    %c0_16 = arith.constant 0 : index
    %12 = vector.load %arg7[%c0_15, %c0_16] : memref<16x512xf32, #tpu.memory_space<vmem>>, vector<16x512xf32>
    %cst_17 = arith.constant dense<0.000000e+00> : vector<16x512xf32>
    %13 = tpu.matmul %6, %12, %cst_17 {dimension_numbers = #tpu.dot_dimension_numbers<[1], [0], [0], [1], [0, 0, 1, 1], [], []>} : vector<16x16xf32>, vector<16x512xf32>, vector<16x512xf32> -> vector<16x512xf32>
    %14 = arith.addf %11, %13 : vector<16x512xf32>
    %c0_18 = arith.constant 0 : index
    %c0_19 = arith.constant 0 : index
    %15 = vector.load %arg9[%c0_18, %c0_19] : memref<1x512xf32, #tpu.memory_space<vmem>>, vector<1x512xf32>
    %16 = vector.broadcast %15 : vector<1x512xf32> to vector<16x512xf32>
    %17 = arith.addf %14, %16 : vector<16x512xf32>
    %18 = vector.shape_cast %17 : vector<16x512xf32> to vector<2x8x512xf32>
    %cst_20 = arith.constant 0.000000e+00 : f32
    %19 = vector.broadcast %cst_20 : f32 to vector<2x128xf32>
    %cst_21 = arith.constant 0.000000e+00 : f32
    %20 = vector.broadcast %cst_21 : f32 to vector<2x128xf32>
    %21 = vector.extract_strided_slice %18 {offsets = [0, 0, 0], sizes = [2, 1, 512], strides = [1, 1, 1]} : vector<2x8x512xf32> to vector<2x1x512xf32>
    %22 = vector.shape_cast %21 : vector<2x1x512xf32> to vector<2x512xf32>
    %cst_22 = arith.constant dense<0.000000e+00> : vector<2x512xf32>
    %23 = tpu.matmul %19, %0, %cst_22 {dimension_numbers = #tpu.dot_dimension_numbers<[1], [0], [0], [1], [0, 0, 1, 1], [], []>} : vector<2x128xf32>, vector<128x512xf32>, vector<2x512xf32> -> vector<2x512xf32>
    %24 = arith.addf %22, %23 : vector<2x512xf32>
    %25 = vector.extract_strided_slice %24 {offsets = [0, 0], sizes = [2, 128], strides = [1, 1]} : vector<2x512xf32> to vector<2x128xf32>
    %26 = arith.negf %25 : vector<2x128xf32>
    %27 = math.exp %26 : vector<2x128xf32>
    %cst_23 = arith.constant 1.000000e+00 : f32
    %28 = vector.broadcast %cst_23 : f32 to vector<2x128xf32>
    %29 = arith.addf %28, %27 : vector<2x128xf32>
    %30 = arith.divf %28, %29 : vector<2x128xf32>
    %31 = vector.extract_strided_slice %24 {offsets = [0, 128], sizes = [2, 128], strides = [1, 1]} : vector<2x512xf32> to vector<2x128xf32>
    %32 = arith.negf %31 : vector<2x128xf32>
    %33 = math.exp %32 : vector<2x128xf32>
    %cst_24 = arith.constant 1.000000e+00 : f32
    %34 = vector.broadcast %cst_24 : f32 to vector<2x128xf32>
    %35 = arith.addf %34, %33 : vector<2x128xf32>
    %36 = arith.divf %34, %35 : vector<2x128xf32>
    %37 = vector.extract_strided_slice %24 {offsets = [0, 256], sizes = [2, 128], strides = [1, 1]} : vector<2x512xf32> to vector<2x128xf32>
    %38 = math.tanh %37 : vector<2x128xf32>
    %39 = vector.extract_strided_slice %24 {offsets = [0, 384], sizes = [2, 128], strides = [1, 1]} : vector<2x512xf32> to vector<2x128xf32>
    %40 = arith.negf %39 : vector<2x128xf32>
    %41 = math.exp %40 : vector<2x128xf32>
    %cst_25 = arith.constant 1.000000e+00 : f32
    %42 = vector.broadcast %cst_25 : f32 to vector<2x128xf32>
    %43 = arith.addf %42, %41 : vector<2x128xf32>
    %44 = arith.divf %42, %43 : vector<2x128xf32>
    %45 = arith.mulf %36, %20 : vector<2x128xf32>
    %46 = arith.mulf %30, %38 : vector<2x128xf32>
    %47 = arith.addf %45, %46 : vector<2x128xf32>
    %48 = math.tanh %47 : vector<2x128xf32>
    %49 = arith.mulf %44, %48 : vector<2x128xf32>
    %50 = vector.extract_strided_slice %18 {offsets = [0, 1, 0], sizes = [2, 1, 512], strides = [1, 1, 1]} : vector<2x8x512xf32> to vector<2x1x512xf32>
    %51 = vector.shape_cast %50 : vector<2x1x512xf32> to vector<2x512xf32>
    %cst_26 = arith.constant dense<0.000000e+00> : vector<2x512xf32>
    %52 = tpu.matmul %49, %0, %cst_26 {dimension_numbers = #tpu.dot_dimension_numbers<[1], [0], [0], [1], [0, 0, 1, 1], [], []>} : vector<2x128xf32>, vector<128x512xf32>, vector<2x512xf32> -> vector<2x512xf32>
    %53 = arith.addf %51, %52 : vector<2x512xf32>
    %54 = vector.extract_strided_slice %53 {offsets = [0, 0], sizes = [2, 128], strides = [1, 1]} : vector<2x512xf32> to vector<2x128xf32>
    %55 = arith.negf %54 : vector<2x128xf32>
    %56 = math.exp %55 : vector<2x128xf32>
    %cst_27 = arith.constant 1.000000e+00 : f32
    %57 = vector.broadcast %cst_27 : f32 to vector<2x128xf32>
    %58 = arith.addf %57, %56 : vector<2x128xf32>
    %59 = arith.divf %57, %58 : vector<2x128xf32>
    %60 = vector.extract_strided_slice %53 {offsets = [0, 128], sizes = [2, 128], strides = [1, 1]} : vector<2x512xf32> to vector<2x128xf32>
    %61 = arith.negf %60 : vector<2x128xf32>
    %62 = math.exp %61 : vector<2x128xf32>
    %cst_28 = arith.constant 1.000000e+00 : f32
    %63 = vector.broadcast %cst_28 : f32 to vector<2x128xf32>
    %64 = arith.addf %63, %62 : vector<2x128xf32>
    %65 = arith.divf %63, %64 : vector<2x128xf32>
    %66 = vector.extract_strided_slice %53 {offsets = [0, 256], sizes = [2, 128], strides = [1, 1]} : vector<2x512xf32> to vector<2x128xf32>
    %67 = math.tanh %66 : vector<2x128xf32>
    %68 = vector.extract_strided_slice %53 {offsets = [0, 384], sizes = [2, 128], strides = [1, 1]} : vector<2x512xf32> to vector<2x128xf32>
    %69 = arith.negf %68 : vector<2x128xf32>
    %70 = math.exp %69 : vector<2x128xf32>
    %cst_29 = arith.constant 1.000000e+00 : f32
    %71 = vector.broadcast %cst_29 : f32 to vector<2x128xf32>
    %72 = arith.addf %71, %70 : vector<2x128xf32>
    %73 = arith.divf %71, %72 : vector<2x128xf32>
    %74 = arith.mulf %65, %47 : vector<2x128xf32>
    %75 = arith.mulf %59, %67 : vector<2x128xf32>
    %76 = arith.addf %74, %75 : vector<2x128xf32>
    %77 = math.tanh %76 : vector<2x128xf32>
    %78 = arith.mulf %73, %77 : vector<2x128xf32>
    %79 = vector.extract_strided_slice %18 {offsets = [0, 2, 0], sizes = [2, 1, 512], strides = [1, 1, 1]} : vector<2x8x512xf32> to vector<2x1x512xf32>
    %80 = vector.shape_cast %79 : vector<2x1x512xf32> to vector<2x512xf32>
    %cst_30 = arith.constant dense<0.000000e+00> : vector<2x512xf32>
    %81 = tpu.matmul %78, %0, %cst_30 {dimension_numbers = #tpu.dot_dimension_numbers<[1], [0], [0], [1], [0, 0, 1, 1], [], []>} : vector<2x128xf32>, vector<128x512xf32>, vector<2x512xf32> -> vector<2x512xf32>
    %82 = arith.addf %80, %81 : vector<2x512xf32>
    %83 = vector.extract_strided_slice %82 {offsets = [0, 0], sizes = [2, 128], strides = [1, 1]} : vector<2x512xf32> to vector<2x128xf32>
    %84 = arith.negf %83 : vector<2x128xf32>
    %85 = math.exp %84 : vector<2x128xf32>
    %cst_31 = arith.constant 1.000000e+00 : f32
    %86 = vector.broadcast %cst_31 : f32 to vector<2x128xf32>
    %87 = arith.addf %86, %85 : vector<2x128xf32>
    %88 = arith.divf %86, %87 : vector<2x128xf32>
    %89 = vector.extract_strided_slice %82 {offsets = [0, 128], sizes = [2, 128], strides = [1, 1]} : vector<2x512xf32> to vector<2x128xf32>
    %90 = arith.negf %89 : vector<2x128xf32>
    %91 = math.exp %90 : vector<2x128xf32>
    %cst_32 = arith.constant 1.000000e+00 : f32
    %92 = vector.broadcast %cst_32 : f32 to vector<2x128xf32>
    %93 = arith.addf %92, %91 : vector<2x128xf32>
    %94 = arith.divf %92, %93 : vector<2x128xf32>
    %95 = vector.extract_strided_slice %82 {offsets = [0, 256], sizes = [2, 128], strides = [1, 1]} : vector<2x512xf32> to vector<2x128xf32>
    %96 = math.tanh %95 : vector<2x128xf32>
    %97 = vector.extract_strided_slice %82 {offsets = [0, 384], sizes = [2, 128], strides = [1, 1]} : vector<2x512xf32> to vector<2x128xf32>
    %98 = arith.negf %97 : vector<2x128xf32>
    %99 = math.exp %98 : vector<2x128xf32>
    %cst_33 = arith.constant 1.000000e+00 : f32
    %100 = vector.broadcast %cst_33 : f32 to vector<2x128xf32>
    %101 = arith.addf %100, %99 : vector<2x128xf32>
    %102 = arith.divf %100, %101 : vector<2x128xf32>
    %103 = arith.mulf %94, %76 : vector<2x128xf32>
    %104 = arith.mulf %88, %96 : vector<2x128xf32>
    %105 = arith.addf %103, %104 : vector<2x128xf32>
    %106 = math.tanh %105 : vector<2x128xf32>
    %107 = arith.mulf %102, %106 : vector<2x128xf32>
    %108 = vector.extract_strided_slice %18 {offsets = [0, 3, 0], sizes = [2, 1, 512], strides = [1, 1, 1]} : vector<2x8x512xf32> to vector<2x1x512xf32>
    %109 = vector.shape_cast %108 : vector<2x1x512xf32> to vector<2x512xf32>
    %cst_34 = arith.constant dense<0.000000e+00> : vector<2x512xf32>
    %110 = tpu.matmul %107, %0, %cst_34 {dimension_numbers = #tpu.dot_dimension_numbers<[1], [0], [0], [1], [0, 0, 1, 1], [], []>} : vector<2x128xf32>, vector<128x512xf32>, vector<2x512xf32> -> vector<2x512xf32>
    %111 = arith.addf %109, %110 : vector<2x512xf32>
    %112 = vector.extract_strided_slice %111 {offsets = [0, 0], sizes = [2, 128], strides = [1, 1]} : vector<2x512xf32> to vector<2x128xf32>
    %113 = arith.negf %112 : vector<2x128xf32>
    %114 = math.exp %113 : vector<2x128xf32>
    %cst_35 = arith.constant 1.000000e+00 : f32
    %115 = vector.broadcast %cst_35 : f32 to vector<2x128xf32>
    %116 = arith.addf %115, %114 : vector<2x128xf32>
    %117 = arith.divf %115, %116 : vector<2x128xf32>
    %118 = vector.extract_strided_slice %111 {offsets = [0, 128], sizes = [2, 128], strides = [1, 1]} : vector<2x512xf32> to vector<2x128xf32>
    %119 = arith.negf %118 : vector<2x128xf32>
    %120 = math.exp %119 : vector<2x128xf32>
    %cst_36 = arith.constant 1.000000e+00 : f32
    %121 = vector.broadcast %cst_36 : f32 to vector<2x128xf32>
    %122 = arith.addf %121, %120 : vector<2x128xf32>
    %123 = arith.divf %121, %122 : vector<2x128xf32>
    %124 = vector.extract_strided_slice %111 {offsets = [0, 256], sizes = [2, 128], strides = [1, 1]} : vector<2x512xf32> to vector<2x128xf32>
    %125 = math.tanh %124 : vector<2x128xf32>
    %126 = vector.extract_strided_slice %111 {offsets = [0, 384], sizes = [2, 128], strides = [1, 1]} : vector<2x512xf32> to vector<2x128xf32>
    %127 = arith.negf %126 : vector<2x128xf32>
    %128 = math.exp %127 : vector<2x128xf32>
    %cst_37 = arith.constant 1.000000e+00 : f32
    %129 = vector.broadcast %cst_37 : f32 to vector<2x128xf32>
    %130 = arith.addf %129, %128 : vector<2x128xf32>
    %131 = arith.divf %129, %130 : vector<2x128xf32>
    %132 = arith.mulf %123, %105 : vector<2x128xf32>
    %133 = arith.mulf %117, %125 : vector<2x128xf32>
    %134 = arith.addf %132, %133 : vector<2x128xf32>
    %135 = math.tanh %134 : vector<2x128xf32>
    %136 = arith.mulf %131, %135 : vector<2x128xf32>
    %137 = vector.extract_strided_slice %18 {offsets = [0, 4, 0], sizes = [2, 1, 512], strides = [1, 1, 1]} : vector<2x8x512xf32> to vector<2x1x512xf32>
    %138 = vector.shape_cast %137 : vector<2x1x512xf32> to vector<2x512xf32>
    %cst_38 = arith.constant dense<0.000000e+00> : vector<2x512xf32>
    %139 = tpu.matmul %136, %0, %cst_38 {dimension_numbers = #tpu.dot_dimension_numbers<[1], [0], [0], [1], [0, 0, 1, 1], [], []>} : vector<2x128xf32>, vector<128x512xf32>, vector<2x512xf32> -> vector<2x512xf32>
    %140 = arith.addf %138, %139 : vector<2x512xf32>
    %141 = vector.extract_strided_slice %140 {offsets = [0, 0], sizes = [2, 128], strides = [1, 1]} : vector<2x512xf32> to vector<2x128xf32>
    %142 = arith.negf %141 : vector<2x128xf32>
    %143 = math.exp %142 : vector<2x128xf32>
    %cst_39 = arith.constant 1.000000e+00 : f32
    %144 = vector.broadcast %cst_39 : f32 to vector<2x128xf32>
    %145 = arith.addf %144, %143 : vector<2x128xf32>
    %146 = arith.divf %144, %145 : vector<2x128xf32>
    %147 = vector.extract_strided_slice %140 {offsets = [0, 128], sizes = [2, 128], strides = [1, 1]} : vector<2x512xf32> to vector<2x128xf32>
    %148 = arith.negf %147 : vector<2x128xf32>
    %149 = math.exp %148 : vector<2x128xf32>
    %cst_40 = arith.constant 1.000000e+00 : f32
    %150 = vector.broadcast %cst_40 : f32 to vector<2x128xf32>
    %151 = arith.addf %150, %149 : vector<2x128xf32>
    %152 = arith.divf %150, %151 : vector<2x128xf32>
    %153 = vector.extract_strided_slice %140 {offsets = [0, 256], sizes = [2, 128], strides = [1, 1]} : vector<2x512xf32> to vector<2x128xf32>
    %154 = math.tanh %153 : vector<2x128xf32>
    %155 = vector.extract_strided_slice %140 {offsets = [0, 384], sizes = [2, 128], strides = [1, 1]} : vector<2x512xf32> to vector<2x128xf32>
    %156 = arith.negf %155 : vector<2x128xf32>
    %157 = math.exp %156 : vector<2x128xf32>
    %cst_41 = arith.constant 1.000000e+00 : f32
    %158 = vector.broadcast %cst_41 : f32 to vector<2x128xf32>
    %159 = arith.addf %158, %157 : vector<2x128xf32>
    %160 = arith.divf %158, %159 : vector<2x128xf32>
    %161 = arith.mulf %152, %134 : vector<2x128xf32>
    %162 = arith.mulf %146, %154 : vector<2x128xf32>
    %163 = arith.addf %161, %162 : vector<2x128xf32>
    %164 = math.tanh %163 : vector<2x128xf32>
    %165 = arith.mulf %160, %164 : vector<2x128xf32>
    %166 = vector.extract_strided_slice %18 {offsets = [0, 5, 0], sizes = [2, 1, 512], strides = [1, 1, 1]} : vector<2x8x512xf32> to vector<2x1x512xf32>
    %167 = vector.shape_cast %166 : vector<2x1x512xf32> to vector<2x512xf32>
    %cst_42 = arith.constant dense<0.000000e+00> : vector<2x512xf32>
    %168 = tpu.matmul %165, %0, %cst_42 {dimension_numbers = #tpu.dot_dimension_numbers<[1], [0], [0], [1], [0, 0, 1, 1], [], []>} : vector<2x128xf32>, vector<128x512xf32>, vector<2x512xf32> -> vector<2x512xf32>
    %169 = arith.addf %167, %168 : vector<2x512xf32>
    %170 = vector.extract_strided_slice %169 {offsets = [0, 0], sizes = [2, 128], strides = [1, 1]} : vector<2x512xf32> to vector<2x128xf32>
    %171 = arith.negf %170 : vector<2x128xf32>
    %172 = math.exp %171 : vector<2x128xf32>
    %cst_43 = arith.constant 1.000000e+00 : f32
    %173 = vector.broadcast %cst_43 : f32 to vector<2x128xf32>
    %174 = arith.addf %173, %172 : vector<2x128xf32>
    %175 = arith.divf %173, %174 : vector<2x128xf32>
    %176 = vector.extract_strided_slice %169 {offsets = [0, 128], sizes = [2, 128], strides = [1, 1]} : vector<2x512xf32> to vector<2x128xf32>
    %177 = arith.negf %176 : vector<2x128xf32>
    %178 = math.exp %177 : vector<2x128xf32>
    %cst_44 = arith.constant 1.000000e+00 : f32
    %179 = vector.broadcast %cst_44 : f32 to vector<2x128xf32>
    %180 = arith.addf %179, %178 : vector<2x128xf32>
    %181 = arith.divf %179, %180 : vector<2x128xf32>
    %182 = vector.extract_strided_slice %169 {offsets = [0, 256], sizes = [2, 128], strides = [1, 1]} : vector<2x512xf32> to vector<2x128xf32>
    %183 = math.tanh %182 : vector<2x128xf32>
    %184 = vector.extract_strided_slice %169 {offsets = [0, 384], sizes = [2, 128], strides = [1, 1]} : vector<2x512xf32> to vector<2x128xf32>
    %185 = arith.negf %184 : vector<2x128xf32>
    %186 = math.exp %185 : vector<2x128xf32>
    %cst_45 = arith.constant 1.000000e+00 : f32
    %187 = vector.broadcast %cst_45 : f32 to vector<2x128xf32>
    %188 = arith.addf %187, %186 : vector<2x128xf32>
    %189 = arith.divf %187, %188 : vector<2x128xf32>
    %190 = arith.mulf %181, %163 : vector<2x128xf32>
    %191 = arith.mulf %175, %183 : vector<2x128xf32>
    %192 = arith.addf %190, %191 : vector<2x128xf32>
    %193 = math.tanh %192 : vector<2x128xf32>
    %194 = arith.mulf %189, %193 : vector<2x128xf32>
    %195 = vector.extract_strided_slice %18 {offsets = [0, 6, 0], sizes = [2, 1, 512], strides = [1, 1, 1]} : vector<2x8x512xf32> to vector<2x1x512xf32>
    %196 = vector.shape_cast %195 : vector<2x1x512xf32> to vector<2x512xf32>
    %cst_46 = arith.constant dense<0.000000e+00> : vector<2x512xf32>
    %197 = tpu.matmul %194, %0, %cst_46 {dimension_numbers = #tpu.dot_dimension_numbers<[1], [0], [0], [1], [0, 0, 1, 1], [], []>} : vector<2x128xf32>, vector<128x512xf32>, vector<2x512xf32> -> vector<2x512xf32>
    %198 = arith.addf %196, %197 : vector<2x512xf32>
    %199 = vector.extract_strided_slice %198 {offsets = [0, 0], sizes = [2, 128], strides = [1, 1]} : vector<2x512xf32> to vector<2x128xf32>
    %200 = arith.negf %199 : vector<2x128xf32>
    %201 = math.exp %200 : vector<2x128xf32>
    %cst_47 = arith.constant 1.000000e+00 : f32
    %202 = vector.broadcast %cst_47 : f32 to vector<2x128xf32>
    %203 = arith.addf %202, %201 : vector<2x128xf32>
    %204 = arith.divf %202, %203 : vector<2x128xf32>
    %205 = vector.extract_strided_slice %198 {offsets = [0, 128], sizes = [2, 128], strides = [1, 1]} : vector<2x512xf32> to vector<2x128xf32>
    %206 = arith.negf %205 : vector<2x128xf32>
    %207 = math.exp %206 : vector<2x128xf32>
    %cst_48 = arith.constant 1.000000e+00 : f32
    %208 = vector.broadcast %cst_48 : f32 to vector<2x128xf32>
    %209 = arith.addf %208, %207 : vector<2x128xf32>
    %210 = arith.divf %208, %209 : vector<2x128xf32>
    %211 = vector.extract_strided_slice %198 {offsets = [0, 256], sizes = [2, 128], strides = [1, 1]} : vector<2x512xf32> to vector<2x128xf32>
    %212 = math.tanh %211 : vector<2x128xf32>
    %213 = vector.extract_strided_slice %198 {offsets = [0, 384], sizes = [2, 128], strides = [1, 1]} : vector<2x512xf32> to vector<2x128xf32>
    %214 = arith.negf %213 : vector<2x128xf32>
    %215 = math.exp %214 : vector<2x128xf32>
    %cst_49 = arith.constant 1.000000e+00 : f32
    %216 = vector.broadcast %cst_49 : f32 to vector<2x128xf32>
    %217 = arith.addf %216, %215 : vector<2x128xf32>
    %218 = arith.divf %216, %217 : vector<2x128xf32>
    %219 = arith.mulf %210, %192 : vector<2x128xf32>
    %220 = arith.mulf %204, %212 : vector<2x128xf32>
    %221 = arith.addf %219, %220 : vector<2x128xf32>
    %222 = math.tanh %221 : vector<2x128xf32>
    %223 = arith.mulf %218, %222 : vector<2x128xf32>
    %224 = vector.extract_strided_slice %18 {offsets = [0, 7, 0], sizes = [2, 1, 512], strides = [1, 1, 1]} : vector<2x8x512xf32> to vector<2x1x512xf32>
    %225 = vector.shape_cast %224 : vector<2x1x512xf32> to vector<2x512xf32>
    %cst_50 = arith.constant dense<0.000000e+00> : vector<2x512xf32>
    %226 = tpu.matmul %223, %0, %cst_50 {dimension_numbers = #tpu.dot_dimension_numbers<[1], [0], [0], [1], [0, 0, 1, 1], [], []>} : vector<2x128xf32>, vector<128x512xf32>, vector<2x512xf32> -> vector<2x512xf32>
    %227 = arith.addf %225, %226 : vector<2x512xf32>
    %228 = vector.extract_strided_slice %227 {offsets = [0, 0], sizes = [2, 128], strides = [1, 1]} : vector<2x512xf32> to vector<2x128xf32>
    %229 = arith.negf %228 : vector<2x128xf32>
    %230 = math.exp %229 : vector<2x128xf32>
    %cst_51 = arith.constant 1.000000e+00 : f32
    %231 = vector.broadcast %cst_51 : f32 to vector<2x128xf32>
    %232 = arith.addf %231, %230 : vector<2x128xf32>
    %233 = arith.divf %231, %232 : vector<2x128xf32>
    %234 = vector.extract_strided_slice %227 {offsets = [0, 128], sizes = [2, 128], strides = [1, 1]} : vector<2x512xf32> to vector<2x128xf32>
    %235 = arith.negf %234 : vector<2x128xf32>
    %236 = math.exp %235 : vector<2x128xf32>
    %cst_52 = arith.constant 1.000000e+00 : f32
    %237 = vector.broadcast %cst_52 : f32 to vector<2x128xf32>
    %238 = arith.addf %237, %236 : vector<2x128xf32>
    %239 = arith.divf %237, %238 : vector<2x128xf32>
    %240 = vector.extract_strided_slice %227 {offsets = [0, 256], sizes = [2, 128], strides = [1, 1]} : vector<2x512xf32> to vector<2x128xf32>
    %241 = math.tanh %240 : vector<2x128xf32>
    %242 = vector.extract_strided_slice %227 {offsets = [0, 384], sizes = [2, 128], strides = [1, 1]} : vector<2x512xf32> to vector<2x128xf32>
    %243 = arith.negf %242 : vector<2x128xf32>
    %244 = math.exp %243 : vector<2x128xf32>
    %cst_53 = arith.constant 1.000000e+00 : f32
    %245 = vector.broadcast %cst_53 : f32 to vector<2x128xf32>
    %246 = arith.addf %245, %244 : vector<2x128xf32>
    %247 = arith.divf %245, %246 : vector<2x128xf32>
    %248 = arith.mulf %239, %221 : vector<2x128xf32>
    %249 = arith.mulf %233, %241 : vector<2x128xf32>
    %250 = arith.addf %248, %249 : vector<2x128xf32>
    %251 = math.tanh %250 : vector<2x128xf32>
    %252 = arith.mulf %247, %251 : vector<2x128xf32>
    %c0_54 = arith.constant 0 : index
    %c0_55 = arith.constant 0 : index
    %253 = vector.load %arg10[%c0_54, %c0_55] : memref<128x32xf32, #tpu.memory_space<vmem>>, vector<128x32xf32>
    %cst_56 = arith.constant dense<0.000000e+00> : vector<2x32xf32>
    %254 = tpu.matmul %252, %253, %cst_56 {dimension_numbers = #tpu.dot_dimension_numbers<[1], [0], [0], [1], [0, 0, 1, 1], [], []>} : vector<2x128xf32>, vector<128x32xf32>, vector<2x32xf32> -> vector<2x32xf32>
    %c0_57 = arith.constant 0 : index
    %c0_58 = arith.constant 0 : index
    %255 = vector.load %arg4[%c0_57, %c0_58] : memref<2x32xf32, #tpu.memory_space<vmem>>, vector<2x32xf32>
    %c0_59 = arith.constant 0 : index
    %c0_60 = arith.constant 0 : index
    %256 = vector.load %arg11[%c0_59, %c0_60] : memref<32x32xf32, #tpu.memory_space<vmem>>, vector<32x32xf32>
    %cst_61 = arith.constant dense<0.000000e+00> : vector<2x32xf32>
    %257 = tpu.matmul %255, %256, %cst_61 {dimension_numbers = #tpu.dot_dimension_numbers<[1], [0], [0], [1], [0, 0, 1, 1], [], []>} : vector<2x32xf32>, vector<32x32xf32>, vector<2x32xf32> -> vector<2x32xf32>
    %258 = arith.addf %254, %257 : vector<2x32xf32>
    %c0_62 = arith.constant 0 : index
    %c0_63 = arith.constant 0 : index
    %259 = vector.load %arg12[%c0_62, %c0_63] : memref<1x32xf32, #tpu.memory_space<vmem>>, vector<1x32xf32>
    %260 = vector.broadcast %259 : vector<1x32xf32> to vector<2x32xf32>
    %261 = arith.addf %258, %260 : vector<2x32xf32>
    %cst_64 = arith.constant 0.000000e+00 : f32
    %262 = vector.broadcast %cst_64 : f32 to vector<2x32xf32>
    %263 = arith.maximumf %261, %262 : vector<2x32xf32>
    %c0_65 = arith.constant 0 : index
    %c0_66 = arith.constant 0 : index
    %264 = vector.load %arg13[%c0_65, %c0_66] : memref<32x32xf32, #tpu.memory_space<vmem>>, vector<32x32xf32>
    %cst_67 = arith.constant dense<0.000000e+00> : vector<2x32xf32>
    %265 = tpu.matmul %263, %264, %cst_67 {dimension_numbers = #tpu.dot_dimension_numbers<[1], [0], [0], [1], [0, 0, 1, 1], [], []>} : vector<2x32xf32>, vector<32x32xf32>, vector<2x32xf32> -> vector<2x32xf32>
    %c0_68 = arith.constant 0 : index
    %c0_69 = arith.constant 0 : index
    %266 = vector.load %arg14[%c0_68, %c0_69] : memref<1x32xf32, #tpu.memory_space<vmem>>, vector<1x32xf32>
    %267 = vector.broadcast %266 : vector<1x32xf32> to vector<2x32xf32>
    %268 = arith.addf %265, %267 : vector<2x32xf32>
    %c0_70 = arith.constant 0 : index
    %c0_71 = arith.constant 0 : index
    %269 = vector.load %arg15[%c0_70, %c0_71] : memref<2x32xf32, #tpu.memory_space<vmem>>, vector<2x32xf32>
    tpu.vector_store %arg15[%c0_70, %c0_71], %268 {strides = array<i32>} : memref<2x32xf32, #tpu.memory_space<vmem>>, vector<2x32xf32>,
    return
  }
  func.func @transform_0(%arg0: i32) -> (i32, i32, i32) {
    %c0_i32 = arith.constant 0 : i32
    %c0_i32_0 = arith.constant 0 : i32
    %c0_i32_1 = arith.constant 0 : i32
    return %arg0, %c0_i32, %c0_i32_0 : i32, i32, i32
  }
  func.func @transform_1(%arg0: i32) -> (i32, i32, i32) {
    %c0_i32 = arith.constant 0 : i32
    %c0_i32_0 = arith.constant 0 : i32
    %c0_i32_1 = arith.constant 0 : i32
    return %arg0, %c0_i32, %c0_i32_0 : i32, i32, i32
  }
  func.func @transform_2(%arg0: i32) -> (i32, i32, i32) {
    %c0_i32 = arith.constant 0 : i32
    %c0_i32_0 = arith.constant 0 : i32
    %c0_i32_1 = arith.constant 0 : i32
    return %arg0, %c0_i32, %c0_i32_0 : i32, i32, i32
  }
  func.func @transform_3(%arg0: i32) -> (i32, i32) {
    %c0_i32 = arith.constant 0 : i32
    %c0_i32_0 = arith.constant 0 : i32
    return %arg0, %c0_i32 : i32, i32
  }
  func.func @transform_4(%arg0: i32) -> (i32, i32) {
    %c0_i32 = arith.constant 0 : i32
    %c0_i32_0 = arith.constant 0 : i32
    %c0_i32_1 = arith.constant 0 : i32
    return %c0_i32, %c0_i32_0 : i32, i32
  }
  func.func @transform_5(%arg0: i32) -> (i32, i32) {
    %c0_i32 = arith.constant 0 : i32
    %c0_i32_0 = arith.constant 0 : i32
    %c0_i32_1 = arith.constant 0 : i32
    return %c0_i32, %c0_i32_0 : i32, i32
  }
  func.func @transform_6(%arg0: i32) -> (i32, i32) {
    %c0_i32 = arith.constant 0 : i32
    %c0_i32_0 = arith.constant 0 : i32
    %c0_i32_1 = arith.constant 0 : i32
    return %c0_i32, %c0_i32_0 : i32, i32
  }
  func.func @transform_7(%arg0: i32) -> (i32, i32) {
    %c0_i32 = arith.constant 0 : i32
    %c0_i32_0 = arith.constant 0 : i32
    %c0_i32_1 = arith.constant 0 : i32
    return %c0_i32, %c0_i32_0 : i32, i32
  }
  func.func @transform_8(%arg0: i32) -> (i32, i32) {
    %c0_i32 = arith.constant 0 : i32
    %c0_i32_0 = arith.constant 0 : i32
    %c0_i32_1 = arith.constant 0 : i32
    return %c0_i32, %c0_i32_0 : i32, i32
  }
  func.func @transform_9(%arg0: i32) -> (i32, i32) {
    %c0_i32 = arith.constant 0 : i32
    %c0_i32_0 = arith.constant 0 : i32
    %c0_i32_1 = arith.constant 0 : i32
    return %c0_i32, %c0_i32_0 : i32, i32
  }
  func.func @transform_10(%arg0: i32) -> (i32, i32) {
    %c0_i32 = arith.constant 0 : i32
    %c0_i32_0 = arith.constant 0 : i32
    %c0_i32_1 = arith.constant 0 : i32
    return %c0_i32, %c0_i32_0 : i32, i32
  }
  func.func @transform_11(%arg0: i32) -> (i32, i32) {
    %c0_i32 = arith.constant 0 : i32
    %c0_i32_0 = arith.constant 0 : i32
    %c0_i32_1 = arith.constant 0 : i32
    return %c0_i32, %c0_i32_0 : i32, i32
  }
  func.func @transform_12(%arg0: i32) -> (i32, i32) {
    %c0_i32 = arith.constant 0 : i32
    %c0_i32_0 = arith.constant 0 : i32
    %c0_i32_1 = arith.constant 0 : i32
    return %c0_i32, %c0_i32_0 : i32, i32
  }
  func.func @transform_13(%arg0: i32) -> (i32, i32) {
    %c0_i32 = arith.constant 0 : i32
    %c0_i32_0 = arith.constant 0 : i32
    %c0_i32_1 = arith.constant 0 : i32
    return %c0_i32, %c0_i32_0 : i32, i32
  }
  func.func @transform_14(%arg0: i32) -> (i32, i32) {
    %c0_i32 = arith.constant 0 : i32
    %c0_i32_0 = arith.constant 0 : i32
    return %arg0, %c0_i32 : i32, i32
  }
}

</mosaic_0001>

<bundles_post_ra>
// kernel: tpu_custom_call.1
= control target key start
LH: loop header
LB: loop body
LE: loop exit
PB: predicated region body
PF: predicated region fallthrough
CT: control target
= control target key end

     0   :  { %19 = vsyncpa [#allocation3], 0  ;;  %s4763_s0 = inlined_call_operand.hbm [shape: f32[2,8,32], index: 0, kind: input, shape index: {}]   ;;  %s4764_s1 = inlined_call_operand.hbm [shape: f32[2,8,16], index: 1, kind: input, shape index: {}]   ;;  %s4765_s2 = inlined_call_operand.hbm [shape: f32[2,8,16], index: 2, kind: input, shape index: {}]   ;;  %s4766_s3 = inlined_call_operand.vmem [shape: f32[2,32], index: 3, kind: input, shape index: {}]   ;;  %s4767_s4 = inlined_call_operand.vmem [shape: f32[32,512], index: 4, kind: input, shape index: {}]   ;;  %s4768_s5 = inlined_call_operand.hbm [shape: f32[16,512], index: 5, kind: input, shape index: {}]   ;;  %s4769_s6 = inlined_call_operand.hbm [shape: f32[16,512], index: 6, kind: input, shape index: {}]   ;;  %s4770_s7 = inlined_call_operand.hbm [shape: f32[128,512], index: 7, kind: input, shape index: {}]   ;;  %s4771_s8 = inlined_call_operand.vmem [shape: f32[1,512], index: 8, kind: input, shape index: {}]   ;;  %s4772_s9 = inlined_call_operand.vmem [shape: f32[128,32], index: 9, kind: input, shape index: {}]   ;;  %s4773_s10 = inlined_call_operand.vmem [shape: f32[32,32], index: 10, kind: input, shape index: {}]   ;;  %s4774_s11 = inlined_call_operand.vmem [shape: f32[1,32], index: 11, kind: input, shape index: {}]   ;;  %s4775_s12 = inlined_call_operand.hbm [shape: f32[32,32], index: 12, kind: input, shape index: {}]   ;;  %s4776_s13 = inlined_call_operand.vmem [shape: f32[1,32], index: 13, kind: input, shape index: {}]   ;;  %s4777_s14 = inlined_call_operand.hbm [shape: f32[2,32], index: 14, kind: output, shape index: {}]  }
   0x1   :  { %20 = vsyncpa [#allocation6], 0 }
   0x2   :  { %21 = vsyncpa [#allocation9], 0 }
   0x3   :  { %22 = vsyncpa [#allocation12], 0 }
   0x4   :  { %23 = vsyncpa [#allocation4], 0  ;;  %s3519_s29 = smov [#allocation5]   ;;  %s3520_s15 = smov [#allocation8]  }
   0x5   :  { %s41_s30 = sshll.u32 %s3519_s29, 4  ;;  %s69_s16 = sshll.u32 %s3520_s15, 4  ;;  %s42_s30 = int_to_ptr.vmem [resolvable:$true] %s41_s30  ;;  %s70_s16 = int_to_ptr.vmem [resolvable:$true] %s69_s16 }
   0x6   :  { %s3357_s17 = scalar_lea.vmem %s42_s30, 256  ;;  %p3362_p1 = scmp.lt.s32.totalorder %s42_s30, %s42_s30 }
   0x7   :  { %p3358_p0 = scmp.ne.s32.totalorder %s42_s30, %s3357_s17  ;;  %p3363_p2 = scmp.lt.s32.totalorder %s3357_s17, %s3357_s17 }
   0x9   :  { %p3364_p3 = por %p3363_p2, %p3362_p1 }
   0xb   :  { %p3365_p4 = pnand %p3364_p3, %p3358_p0 }
   0xd   :  { %3368 = shalt.err (!%p3365_p4)
}
   0xe   :  { %s3521_s18 = smov 128   ;;  %s3522_s19 = smov 8  }
   0xf   :  { %47 = dma.hbm_to_vmem [thread:$0]  %s4764_s1, 256, %s42_s30, [#allocation6], %s3521_s18, %s3521_s18, %s3522_s19  }
  0x10   :  { %s3377_s22 = scalar_lea.vmem %s70_s16, 1024  ;;  %p3382_p6 = scmp.lt.s32.totalorder %s70_s16, %s70_s16 }
  0x11   :  { %p3378_p5 = scmp.ne.s32.totalorder %s70_s16, %s3377_s22  ;;  %p3383_p7 = scmp.lt.s32.totalorder %s3377_s22, %s3377_s22 }
  0x13   :  { %p3384_p8 = por %p3383_p7, %p3382_p6 }
  0x15   :  { %p3385_p9 = pnand %p3384_p8, %p3378_p5 }
  0x17   :  { %3388 = shalt.err (!%p3385_p9)
}
  0x18   :  { %s3523_s23 = smov 512   ;;  %s3524_s24 = smov 32  }
  0x19   :  { %75 = dma.hbm_to_vmem [thread:$0]  %s4768_s5, 1024, %s70_s16, [#allocation9], %s3523_s23, %s3523_s23, %s3524_s24  }
  0x1a   :  { %s3525_s27 = smov [#allocation11]   ;;  %s3526_s29 = smov [#allocation2]  }
  0x1b   :  { %s93_s28 = sshll.u32 %s3525_s27, 4  ;;  %s29_s1 = sshll.u32 %s3526_s29, 4  ;;  %s94_s28 = int_to_ptr.vmem [resolvable:$true] %s93_s28  ;;  %s30_s1 = int_to_ptr.vmem [resolvable:$true] %s29_s1 }
  0x1c   :  { %s3397_s30 = scalar_lea.vmem %s94_s28, 8192  ;;  %p3402_p11 = scmp.lt.s32.totalorder %s94_s28, %s94_s28 }
  0x1d   :  { %p3398_p10 = scmp.ne.s32.totalorder %s94_s28, %s3397_s30  ;;  %p3403_p12 = scmp.lt.s32.totalorder %s3397_s30, %s3397_s30 }
  0x1f   :  { %p3404_p13 = por %p3403_p12, %p3402_p11 }
  0x21   :  { %p3405_p0 = pnand %p3404_p13, %p3398_p10 }
  0x23   :  { %3408 = shalt.err (!%p3405_p0)
}
  0x24   :  { %99 = dma.hbm_to_vmem [thread:$0]  %s4770_s7, 8192, %s94_s28, [#allocation12], %s3523_s23, %s3523_s23, %s3524_s24  }
  0x25   :  { %s3417_s5 = scalar_lea.vmem %s30_s1, 256  ;;  %p3422_p2 = scmp.lt.s32.totalorder %s30_s1, %s30_s1 }
  0x26   :  { %p3418_p1 = scmp.ne.s32.totalorder %s30_s1, %s3417_s5  ;;  %p3423_p3 = scmp.lt.s32.totalorder %s3417_s5, %s3417_s5 }
  0x28   :  { %p3424_p4 = por %p3423_p3, %p3422_p2 }
  0x2a   :  { %p3425_p5 = pnand %p3424_p4, %p3418_p1 }
  0x2c   :  { %3428 = shalt.err (!%p3425_p5)
}
  0x2d   :  { %35 = dma.hbm_to_vmem [thread:$0]  %s4763_s0, 256, %s30_s1, [#allocation3], %s3521_s18, %s3521_s18, %s3522_s19  }
  0x2e   :  { %s3527_s21 = smov [#allocation7]   ;;  %s3528_s25 = smov [#allocation10]  }
  0x2f   :  { %s53_s22 = sshll.u32 %s3527_s21, 4  ;;  %s81_s26 = sshll.u32 %s3528_s25, 4  ;;  %s54_s22 = int_to_ptr.vmem [resolvable:$true] %s53_s22  ;;  %s82_s26 = int_to_ptr.vmem [resolvable:$true] %s81_s26 }
  0x30   :  { %s3437_s7 = scalar_lea.vmem %s54_s22, 256  ;;  %p3442_p7 = scmp.lt.s32.totalorder %s54_s22, %s54_s22 }
  0x31   :  { %p3438_p6 = scmp.ne.s32.totalorder %s54_s22, %s3437_s7  ;;  %p3443_p8 = scmp.lt.s32.totalorder %s3437_s7, %s3437_s7 }
  0x33   :  { %p3444_p9 = por %p3443_p8, %p3442_p7 }
  0x35   :  { %p3445_p10 = pnand %p3444_p9, %p3438_p6 }
  0x37   :  { %3448 = shalt.err (!%p3445_p10)
}
  0x38   :  { %59 = dma.hbm_to_vmem [thread:$0]  %s4765_s2, 256, %s54_s22, [#allocation6], %s3521_s18, %s3521_s18, %s3522_s19  }
  0x39   :  { %s3457_s0 = scalar_lea.vmem %s82_s26, 1024  ;;  %p3462_p12 = scmp.lt.s32.totalorder %s82_s26, %s82_s26 }
  0x3a   :  { %p3458_p11 = scmp.ne.s32.totalorder %s82_s26, %s3457_s0  ;;  %p3463_p13 = scmp.lt.s32.totalorder %s3457_s0, %s3457_s0 }
  0x3c   :  { %p3464_p0 = por %p3463_p13, %p3462_p12 }
  0x3e   :  { %p3465_p1 = pnand %p3464_p0, %p3458_p11 }
  0x40   :  { %3468 = shalt.err (!%p3465_p1)
}
  0x41   :  { %87 = dma.hbm_to_vmem [thread:$0]  %s4769_s6, 1024, %s82_s26, [#allocation9], %s3523_s23, %s3523_s23, %s3524_s24  }
  0x42   :  { %s3529_s30 = smov [#allocation13]  }
  0x43   :  { %s113_s15 = sshll.u32 %s3529_s30, 4  ;;  %s114_s15 = int_to_ptr.vmem [resolvable:$true] %s113_s15 }
  0x44   :  { %s3477_s17 = scalar_lea.vmem %s114_s15, 512  ;;  %p3482_p3 = scmp.lt.s32.totalorder %s114_s15, %s114_s15 }
  0x45   :  { %p3478_p2 = scmp.ne.s32.totalorder %s114_s15, %s3477_s17  ;;  %p3483_p4 = scmp.lt.s32.totalorder %s3477_s17, %s3477_s17 }
  0x47   :  { %p3484_p5 = por %p3483_p4, %p3482_p3 }
  0x49   :  { %p3485_p6 = pnand %p3484_p5, %p3478_p2 }
  0x4b   :  { %3488 = shalt.err (!%p3485_p6)
}
  0x4c   :  { %119 = dma.hbm_to_vmem [thread:$0]  %s4775_s12, 512, %s114_s15, [#allocation12], %s3521_s18, %s3521_s18, %s3522_s19  }
  0x4d   :  { %3509 = dma.done.wait [#allocation3], 256  }
  0x4e   :  { %3510 = vsyncadd [#allocation3], 4294967040 }
  0x4f   :  { %3511 = dma.done.wait [#allocation6], 512  }
  0x50   :  { %3512 = vsyncadd [#allocation6], 4294966784 }
  0x51   :  { %3513 = dma.done.wait [#allocation9], 2048  }
  0x52   :  { %3514 = vsyncadd [#allocation9], 4294965248 }
  0x53   :  { %3515 = dma.done.wait [#allocation12], 8704  }
  0x54   :  { %3516 = vsyncadd [#allocation12], 4294958592  ;;  %v4778_v0 = vmov 0.0   ;;  %v234_v1 = vld [vmem:[#allocation8 + $0x28] sm:$0xff]  ;;  %v236_v2 = vld [vmem:[#allocation8 + $0x38] sm:$0xff]  ;;  %vm237_vm0 = vcmask 130048  }
  0x55   :  { %308 = vmatprep.mubr.f32.mxu0 %v4778_v0  ;;  %385 = vmatprep.mubr.f32.mxu1 %v4778_v0  ;;  %v233_v3 = vld [vmem:[#allocation8 + $0x20] sm:$0xff]  ;;  %v235_v4 = vld [vmem:[#allocation8 + $0x30] sm:$0xff]  ;;  %v230_v5 = vld [vmem:[#allocation8 + $0x8] sm:$0xff]  ;;  %vm398_vm1 = vcmask 261120   ;;  %vm982_vm2 = vcmask 1041409   ;;  %vm3531_vm3 = vmmov 0  }
  0x56   :  { %272 = vmatprep.subr.mxu0 %v234_v1  ;;  %349 = vmatprep.subr.mxu1 %v236_v2  ;;  %v232_v6 = vld [vmem:[#allocation8 + $0x18] sm:$0xff]  ;;  %v229_v7 = vld [vmem:[#allocation8] sm:$0xff]  ;;  %v231_v8 = vld [vmem:[#allocation8 + $0x10] sm:$0xff]  ;;  %s3532_s23 = smov [#allocation14]   ;;  %vm2847_vm4 = vcmask 254976  }
  0x57   :  { %273 = vmatpush1.msra.mxu0 %v233_v3  ;;  %350 = vmatpush1.msra.mxu1 %v235_v4  ;;  %v209_v9 = vld [vmem:[#allocation5] sm:$0xff]  ;;  %v226_v10 = vld [vmem:[%s4767_s4 + $0x68] sm:$0xff]  ;;  %v225_v11 = vld [vmem:[%s4767_s4 + $0x60] sm:$0xff]  ;;  %s2855_s24 = sshll.u32 %s3532_s23, 4  ;;  %s2856_s24 = int_to_ptr.vmem [resolvable:$true] %s2855_s24 }
  0x58   :  { %274 = vmatprep.subr.mxu0 %v230_v5  ;;  %351 = vmatprep.subr.mxu1 %v232_v6  ;;  %v222_v12 = vld [vmem:[%s4767_s4 + $0x48] sm:$0xff]  ;;  %v221_v14 = vld [vmem:[%s4767_s4 + $0x40] sm:$0xff]  ;;  %v210_v15 = vld [vmem:[#allocation5 + $0x8] sm:$0xff]  ;;  %s3489_s16 = scalar_lea.vmem %s2856_s24, 32  ;;  %p3494_p8 = scmp.lt.s32.totalorder %s2856_s24, %s2856_s24 }
  0x59   :  { %275 = vmatpush1.msra.mxu0 %v229_v7  ;;  %352 = vmatpush1.msra.mxu1 %v231_v8  ;;  %v566_v13 = vld [vmem:[#allocation10 + $0x38] sm:$0xff]  ;;  %v565_v17 = vld [vmem:[#allocation10 + $0x30] sm:$0xff]  ;;  %v228_v25 = vld [vmem:[%s4767_s4 + $0x78] sm:$0xff]  ;;  %p3490_p7 = scmp.ne.s32.totalorder %s2856_s24, %s3489_s16  ;;  %p3495_p9 = scmp.lt.s32.totalorder %s3489_s16, %s3489_s16 }
  0x5a   :  { %2867 = vmatmul.mubr.msk.f32.vlgmr.msra.gmra.mxu0 %vm237_vm0, %v209_v9  ;;  %2869 = vmatmul.mubr.msk.f32.vlgmr.msra.gmra.mxu1 %vm237_vm0, %v209_v9  ;;  %v218_v16 = vld [vmem:[%s4767_s4 + $0x28] sm:$0xff]  ;;  %v217_v18 = vld [vmem:[%s4767_s4 + $0x20] sm:$0xff]  ;;  %v227_v28 = vld [vmem:[%s4767_s4 + $0x70] sm:$0xff] }
  0x5b   :  { %429 = vmatprep.subr.mxu0 %v226_v10  ;;  %314 = vmatprep.mubr.f32.mxu0 %v4778_v0  ;;  %v562_v19 = vld [vmem:[#allocation10 + $0x18] sm:$0xff]  ;;  %v561_v21 = vld [vmem:[#allocation10 + $0x10] sm:$0xff]  ;;  %v224_v30 = vld [vmem:[%s4767_s4 + $0x58] sm:$0xff]  ;;  %p3496_p10 = por %p3495_p9, %p3494_p8 }
  0x5c   :  { %430 = vmatpush1.msra.mxu0 %v225_v11  ;;  %391 = vmatprep.mubr.f32.mxu1 %v4778_v0  ;;  %v214_v20 = vld [vmem:[%s4767_s4 + $0x8] sm:$0xff]  ;;  %v213_v22 = vld [vmem:[%s4767_s4] sm:$0xff]  ;;  %v223_v32 = vld [vmem:[%s4767_s4 + $0x50] sm:$0xff] }
  0x5d   :  { %431 = vmatprep.subr.mxu0 %v222_v12  ;;  %678 = vmatprep.subr.mxu1 %v566_v13  ;;  %v3682_v23 = vld [vmem:[#allocation11 + $0x1f8] sm:$0xff]  ;;  %v207_v24 = vld [vmem:[#allocation2] sm:$0xff]  ;;  %v220_v35 = vld [vmem:[%s4767_s4 + $0x38] sm:$0xff]  ;;  %p3497_p11 = pnand %p3496_p10, %p3490_p7 }
  0x5e   :  { %432 = vmatpush1.msra.mxu0 %v221_v14  ;;  %2870 = vmatmul.mubr.msk.f32.gmra.mxu1 %vm237_vm0, %v210_v15  ;;  %4933 = vst [vmem:[#allocation20_spill] sm:$0xff] %v3682_v23  ;;  %v3687_v26 = vld [vmem:[#allocation7] sm:$0xff]  ;;  %v3698_v29 = vld [vmem:[#allocation11 + $0x1d8] sm:$0xff]  ;;  %v219_v37 = vld [vmem:[%s4767_s4 + $0x30] sm:$0xff] }
  0x5f   :  { %2868 = vmatmul.mubr.msk.f32.gmra.mxu0 %vm237_vm0, %v210_v15  ;;  %433 = vmatprep.subr.mxu0 %v218_v16  ;;  %v3691_v27 = vld [vmem:[#allocation11 + $0x1f0] sm:$0xff]  ;;  %v3711_v33 = vld [vmem:[#allocation11 + $0x1b8] sm:$0xff]  ;;  %v216_v39 = vld [vmem:[%s4767_s4 + $0x18] sm:$0xff] }
  0x60   :  { %679 = vmatpush1.msra.mxu1 %v565_v17  ;;  %434 = vmatpush1.msra.mxu0 %v217_v18  ;;  %v3705_v31 = vld [vmem:[#allocation11 + $0x1d0] sm:$0xff]  ;;  %v208_v34 = vld [vmem:[#allocation2 + $0x8] sm:$0xff]  ;;  %v215_v41 = vld [vmem:[%s4767_s4 + $0x10] sm:$0xff] }
  0x61   :  { %680 = vmatprep.subr.mxu1 %v562_v19  ;;  %435 = vmatprep.subr.mxu0 %v214_v20  ;;  %v3719_v36 = vld [vmem:[#allocation11 + $0x1b0] sm:$0xff]  ;;  %v3725_v38 = vld [vmem:[#allocation11 + $0x198] sm:$0xff]  ;;  %v564_v43 = vld [vmem:[#allocation10 + $0x28] sm:$0xff] }
  0x62   :  { %681 = vmatpush1.msra.mxu1 %v561_v21  ;;  %436 = vmatpush1.msra.mxu0 %v213_v22  ;;  %v3731_v40 = vld [vmem:[#allocation11 + $0x190] sm:$0xff]  ;;  %v3737_v42 = vld [vmem:[#allocation11 + $0x178] sm:$0xff]  ;;  %v563_v45 = vld [vmem:[#allocation10 + $0x20] sm:$0xff] }
  0x63   :  { %469 = vmatprep.mubr.f32.mxu0 %v4778_v0  ;;  %714 = vmatprep.mubr.f32.mxu1 %v4778_v0  ;;  %4934 = vst [vmem:[#allocation21_spill] sm:$0xff] %v3731_v40  ;;  %v3741_v44 = vld [vmem:[#allocation11 + $0x170] sm:$0xff]  ;;  %v3745_v46 = vld [vmem:[#allocation11 + $0x158] sm:$0xff]  ;;  %v560_v48 = vld [vmem:[#allocation10 + $0x8] sm:$0xff] }
  0x64   :  { %836 = vmatprep.subr.mxu1 %v3682_v23  ;;  %2871 = vmatmul.mubr.msk.f32.vlgmr.msra.gmra.mxu0 %vm398_vm1, %v207_v24  ;;  %v3748_v47 = vld [vmem:[#allocation11 + $0x150] sm:$0xff]  ;;  %v3751_v49 = vld [vmem:[#allocation11 + $0x138] sm:$0xff]  ;;  %v559_v51 = vld [vmem:[#allocation10] sm:$0xff] }
  0x65   :  { %506 = vmatprep.subr.mxu0 %v228_v25  ;;  %2877 = vmatmul.mubr.msk.f32.vlgmr.msra.gmra.mxu1 %vm237_vm0, %v3687_v26  ;;  %v3755_v50 = vld [vmem:[#allocation11 + $0x130] sm:$0xff]  ;;  %v3758_v52 = vld [vmem:[#allocation11 + $0x118] sm:$0xff]  ;;  %v3765_v55 = vld [vmem:[#allocation11 + $0x1e8] sm:$0xff] }
  0x66   :  { %837 = vmatpush1.msra.mxu1 %v3691_v27  ;;  %507 = vmatpush1.msra.mxu0 %v227_v28  ;;  %4935 = vst [vmem:[#allocation22_spill] sm:$0xff] %v3755_v50  ;;  %4936 = vst [vmem:[#allocation23_spill] sm:$0xff] %v3758_v52  ;;  %v212_v53 = vld [vmem:[#allocation7 + $0x8] sm:$0xff]  ;;  %v3763_v54 = vld [vmem:[#allocation11 + $0x110] sm:$0xff] }
  0x67   :  { %838 = vmatprep.subr.mxu1 %v3698_v29  ;;  %508 = vmatprep.subr.mxu0 %v224_v30  ;;  %4937 = vst [vmem:[#allocation24_spill] sm:$0xff] %v3763_v54  ;;  %4938 = vst [vmem:[#allocation25_spill] sm:$0xff] %v3765_v55  ;;  %v3769_v56 = vld [vmem:[#allocation11 + $0xf8] sm:$0xff]  ;;  %v3773_v57 = vld [vmem:[#allocation11 + $0x1e0] sm:$0xff] }
  0x68   :  { %839 = vmatpush1.msra.mxu1 %v3705_v31  ;;  %475 = vmatprep.mubr.f32.mxu0 %v4778_v0  ;;  %4939 = vst [vmem:[#allocation26_spill] sm:$0xff] %v3769_v56  ;;  %v3775_v58 = vld [vmem:[#allocation11 + $0xf0] sm:$0xff]  ;;  %v3779_v59 = vld [vmem:[#allocation11 + $0x1c8] sm:$0xff]  ;;  %v3781_v60 = vld [vmem:[#allocation11 + $0xd8] sm:$0xff] }
  0x69   :  { %509 = vmatpush1.msra.mxu0 %v223_v32  ;;  %840 = vmatprep.subr.mxu1 %v3711_v33  ;;  %4940 = vst [vmem:[#allocation27_spill] sm:$0xff] %v3775_v58  ;;  %4941 = vst [vmem:[#allocation28_spill] sm:$0xff] %v3781_v60  ;;  %v3786_v61 = vld [vmem:[#allocation11 + $0x1c0] sm:$0xff]  ;;  %v3788_v62 = vld [vmem:[#allocation11 + $0xd0] sm:$0xff] }
  0x6a   :  { %2872 = vmatmul.mubr.msk.f32.gmra.mxu0 %vm398_vm1, %v208_v34  ;;  %510 = vmatprep.subr.mxu0 %v220_v35  ;;  %4942 = vst [vmem:[#allocation29_spill] sm:$0xff] %v3788_v62  ;;  %v3792_v63 = vld [vmem:[#allocation11 + $0x1a8] sm:$0xff]  ;;  %v3796_v1 = vld [vmem:[#allocation11 + $0xb8] sm:$0xff]  ;;  %v3800_v2 = vld [vmem:[#allocation11 + $0x1a0] sm:$0xff] }
  0x6b   :  { %841 = vmatpush1.msra.mxu1 %v3719_v36  ;;  %511 = vmatpush1.msra.mxu0 %v219_v37  ;;  %4943 = vst [vmem:[#allocation30_spill] sm:$0xff] %v3796_v1  ;;  %v3802_v3 = vld [vmem:[#allocation11 + $0xb0] sm:$0xff]  ;;  %v3806_v4 = vld [vmem:[#allocation11 + $0x188] sm:$0xff]  ;;  %v3808_v5 = vld [vmem:[#allocation11 + $0x98] sm:$0xff] }
  0x6c   :  { %842 = vmatprep.subr.mxu1 %v3725_v38  ;;  %512 = vmatprep.subr.mxu0 %v216_v39  ;;  %4944 = vst [vmem:[#allocation31_spill] sm:$0xff] %v3802_v3  ;;  %4945 = vst [vmem:[#allocation32_spill] sm:$0xff] %v3808_v5  ;;  %v3812_v6 = vld [vmem:[#allocation11 + $0x180] sm:$0xff]  ;;  %v3814_v7 = vld [vmem:[#allocation11 + $0x90] sm:$0xff] }
  0x6d   :  { %843 = vmatpush1.msra.mxu1 %v3731_v40  ;;  %513 = vmatpush1.msra.mxu0 %v215_v41  ;;  %4946 = vst [vmem:[#allocation33_spill] sm:$0xff] %v3814_v7  ;;  %v3818_v8 = vld [vmem:[#allocation11 + $0x168] sm:$0xff]  ;;  %v3820_v9 = vld [vmem:[#allocation11 + $0x78] sm:$0xff]  ;;  %v3824_v10 = vld [vmem:[#allocation11 + $0x160] sm:$0xff] }
  0x6e   :  { %546 = vmatprep.mubr.f32.mxu0 %v4778_v0  ;;  %844 = vmatprep.subr.mxu1 %v3737_v42  ;;  %4947 = vst [vmem:[#allocation34_spill] sm:$0xff] %v3820_v9  ;;  %v3826_v11 = vld [vmem:[#allocation11 + $0x70] sm:$0xff]  ;;  %v3830_v12 = vld [vmem:[#allocation11 + $0x148] sm:$0xff]  ;;  %v3832_v13 = vld [vmem:[#allocation11 + $0x58] sm:$0xff] }
  0x6f   :  { %2873 = vmatmul.mubr.msk.f32.vlgmr.msra.gmra.mxu0 %vm398_vm1, %v207_v24  ;;  %601 = vmatprep.subr.mxu0 %v564_v43  ;;  %4948 = vst [vmem:[#allocation35_spill] sm:$0xff] %v3826_v11  ;;  %4949 = vst [vmem:[#allocation36_spill] sm:$0xff] %v3832_v13  ;;  %v3836_v14 = vld [vmem:[#allocation11 + $0x140] sm:$0xff]  ;;  %v3838_v15 = vld [vmem:[#allocation11 + $0x50] sm:$0xff] }
  0x70   :  { %845 = vmatpush1.msra.mxu1 %v3741_v44  ;;  %602 = vmatpush1.msra.mxu0 %v563_v45  ;;  %4950 = vst [vmem:[#allocation37_spill] sm:$0xff] %v3838_v15  ;;  %v3842_v16 = vld [vmem:[#allocation11 + $0x128] sm:$0xff]  ;;  %v3844_v17 = vld [vmem:[#allocation11 + $0x38] sm:$0xff]  ;;  %v3848_v18 = vld [vmem:[#allocation11 + $0x120] sm:$0xff] }
  0x71   :  { %846 = vmatprep.subr.mxu1 %v3745_v46  ;;  %552 = vmatprep.mubr.f32.mxu0 %v4778_v0  ;;  %4951 = vst [vmem:[#allocation38_spill] sm:$0xff] %v3844_v17  ;;  %4952 = vst [vmem:[#allocation39_spill] sm:$0xff] %v3848_v18  ;;  %v3850_v19 = vld [vmem:[#allocation11 + $0x30] sm:$0xff]  ;;  %v3854_v20 = vld [vmem:[#allocation11 + $0x108] sm:$0xff] }
  0x72   :  { %847 = vmatpush1.msra.mxu1 %v3748_v47  ;;  %603 = vmatprep.subr.mxu0 %v560_v48  ;;  %4953 = vst [vmem:[#allocation40_spill] sm:$0xff] %v3850_v19  ;;  %4954 = vst [vmem:[#allocation41_spill] sm:$0xff] %v3854_v20  ;;  %v3856_v21 = vld [vmem:[#allocation11 + $0x18] sm:$0xff]  ;;  %v3860_v22 = vld [vmem:[#allocation11 + $0x100] sm:$0xff] }
  0x73   :  { %848 = vmatprep.subr.mxu1 %v3751_v49  ;;  %2874 = vmatmul.mubr.msk.f32.gmra.mxu0 %vm398_vm1, %v208_v34  ;;  %4955 = vst [vmem:[#allocation42_spill] sm:$0xff] %v3856_v21  ;;  %4956 = vst [vmem:[#allocation43_spill] sm:$0xff] %v3860_v22  ;;  %v3862_v24 = vld [vmem:[#allocation11 + $0x10] sm:$0xff]  ;;  %v3866_v25 = vld [vmem:[#allocation11 + $0xe8] sm:$0xff] }
  0x74   :  { %849 = vmatpush1.msra.mxu1 %v3755_v50  ;;  %604 = vmatpush1.msra.mxu0 %v559_v51  ;;  %4957 = vst [vmem:[#allocation44_spill] sm:$0xff] %v3862_v24  ;;  %4958 = vst [vmem:[#allocation45_spill] sm:$0xff] %v3866_v25  ;;  %v3874_v28 = vld [vmem:[#allocation11 + $0xc8] sm:$0xff]  ;;  %v3878_v30 = vld [vmem:[#allocation11 + $0xc0] sm:$0xff] }
  0x75   :  { %720 = vmatprep.mubr.f32.mxu1 %v4778_v0  ;;  %850 = vmatprep.subr.mxu1 %v3758_v52  ;;  %4960 = vst [vmem:[#allocation47_spill] sm:$0xff] %v3874_v28  ;;  %4961 = vst [vmem:[#allocation48_spill] sm:$0xff] %v3878_v30  ;;  %v3882_v32 = vld [vmem:[#allocation11 + $0xa8] sm:$0xff]  ;;  %v3885_v34 = vld [vmem:[#allocation11 + $0xa0] sm:$0xff] }
  0x76   :  { %2878 = vmatmul.mubr.msk.f32.gmra.mxu1 %vm237_vm0, %v212_v53  ;;  %637 = vmatprep.mubr.f32.mxu0 %v4778_v0  ;;  %4962 = vst [vmem:[#allocation49_spill] sm:$0xff] %v3882_v32  ;;  %4963 = vst [vmem:[#allocation50_spill] sm:$0xff] %v3885_v34  ;;  %v3889_v35 = vld [vmem:[#allocation11 + $0x88] sm:$0xff]  ;;  %v3893_v37 = vld [vmem:[#allocation11 + $0x80] sm:$0xff] }
  0x77   :  { %851 = vmatpush1.msra.mxu1 %v3763_v54  ;;  %765 = vmatprep.subr.mxu0 %v3765_v55  ;;  %4964 = vst [vmem:[#allocation51_spill] sm:$0xff] %v3889_v35  ;;  %4965 = vst [vmem:[#allocation52_spill] sm:$0xff] %v3893_v37  ;;  %v3897_v39 = vld [vmem:[#allocation11 + $0x68] sm:$0xff]  ;;  %v3901_v41 = vld [vmem:[#allocation11 + $0x60] sm:$0xff] }
  0x78   :  { %852 = vmatprep.subr.mxu1 %v3769_v56  ;;  %2875 = vmatmul.mubr.msk.f32.vlgmr.msra.gmra.mxu0 %vm237_vm0, %v3687_v26  ;;  %v3870_v26 = vld [vmem:[#allocation11 + $0xe0] sm:$0xff]  ;;  %4966 = vst [vmem:[#allocation53_spill] sm:$0xff] %v3897_v39  ;;  %4967 = vst [vmem:[#allocation54_spill] sm:$0xff] %v3901_v41  ;;  %v3905_v43 = vld [vmem:[#allocation11 + $0x48] sm:$0xff] }
  0x79   :  { %766 = vmatpush1.msra.mxu0 %v3773_v57  ;;  %853 = vmatpush1.msra.mxu1 %v3775_v58  ;;  %4959 = vst [vmem:[#allocation46_spill] sm:$0xff] %v3870_v26  ;;  %4968 = vst [vmem:[#allocation55_spill] sm:$0xff] %v3905_v43  ;;  %v3909_v45 = vld [vmem:[#allocation11 + $0x40] sm:$0xff]  ;;  %v3913_v48 = vld [vmem:[#allocation11 + $0x28] sm:$0xff] }
  0x7a   :  { %767 = vmatprep.subr.mxu0 %v3779_v59  ;;  %854 = vmatprep.subr.mxu1 %v3781_v60  ;;  %4969 = vst [vmem:[#allocation56_spill] sm:$0xff] %v3909_v45  ;;  %4970 = vst [vmem:[#allocation57_spill] sm:$0xff] %v3913_v48  ;;  %v3917_v51 = vld [vmem:[#allocation11 + $0x20] sm:$0xff] }
  0x7b   :  { %768 = vmatpush1.msra.mxu0 %v3786_v61  ;;  %855 = vmatpush1.msra.mxu1 %v3788_v62  ;;  %4971 = vst [vmem:[#allocation58_spill] sm:$0xff] %v3917_v51 }
  0x7c   :  { %643 = vmatprep.mubr.f32.mxu0 %v4778_v0  ;;  %769 = vmatprep.subr.mxu0 %v3792_v63 }
  0x7d   :  { %856 = vmatprep.subr.mxu1 %v3796_v1  ;;  %2876 = vmatmul.mubr.msk.f32.gmra.mxu0 %vm237_vm0, %v212_v53  ;;  %v3921_v53 = vld [vmem:[#allocation11 + $0x8] sm:$0xff] }
  0x7e   :  { %770 = vmatpush1.msra.mxu0 %v3800_v2  ;;  %857 = vmatpush1.msra.mxu1 %v3802_v3  ;;  %4972 = vst [vmem:[#allocation59_spill] sm:$0xff] %v3921_v53 }
  0x7f   :  { %771 = vmatprep.subr.mxu0 %v3806_v4  ;;  %858 = vmatprep.subr.mxu1 %v3808_v5 }
  0x80   :  { %772 = vmatpush1.msra.mxu0 %v3812_v6  ;;  %859 = vmatpush1.msra.mxu1 %v3814_v7 }
  0x81   :  { %773 = vmatprep.subr.mxu0 %v3818_v8  ;;  %860 = vmatprep.subr.mxu1 %v3820_v9 }
  0x82   :  { %774 = vmatpush1.msra.mxu0 %v3824_v10  ;;  %861 = vmatpush1.msra.mxu1 %v3826_v11 }
  0x83   :  { %775 = vmatprep.subr.mxu0 %v3830_v12  ;;  %862 = vmatprep.subr.mxu1 %v3832_v13 }
  0x84   :  { %776 = vmatpush1.msra.mxu0 %v3836_v14  ;;  %863 = vmatpush1.msra.mxu1 %v3838_v15 }
  0x85   :  { %777 = vmatprep.subr.mxu0 %v3842_v16  ;;  %864 = vmatprep.subr.mxu1 %v3844_v17 }
  0x86   :  { %778 = vmatpush1.msra.mxu0 %v3848_v18  ;;  %865 = vmatpush1.msra.mxu1 %v3850_v19 }
  0x87   :  { %779 = vmatprep.subr.mxu0 %v3854_v20  ;;  %866 = vmatprep.subr.mxu1 %v3856_v21 }
  0x88   :  { %780 = vmatpush1.msra.mxu0 %v3860_v22  ;;  %867 = vmatpush1.msra.mxu1 %v3862_v24 }
  0x89   :  { %900 = vmatprep.mubr.f32.mxu1 %v4778_v0  ;;  %781 = vmatprep.subr.mxu0 %v3866_v25 }
  0x8a   :  { %901 = vmatmul.mubr.f32.vlgmr.msra.gmra.mxu1 %v4778_v0  ;;  %782 = vmatpush1.msra.mxu0 %v3870_v26 }
  0x8b   :  { %783 = vmatprep.subr.mxu0 %v3874_v28  ;;  %829 = vmatprep.mubr.f32.mxu0 %v4778_v0  ;;  %v3925_v0 = vld [vmem:[#allocation11] sm:$0xff] }
  0x8c   :  { %784 = vmatpush1.msra.mxu0 %v3878_v30  ;;  %1056 = vmatprep.subr.mxu1 %v3682_v23  ;;  %4973 = vst [vmem:[#allocation60_spill] sm:$0xff] %v3925_v0 }
  0x8d   :  { %785 = vmatprep.subr.mxu0 %v3882_v32  ;;  %1057 = vmatpush1.msra.mxu1 %v3691_v27 }
  0x8e   :  { %786 = vmatpush1.msra.mxu0 %v3885_v34  ;;  %1058 = vmatprep.subr.mxu1 %v3698_v29 }
  0x8f   :  { %787 = vmatprep.subr.mxu0 %v3889_v35  ;;  %1059 = vmatpush1.msra.mxu1 %v3705_v31 }
  0x90   :  { %788 = vmatpush1.msra.mxu0 %v3893_v37  ;;  %1060 = vmatprep.subr.mxu1 %v3711_v33 }
  0x91   :  { %789 = vmatprep.subr.mxu0 %v3897_v39  ;;  %1061 = vmatpush1.msra.mxu1 %v3719_v36 }
  0x92   :  { %790 = vmatpush1.msra.mxu0 %v3901_v41  ;;  %1062 = vmatprep.subr.mxu1 %v3725_v38 }
  0x93   :  { %791 = vmatprep.subr.mxu0 %v3905_v43  ;;  %1063 = vmatpush1.msra.mxu1 %v3731_v40  ;;  %v4974_v40 = vmov 0.0  }
  0x94   :  { %792 = vmatpush1.msra.mxu0 %v3909_v45  ;;  %1064 = vmatprep.subr.mxu1 %v3737_v42 }
  0x95   :  { %793 = vmatprep.subr.mxu0 %v3913_v48  ;;  %1065 = vmatpush1.msra.mxu1 %v3741_v44 }
  0x96   :  { %794 = vmatpush1.msra.mxu0 %v3917_v51  ;;  %1066 = vmatprep.subr.mxu1 %v3745_v46 }
  0x97   :  { %795 = vmatprep.subr.mxu0 %v3921_v53  ;;  %1067 = vmatpush1.msra.mxu1 %v3748_v47 }
  0x98   :  { %796 = vmatpush1.msra.mxu0 %v3925_v0  ;;  %1068 = vmatprep.subr.mxu1 %v3751_v49 }
  0x99   :  { %830 = vmatmul.mubr.f32.vlgmr.msra.gmra.mxu0 %v4974_v40  ;;  %985 = vmatprep.subr.mxu0 %v3765_v55 }
  0x9a   :  { %986 = vmatpush1.msra.mxu0 %v3773_v57  ;;  %1069 = vmatpush1.msra.mxu1 %v3755_v50 }
  0x9b   :  { %987 = vmatprep.subr.mxu0 %v3779_v59  ;;  %1070 = vmatprep.subr.mxu1 %v3758_v52 }
  0x9c   :  { %988 = vmatpush1.msra.mxu0 %v3786_v61  ;;  %1071 = vmatpush1.msra.mxu1 %v3763_v54 }
  0x9d   :  { %989 = vmatprep.subr.mxu0 %v3792_v63  ;;  %1072 = vmatprep.subr.mxu1 %v3769_v56 }
  0x9e   :  { %990 = vmatpush1.msra.mxu0 %v3800_v2  ;;  %1073 = vmatpush1.msra.mxu1 %v3775_v58 }
  0x9f   :  { %991 = vmatprep.subr.mxu0 %v3806_v4  ;;  %1074 = vmatprep.subr.mxu1 %v3781_v60 }
  0xa0   :  { %992 = vmatpush1.msra.mxu0 %v3812_v6  ;;  %1075 = vmatpush1.msra.mxu1 %v3788_v62 }
  0xa1   :  { %993 = vmatprep.subr.mxu0 %v3818_v8  ;;  %1076 = vmatprep.subr.mxu1 %v3796_v1 }
  0xa2   :  { %994 = vmatpush1.msra.mxu0 %v3824_v10  ;;  %1077 = vmatpush1.msra.mxu1 %v3802_v3 }
  0xa3   :  { %995 = vmatprep.subr.mxu0 %v3830_v12  ;;  %1078 = vmatprep.subr.mxu1 %v3808_v5 }
  0xa4   :  { %996 = vmatpush1.msra.mxu0 %v3836_v14  ;;  %1079 = vmatpush1.msra.mxu1 %v3814_v7 }
  0xa5   :  { %997 = vmatprep.subr.mxu0 %v3842_v16  ;;  %1080 = vmatprep.subr.mxu1 %v3820_v9 }
  0xa6   :  { %998 = vmatpush1.msra.mxu0 %v3848_v18  ;;  %1081 = vmatpush1.msra.mxu1 %v3826_v11 }
  0xa7   :  { %999 = vmatprep.subr.mxu0 %v3854_v20  ;;  %1082 = vmatprep.subr.mxu1 %v3832_v13 }
  0xa8   :  { %1000 = vmatpush1.msra.mxu0 %v3860_v22  ;;  %1083 = vmatpush1.msra.mxu1 %v3838_v15 }
  0xa9   :  { %1001 = vmatprep.subr.mxu0 %v3866_v25  ;;  %1084 = vmatprep.subr.mxu1 %v3844_v17 }
  0xaa   :  { %1002 = vmatpush1.msra.mxu0 %v3870_v26  ;;  %1085 = vmatpush1.msra.mxu1 %v3850_v19 }
  0xab   :  { %1003 = vmatprep.subr.mxu0 %v3874_v28  ;;  %1086 = vmatprep.subr.mxu1 %v3856_v21 }
  0xac   :  { %1004 = vmatpush1.msra.mxu0 %v3878_v30  ;;  %1049 = vmatprep.mubr.f32.mxu0 %v4974_v40 }
  0xad   :  { %1005 = vmatprep.subr.mxu0 %v3882_v32  ;;  %1087 = vmatpush1.msra.mxu1 %v3862_v24  ;;  %v735_v32 = vld [vmem:[%s4771_s8] sm:$0xf] }
  0xae   :  { %1006 = vmatpush1.msra.mxu0 %v3885_v34  ;;  %1120 = vmatprep.mubr.f32.mxu1 %v4974_v40 }
  0xaf   :  { %1007 = vmatprep.subr.mxu0 %v3889_v35  ;;  %1281 = vmatprep.subr.mxu1 %v3682_v23 }
  0xb0   :  { %1008 = vmatpush1.msra.mxu0 %v3893_v37 }
  0xb1   :  { %1009 = vmatprep.subr.mxu0 %v3897_v39 }
  0xb2   :  { %1010 = vmatpush1.msra.mxu0 %v3901_v41 }
  0xb3   :  { %1011 = vmatprep.subr.mxu0 %v3905_v43 }
  0xb4   :  { %1012 = vmatpush1.msra.mxu0 %v3909_v45 }
  0xb5   :  { %1013 = vmatprep.subr.mxu0 %v3913_v48 }
  0xb6   :  { %1014 = vmatpush1.msra.mxu0 %v3917_v51 }
  0xb7   :  { %1015 = vmatprep.subr.mxu0 %v3921_v53 }
  0xb8   :  { %1016 = vmatpush1.msra.mxu0 %v3925_v0  ;;  %v737_v0 = vlaneseq }
  0xb9   :  { %1210 = vmatprep.subr.mxu0 %v3765_v55 }
  0xba   :  { %v738_v37 = vshrl.u32 %v737_v0, 7 }
  0xbc   :  { %v739_v5 = vsub.s32 0, %v738_v37  ;;  %v743_v1 = vsub.s32 1, %v738_v37 }
  0xbe   :  { %v740_v28 = vrot.slane %v735_v32, %v739_v5  ;;  %v744_v54 = vrot.slane %v735_v32, %v743_v1 }
 0x11a   :  { %v310_v23 = vpop.f32.mrf.mxu0  ;;  %v387_v11 = vpop.f32.mrf.mxu1 }
 0x11c   :  { %v312_v24 = vpop.f32.mrf.mxu0  ;;  %v389_v41 = vpop.f32.mrf.mxu1 }
 0x11e   :  { %v393_v9 = vpop.f32.mrf.mxu1 }
 0x11f   :  { %v316_v40 = vpop.f32.mrf.mxu0 }
 0x120   :  { %v395_v39 = vpop.f32.mrf.mxu1 }
 0x121   :  { %v318_v21 = vpop.f32.mrf.mxu0 }
 0x124   :  { %v471_v19 = vpop.f32.mrf.mxu0 }
 0x125   :  { %v716_v55 = vpop.f32.mrf.mxu1  ;;  %v472_v3 = vadd.f32 %v471_v19, %v310_v23 }
 0x126   :  { %v473_v17 = vpop.f32.mrf.mxu0 }
 0x127   :  { %v718_v34 = vpop.f32.mrf.mxu1  ;;  %v474_v62 = vadd.f32 %v473_v17, %v312_v24  ;;  %v747_v24 = vsub.s32 2, %v738_v37 }
 0x12a   :  { %v477_v15 = vpop.f32.mrf.mxu0 }
 0x12b   :  { %v478_v30 = vadd.f32 %v477_v15, %v316_v40 }
 0x12c   :  { %v479_v13 = vpop.f32.mrf.mxu0 }
 0x12d   :  { %v480_v26 = vadd.f32 %v479_v13, %v318_v21 }
 0x12f   :  { %v548_v43 = vpop.f32.mrf.mxu0 }
 0x131   :  { %v550_v45 = vpop.f32.mrf.mxu0 }
 0x133   :  { %v554_v48 = vpop.f32.mrf.mxu0 }
 0x135   :  { %v556_v51 = vpop.f32.mrf.mxu0 }
 0x136   :  { %v722_v56 = vpop.f32.mrf.mxu1 }
 0x138   :  { %v639_v53 = vpop.f32.mrf.mxu0  ;;  %v724_v19 = vpop.f32.mrf.mxu1 }
 0x139   :  { %v727_v60 = vadd.f32 %v639_v53, %v472_v3  ;;  %v748_v53 = vrot.slane %v735_v32, %v747_v24 }
 0x13a   :  { %v641_v7 = vpop.f32.mrf.mxu0 }
 0x13b   :  { %v728_v25 = vadd.f32 %v641_v7, %v474_v62  ;;  %v3993_v52 = vadd.f32 %v740_v28, %v727_v60  ;;  %v557_v60 = vadd.f32 %v556_v51, %v395_v39 }
 0x13d   :  { %v645_v35 = vpop.f32.mrf.mxu0  ;;  %4975 = vst [vmem:[#allocation61_spill] sm:$0xff] %v3993_v52  ;;  %v3995_v20 = vadd.f32 %v744_v54, %v728_v25  ;;  %v751_v25 = vsub.s32 3, %v738_v37 }
 0x13e   :  { %v731_v22 = vadd.f32 %v645_v35, %v478_v30  ;;  %v551_v30 = vadd.f32 %v550_v45, %v389_v41  ;;  %v734_v35 = vadd.f32 %v724_v19, %v557_v60 }
 0x13f   :  { %v647_v58 = vpop.f32.mrf.mxu0  ;;  %4976 = vst [vmem:[#allocation62_spill] sm:$0xff] %v3995_v20 }
 0x140   :  { %v732_v0 = vadd.f32 %v647_v58, %v480_v26  ;;  %v3997_v50 = vadd.f32 %v740_v28, %v731_v22  ;;  %v549_v22 = vadd.f32 %v548_v43, %v387_v11  ;;  %v555_v26 = vadd.f32 %v554_v48, %v393_v9 }
 0x141   :  { %v730_v51 = vadd.f32 %v718_v34, %v551_v30 }
 0x142   :  { %4977 = vst [vmem:[#allocation63_spill] sm:$0xff] %v3997_v50  ;;  %v4000_v3 = vadd.f32 %v744_v54, %v732_v0  ;;  %v752_v0 = vrot.slane %v735_v32, %v751_v25  ;;  %v733_v39 = vadd.f32 %v722_v56, %v555_v26 }
 0x144   :  { %4978 = vst [vmem:[#allocation64_spill] sm:$0xff] %v4000_v3  ;;  %v4010_v37 = vadd.f32 %v748_v53, %v733_v39  ;;  %v4012_v43 = vadd.f32 %v752_v0, %v730_v51 }
 0x146   :  { %4980 = vst [vmem:[#allocation66_spill] sm:$0xff] %v4010_v37 }
 0x14a   :  { %v902_v13 = vpop.f32.mrf.mxu1 }
 0x14c   :  { %v904_v54 = vpop.f32.mrf.mxu1 }
 0x14d   :  { %v926_v56 = vadd.f32 %v904_v54, %v4012_v43 }
 0x159   :  { %v831_v23 = vpop.f32.mrf.mxu0 }
 0x15a   :  { %v911_v18 = vrot.slane %v831_v23, 1  ;;  %v923_v40 = vadd.f32 %v831_v23, %v3993_v52  ;;  %v914_v23 = vrot.slane %v904_v54, 1 }
 0x15b   :  { %v833_v5 = vpop.f32.mrf.mxu0 }
 0x15c   :  { %v927_v62 = vadd.f32 %v911_v18, %v3997_v50  ;;  %v2879_v1 = vmul.f32 -1.442695, %v923_v40  ;;  %v912_v7 = vrot.slane %v833_v5, 1  ;;  %v924_v58 = vadd.f32 %v833_v5, %v3995_v20 }
 0x15d   :  { %v729_v18 = vadd.f32 %v716_v55, %v549_v22  ;;  %v4005_v40 = vadd.f32 %v752_v0, %v734_v35  ;;  %v913_v5 = vrot.slane %v902_v13, 1 }
 0x15e   :  { %3029 = vpow2.f32 %v2879_v1  ;;  %v2880_v15 = vmul.f32 -1.442695, %v927_v62  ;;  %v928_v17 = vadd.f32 %v912_v7, %v4000_v3  ;;  %v2881_v21 = vmul.f32 -1.442695, %v924_v58 }
 0x15f   :  { %v4007_v11 = vadd.f32 %v748_v53, %v729_v18  ;;  %v930_v9 = vadd.f32 %v914_v23, %v4005_v40  ;;  %v929_v55 = vadd.f32 %v913_v5, %v4010_v37  ;;  %v2883_v1 = vmul.f32 -1.442695, %v926_v56 }
 0x160   :  { %3031 = vpow2.f32 %v2880_v15  ;;  %v2882_v28 = vmul.f32 -1.442695, %v928_v17 }
 0x161   :  { %3033 = vpow2.f32 %v2881_v21  ;;  %4979 = vst [vmem:[#allocation65_spill] sm:$0xff] %v4007_v11  ;;  %v925_v41 = vadd.f32 %v902_v13, %v4007_v11  ;;  %v2884_v45 = vmul.f32 -1.442695, %v930_v9 }
 0x162   :  { %3035 = vpow2.f32 %v2882_v28 }
 0x163   :  { %3037 = vtanh.f32 %v925_v41 }
 0x164   :  { %3039 = vtanh.f32 %v929_v55 }
 0x165   :  { %3041 = vpow2.f32 %v2884_v45  ;;  %v4981_v45 = vld [vmem:[#allocation21_spill] sm:$0xff] }
 0x16b   :  { %v3030_v32 = vpop.eup %3029 }
 0x16c   :  { %v937_v34 = vadd.f32 1.0, %v3030_v32 }
 0x16d   :  { %v3032_v48 = vpop.eup %3031 }
 0x16e   :  { %v938_v19 = vadd.f32 1.0, %v3032_v48  ;;  %v3034_v62 = vpop.eup %3033  ;;  %3043 = vrcp.f32 %v937_v34  ;;  %v4982_v34 = vld [vmem:[#allocation39_spill] sm:$0xff]  ;;  %v4983_v48 = vld [vmem:[#allocation22_spill] sm:$0xff] }
 0x16f   :  { %v949_v7 = vadd.f32 1.0, %v3034_v62  ;;  %v3036_v58 = vpop.eup %3035  ;;  %v4985_v62 = vld [vmem:[#allocation23_spill] sm:$0xff] }
 0x170   :  { %3045 = vrcp.f32 %v938_v19  ;;  %v950_v60 = vadd.f32 1.0, %v3036_v58  ;;  %v3038_v13 = vpop.eup %3037  ;;  %v4984_v19 = vld [vmem:[#allocation41_spill] sm:$0xff] }
 0x171   :  { %3047 = vrcp.f32 %v949_v7  ;;  %v3040_v15 = vpop.eup %3039  ;;  %v4987_v7 = vld [vmem:[#allocation24_spill] sm:$0xff]  ;;  %v4988_v58 = vld [vmem:[#allocation45_spill] sm:$0xff] }
 0x172   :  { %3049 = vpow2.f32 %v2883_v1  ;;  %v3042_v17 = vpop.eup %3041  ;;  %v4986_v1 = vld [vmem:[#allocation43_spill] sm:$0xff] }
 0x173   :  { %3051 = vrcp.f32 %v950_v60  ;;  %v964_v26 = vadd.f32 1.0, %v3042_v17  ;;  %v4989_v60 = vld [vmem:[#allocation26_spill] sm:$0xff]  ;;  %v4992_v17 = vld [vmem:[#allocation47_spill] sm:$0xff] }
 0x175   :  { %3053 = vrcp.f32 %v964_v26  ;;  %v4997_v26 = vld [vmem:[#allocation30_spill] sm:$0xff] }
 0x17b   :  { %v3044_v21 = vpop.eup %3043 }
 0x17c   :  { %v971_v28 = vmul.f32 %v3044_v21, %v3038_v13  ;;  %v4990_v13 = vld [vmem:[#allocation46_spill] sm:$0xff]  ;;  %v4993_v21 = vld [vmem:[#allocation28_spill] sm:$0xff] }
 0x17d   :  { %v3046_v22 = vpop.eup %3045 }
 0x17e   :  { %v3048_v24 = vpop.eup %3047  ;;  %v972_v18 = vmul.f32 %v3046_v22, %v3040_v15  ;;  %v4991_v15 = vld [vmem:[#allocation27_spill] sm:$0xff]  ;;  %v4994_v22 = vld [vmem:[#allocation48_spill] sm:$0xff] }
 0x17f   :  { %v3050_v25 = vpop.eup %3049  ;;  %v969_v54 = vmul.f32 0.0, %v3048_v24  ;;  %v4995_v24 = vld [vmem:[#allocation29_spill] sm:$0xff] }
 0x180   :  { %v3052_v30 = vpop.eup %3051  ;;  %v963_v0 = vadd.f32 1.0, %v3050_v25  ;;  %v4996_v25 = vld [vmem:[#allocation49_spill] sm:$0xff] }
 0x181   :  { %v970_v35 = vmul.f32 0.0, %v3052_v30  ;;  %v4017_v53 = vadd.f32 %v971_v28, %v969_v54  ;;  %v4998_v54 = vld [vmem:[#allocation50_spill] sm:$0xff]  ;;  %v4999_v28 = vld [vmem:[#allocation31_spill] sm:$0xff] }
 0x182   :  { %v3054_v39 = vpop.eup %3053  ;;  %v5000_v30 = vld [vmem:[#allocation51_spill] sm:$0xff] }
 0x183   :  { %v4019_v23 = vadd.f32 %v972_v18, %v970_v35  ;;  %3055 = vtanh.f32 %v4017_v53  ;;  %v5001_v35 = vld [vmem:[#allocation32_spill] sm:$0xff] }
 0x184   :  { %v5002_v18 = vld [vmem:[#allocation52_spill] sm:$0xff] }
 0x185   :  { %3057 = vtanh.f32 %v4019_v23 }
 0x186   :  { %3059 = vrcp.f32 %v963_v0  ;;  %v5003_v0 = vld [vmem:[#allocation33_spill] sm:$0xff] }
 0x190   :  { %v3056_v51 = vpop.eup %3055 }
 0x192   :  { %v3058_v5 = vpop.eup %3057 }
 0x193   :  { %v978_v9 = vmul.f32 %v3058_v5, %v3054_v39  ;;  %v3060_v41 = vpop.eup %3059  ;;  %v5004_v39 = vld [vmem:[#allocation53_spill] sm:$0xff]  ;;  %v5006_v5 = vld [vmem:[#allocation54_spill] sm:$0xff] }
 0x194   :  { %v977_v55 = vmul.f32 %v3060_v41, %v3056_v51  ;;  %v5005_v51 = vld [vmem:[#allocation34_spill] sm:$0xff]  ;;  %v5008_v41 = vld [vmem:[#allocation55_spill] sm:$0xff] }
 0x195   :  { %v981_v32 = vrot.slane %v978_v9, 7  ;;  %v5007_v9 = vld [vmem:[#allocation35_spill] sm:$0xff] }
 0x197   :  { %v983_v56 = vsel %vm982_vm2, %v981_v32, %v977_v55  ;;  %v5009_v55 = vld [vmem:[#allocation36_spill] sm:$0xff] }
 0x198   :  { %1050 = vmatmul.mubr.f32.vlgmr.msra.gmra.mxu0 %v983_v56  ;;  %1121 = vmatmul.mubr.f32.vlgmr.msra.gmra.mxu1 %v983_v56  ;;  %v5010_v32 = vld [vmem:[#allocation56_spill] sm:$0xff]  ;;  %v5011_v56 = vld [vmem:[#allocation37_spill] sm:$0xff] }
 0x199   :  { %1211 = vmatpush1.msra.mxu0 %v3773_v57  ;;  %1282 = vmatpush1.msra.mxu1 %v3691_v27 }
 0x19a   :  { %1212 = vmatprep.subr.mxu0 %v3779_v59  ;;  %1283 = vmatprep.subr.mxu1 %v3698_v29 }
 0x19b   :  { %1213 = vmatpush1.msra.mxu0 %v3786_v61  ;;  %1284 = vmatpush1.msra.mxu1 %v3705_v31 }
 0x19c   :  { %1214 = vmatprep.subr.mxu0 %v3792_v63  ;;  %1285 = vmatprep.subr.mxu1 %v3711_v33 }
 0x19d   :  { %1215 = vmatpush1.msra.mxu0 %v3800_v2  ;;  %1286 = vmatpush1.msra.mxu1 %v3719_v36 }
 0x19e   :  { %1216 = vmatprep.subr.mxu0 %v3806_v4  ;;  %1287 = vmatprep.subr.mxu1 %v3725_v38 }
 0x19f   :  { %1217 = vmatpush1.msra.mxu0 %v3812_v6  ;;  %1288 = vmatpush1.msra.mxu1 %v4981_v45 }
 0x1a0   :  { %1218 = vmatprep.subr.mxu0 %v3818_v8  ;;  %1289 = vmatprep.subr.mxu1 %v3737_v42 }
 0x1a1   :  { %1219 = vmatpush1.msra.mxu0 %v3824_v10  ;;  %1290 = vmatpush1.msra.mxu1 %v3741_v44 }
 0x1a2   :  { %1220 = vmatprep.subr.mxu0 %v3830_v12  ;;  %1291 = vmatprep.subr.mxu1 %v3745_v46 }
 0x1a3   :  { %1221 = vmatpush1.msra.mxu0 %v3836_v14  ;;  %1292 = vmatpush1.msra.mxu1 %v3748_v47 }
 0x1a4   :  { %1222 = vmatprep.subr.mxu0 %v3842_v16  ;;  %1293 = vmatprep.subr.mxu1 %v3751_v49 }
 0x1a5   :  { %1223 = vmatpush1.msra.mxu0 %v4982_v34  ;;  %1294 = vmatpush1.msra.mxu1 %v4983_v48 }
 0x1a6   :  { %1224 = vmatprep.subr.mxu0 %v4984_v19  ;;  %1295 = vmatprep.subr.mxu1 %v4985_v62 }
 0x1a7   :  { %1225 = vmatpush1.msra.mxu0 %v4986_v1  ;;  %1296 = vmatpush1.msra.mxu1 %v4987_v7 }
 0x1a8   :  { %1226 = vmatprep.subr.mxu0 %v4988_v58  ;;  %1297 = vmatprep.subr.mxu1 %v4989_v60 }
 0x1a9   :  { %1227 = vmatpush1.msra.mxu0 %v4990_v13  ;;  %1298 = vmatpush1.msra.mxu1 %v4991_v15 }
 0x1aa   :  { %1228 = vmatprep.subr.mxu0 %v4992_v17  ;;  %1299 = vmatprep.subr.mxu1 %v4993_v21 }
 0x1ab   :  { %1229 = vmatpush1.msra.mxu0 %v4994_v22  ;;  %1300 = vmatpush1.msra.mxu1 %v4995_v24 }
 0x1ac   :  { %1230 = vmatprep.subr.mxu0 %v4996_v25  ;;  %1301 = vmatprep.subr.mxu1 %v4997_v26 }
 0x1ad   :  { %1231 = vmatpush1.msra.mxu0 %v4998_v54  ;;  %1302 = vmatpush1.msra.mxu1 %v4999_v28 }
 0x1ae   :  { %1232 = vmatprep.subr.mxu0 %v5000_v30  ;;  %1303 = vmatprep.subr.mxu1 %v5001_v35  ;;  %v5012_v35 = vld [vmem:[#allocation57_spill] sm:$0xff] }
 0x1af   :  { %1233 = vmatpush1.msra.mxu0 %v5002_v18  ;;  %1304 = vmatpush1.msra.mxu1 %v5003_v0  ;;  %v5013_v18 = vld [vmem:[#allocation38_spill] sm:$0xff] }
 0x1b0   :  { %1234 = vmatprep.subr.mxu0 %v5004_v39  ;;  %1305 = vmatprep.subr.mxu1 %v5005_v51  ;;  %v5014_v0 = vld [vmem:[#allocation58_spill] sm:$0xff]  ;;  %v5015_v39 = vld [vmem:[#allocation40_spill] sm:$0xff]  ;;  %v5016_v51 = vld [vmem:[#allocation59_spill] sm:$0xff] }
 0x1b1   :  { %1235 = vmatpush1.msra.mxu0 %v5006_v5  ;;  %1306 = vmatpush1.msra.mxu1 %v5007_v9  ;;  %v5017_v5 = vld [vmem:[#allocation42_spill] sm:$0xff]  ;;  %v5018_v9 = vld [vmem:[#allocation60_spill] sm:$0xff] }
 0x1b2   :  { %1236 = vmatprep.subr.mxu0 %v5008_v41  ;;  %1307 = vmatprep.subr.mxu1 %v5009_v55  ;;  %v5019_v41 = vmov 0.0   ;;  %v5020_v55 = vld [vmem:[#allocation44_spill] sm:$0xff] }
 0x1b3   :  { %1237 = vmatpush1.msra.mxu0 %v5010_v32  ;;  %1308 = vmatpush1.msra.mxu1 %v5011_v56  ;;  %v5021_v56 = vld [vmem:[#allocation25_spill] sm:$0xff] }
 0x1b4   :  { %1238 = vmatprep.subr.mxu0 %v5012_v35  ;;  %1309 = vmatprep.subr.mxu1 %v5013_v18  ;;  %v5022_v35 = vld [vmem:[#allocation20_spill] sm:$0xff] }
 0x1b5   :  { %1239 = vmatpush1.msra.mxu0 %v5014_v0  ;;  %1310 = vmatpush1.msra.mxu1 %v5015_v39 }
 0x1b6   :  { %1240 = vmatprep.subr.mxu0 %v5016_v51  ;;  %1311 = vmatprep.subr.mxu1 %v5017_v5 }
 0x1b7   :  { %1241 = vmatpush1.msra.mxu0 %v5018_v9  ;;  %1274 = vmatprep.mubr.f32.mxu0 %v5019_v41 }
 0x1b8   :  { %1312 = vmatpush1.msra.mxu1 %v5020_v55  ;;  %1345 = vmatprep.mubr.f32.mxu1 %v5019_v41 }
 0x1b9   :  { %1440 = vmatprep.subr.mxu0 %v5021_v56  ;;  %1511 = vmatprep.subr.mxu1 %v5022_v35 }
 0x258   :  { %v1051_v18 = vpop.f32.mrf.mxu0  ;;  %v1122_v32 = vpop.f32.mrf.mxu1 }
 0x259   :  { %v1131_v0 = vrot.slane %v1051_v18, 7  ;;  %v1147_v39 = vadd.f32 %v1051_v18, %v3997_v50  ;;  %v1133_v18 = vrot.slane %v1122_v32, 7 }
 0x25a   :  { %v1053_v51 = vpop.f32.mrf.mxu0  ;;  %v1124_v56 = vpop.f32.mrf.mxu1 }
 0x25b   :  { %v1143_v5 = vadd.f32 %v1131_v0, %v3993_v52  ;;  %v2886_v30 = vmul.f32 -1.442695, %v1147_v39  ;;  %v1132_v9 = vrot.slane %v1053_v51, 7  ;;  %v1148_v28 = vadd.f32 %v1053_v51, %v4000_v3 }
 0x25c   :  { %v1134_v26 = vrot.slane %v1124_v56, 7  ;;  %v1149_v0 = vadd.f32 %v1122_v32, %v4010_v37  ;;  %v1145_v39 = vadd.f32 %v1133_v18, %v4007_v11  ;;  %v1150_v51 = vadd.f32 %v1124_v56, %v4005_v40 }
 0x25d   :  { %v2885_v54 = vmul.f32 -1.442695, %v1143_v5  ;;  %3061 = vpow2.f32 %v2886_v30  ;;  %v1144_v55 = vadd.f32 %v1132_v9, %v3995_v20  ;;  %v2888_v41 = vmul.f32 -1.442695, %v1148_v28 }
 0x25e   :  { %v1146_v50 = vadd.f32 %v1134_v26, %v4012_v43 }
 0x25f   :  { %3063 = vpow2.f32 %v2885_v54  ;;  %v2887_v35 = vmul.f32 -1.442695, %v1144_v55 }
 0x260   :  { %3065 = vpow2.f32 %v2888_v41  ;;  %v2889_v5 = vmul.f32 -1.442695, %v1146_v50  ;;  %v2890_v41 = vmul.f32 -1.442695, %v1150_v51 }
 0x261   :  { %3067 = vpow2.f32 %v2887_v35 }
 0x262   :  { %3069 = vtanh.f32 %v1149_v0  ;;  %v1192_v0 = vrot.slane %v4019_v23, 7 }
 0x263   :  { %3071 = vtanh.f32 %v1145_v39 }
 0x264   :  { %3073 = vpow2.f32 %v2889_v5  ;;  %v1191_v5 = vrot.slane %v4017_v53, 7 }
 0x26a   :  { %v3062_v30 = vpop.eup %3061 }
 0x26b   :  { %v1158_v3 = vadd.f32 1.0, %v3062_v30 }
 0x26c   :  { %v3064_v28 = vpop.eup %3063 }
 0x26d   :  { %v3066_v54 = vpop.eup %3065  ;;  %v1157_v9 = vadd.f32 1.0, %v3064_v28  ;;  %3075 = vrcp.f32 %v1158_v3 }
 0x26e   :  { %v1170_v55 = vadd.f32 1.0, %v3066_v54  ;;  %v3068_v35 = vpop.eup %3067 }
 0x26f   :  { %3077 = vrcp.f32 %v1157_v9  ;;  %v1169_v26 = vadd.f32 1.0, %v3068_v35  ;;  %v3070_v32 = vpop.eup %3069 }
 0x270   :  { %3079 = vrcp.f32 %v1170_v55  ;;  %v3072_v56 = vpop.eup %3071 }
 0x271   :  { %3081 = vpow2.f32 %v2890_v41  ;;  %v3074_v50 = vpop.eup %3073 }
 0x272   :  { %3083 = vrcp.f32 %v1169_v26  ;;  %v1183_v28 = vadd.f32 1.0, %v3074_v50 }
 0x274   :  { %3085 = vrcp.f32 %v1183_v28 }
 0x27a   :  { %v3076_v18 = vpop.eup %3075 }
 0x27b   :  { %v1198_v51 = vmul.f32 %v3076_v18, %v3070_v32 }
 0x27c   :  { %v3078_v30 = vpop.eup %3077 }
 0x27d   :  { %v3080_v39 = vpop.eup %3079  ;;  %v1197_v9 = vmul.f32 %v3078_v30, %v3072_v56 }
 0x27e   :  { %v3082_v37 = vpop.eup %3081  ;;  %v1196_v3 = vmul.f32 %v3080_v39, %v1192_v0 }
 0x27f   :  { %v3084_v54 = vpop.eup %3083  ;;  %v1184_v41 = vadd.f32 1.0, %v3082_v37  ;;  %v4171_v37 = vld [vmem:[#allocation11 + $0x1e8] sm:$0xff] }
 0x280   :  { %v1195_v35 = vmul.f32 %v3084_v54, %v1191_v5  ;;  %v4100_v55 = vadd.f32 %v1198_v51, %v1196_v3  ;;  %5047 = vst [vmem:[#allocation21_spill] sm:$0xff] %v4171_v37 }
 0x281   :  { %v3086_v23 = vpop.eup %3085 }
 0x282   :  { %v4102_v26 = vadd.f32 %v1197_v9, %v1195_v35  ;;  %3087 = vtanh.f32 %v4100_v55 }
 0x284   :  { %3089 = vtanh.f32 %v4102_v26 }
 0x285   :  { %3091 = vrcp.f32 %v1184_v41  ;;  %v5051_v41 = vld [vmem:[#allocation65_spill] sm:$0xff] }
 0x28f   :  { %v3088_v11 = vpop.eup %3087 }
 0x291   :  { %v3090_v53 = vpop.eup %3089 }
 0x292   :  { %v1203_v32 = vmul.f32 %v3090_v53, %v3086_v23  ;;  %v3092_v18 = vpop.eup %3091  ;;  %v5052_v53 = vld [vmem:[#allocation66_spill] sm:$0xff] }
 0x293   :  { %v1204_v50 = vmul.f32 %v3092_v18, %v3088_v11  ;;  %v5046_v11 = vld [vmem:[#allocation44_spill] sm:$0xff] }
 0x294   :  { %v1207_v0 = vrot.slane %v1203_v32, 1 }
 0x296   :  { %v1208_v56 = vsel %vm982_vm2, %v1204_v50, %v1207_v0 }
 0x297   :  { %1275 = vmatmul.mubr.f32.vlgmr.msra.gmra.mxu0 %v1208_v56  ;;  %1346 = vmatmul.mubr.f32.vlgmr.msra.gmra.mxu1 %v1208_v56 }
 0x298   :  { %1441 = vmatpush1.msra.mxu0 %v3773_v57  ;;  %1512 = vmatpush1.msra.mxu1 %v3691_v27  ;;  %v5023_v27 = vld [vmem:[#allocation30_spill] sm:$0xff]  ;;  %v5034_v57 = vld [vmem:[#allocation55_spill] sm:$0xff] }
 0x299   :  { %1442 = vmatprep.subr.mxu0 %v3779_v59  ;;  %1513 = vmatprep.subr.mxu1 %v3698_v29  ;;  %v5024_v29 = vld [vmem:[#allocation50_spill] sm:$0xff]  ;;  %v5035_v59 = vld [vmem:[#allocation36_spill] sm:$0xff] }
 0x29a   :  { %1443 = vmatpush1.msra.mxu0 %v3786_v61  ;;  %1514 = vmatpush1.msra.mxu1 %v3705_v31  ;;  %v5025_v31 = vld [vmem:[#allocation31_spill] sm:$0xff]  ;;  %v5036_v61 = vld [vmem:[#allocation56_spill] sm:$0xff] }
 0x29b   :  { %1444 = vmatprep.subr.mxu0 %v3792_v63  ;;  %1515 = vmatprep.subr.mxu1 %v3711_v33  ;;  %v5026_v33 = vld [vmem:[#allocation51_spill] sm:$0xff]  ;;  %v5037_v63 = vld [vmem:[#allocation37_spill] sm:$0xff] }
 0x29c   :  { %1445 = vmatpush1.msra.mxu0 %v3800_v2  ;;  %1516 = vmatpush1.msra.mxu1 %v3719_v36  ;;  %v5027_v36 = vld [vmem:[#allocation32_spill] sm:$0xff]  ;;  %v5038_v2 = vld [vmem:[#allocation57_spill] sm:$0xff] }
 0x29d   :  { %1446 = vmatprep.subr.mxu0 %v3806_v4  ;;  %1517 = vmatprep.subr.mxu1 %v3725_v38  ;;  %v5028_v38 = vld [vmem:[#allocation52_spill] sm:$0xff]  ;;  %v5039_v4 = vld [vmem:[#allocation38_spill] sm:$0xff] }
 0x29e   :  { %1447 = vmatpush1.msra.mxu0 %v3812_v6  ;;  %1518 = vmatpush1.msra.mxu1 %v4981_v45  ;;  %v5040_v6 = vld [vmem:[#allocation58_spill] sm:$0xff] }
 0x29f   :  { %1448 = vmatprep.subr.mxu0 %v3818_v8  ;;  %1519 = vmatprep.subr.mxu1 %v3737_v42  ;;  %v5029_v42 = vld [vmem:[#allocation33_spill] sm:$0xff]  ;;  %v5041_v8 = vld [vmem:[#allocation40_spill] sm:$0xff]  ;;  %v4174_v45 = vld [vmem:[#allocation11 + $0x1f8] sm:$0xff] }
 0x2a0   :  { %1449 = vmatpush1.msra.mxu0 %v3824_v10  ;;  %1520 = vmatpush1.msra.mxu1 %v3741_v44  ;;  %v5030_v44 = vld [vmem:[#allocation53_spill] sm:$0xff]  ;;  %v5042_v10 = vld [vmem:[#allocation59_spill] sm:$0xff]  ;;  %5048 = vst [vmem:[#allocation39_spill] sm:$0xff] %v4174_v45 }
 0x2a1   :  { %1450 = vmatprep.subr.mxu0 %v3830_v12  ;;  %1521 = vmatprep.subr.mxu1 %v3745_v46  ;;  %v5031_v46 = vld [vmem:[#allocation34_spill] sm:$0xff] }
 0x2a2   :  { %1451 = vmatpush1.msra.mxu0 %v3836_v14  ;;  %1522 = vmatpush1.msra.mxu1 %v3748_v47  ;;  %v5032_v47 = vld [vmem:[#allocation54_spill] sm:$0xff]  ;;  %v5044_v14 = vld [vmem:[#allocation60_spill] sm:$0xff] }
 0x2a3   :  { %1452 = vmatprep.subr.mxu0 %v3842_v16  ;;  %1523 = vmatprep.subr.mxu1 %v3751_v49  ;;  %v5033_v49 = vld [vmem:[#allocation35_spill] sm:$0xff]  ;;  %v5043_v12 = vld [vmem:[#allocation42_spill] sm:$0xff]  ;;  %v5045_v16 = vmov 0.0  }
 0x2a4   :  { %1453 = vmatpush1.msra.mxu0 %v4982_v34  ;;  %1524 = vmatpush1.msra.mxu1 %v4983_v48 }
 0x2a5   :  { %1454 = vmatprep.subr.mxu0 %v4984_v19  ;;  %1525 = vmatprep.subr.mxu1 %v4985_v62 }
 0x2a6   :  { %1455 = vmatpush1.msra.mxu0 %v4986_v1  ;;  %1526 = vmatpush1.msra.mxu1 %v4987_v7  ;;  %v5049_v7 = vld [vmem:[#allocation63_spill] sm:$0xff] }
 0x2a7   :  { %1456 = vmatprep.subr.mxu0 %v4988_v58  ;;  %1527 = vmatprep.subr.mxu1 %v4989_v60 }
 0x2a8   :  { %1457 = vmatpush1.msra.mxu0 %v4990_v13  ;;  %1528 = vmatpush1.msra.mxu1 %v4991_v15 }
 0x2a9   :  { %1458 = vmatprep.subr.mxu0 %v4992_v17  ;;  %1529 = vmatprep.subr.mxu1 %v4993_v21 }
 0x2aa   :  { %1459 = vmatpush1.msra.mxu0 %v4994_v22  ;;  %1530 = vmatpush1.msra.mxu1 %v4995_v24  ;;  %v5050_v24 = vld [vmem:[#allocation64_spill] sm:$0xff] }
 0x2ab   :  { %1460 = vmatprep.subr.mxu0 %v4996_v25  ;;  %1531 = vmatprep.subr.mxu1 %v5023_v27 }
 0x2ac   :  { %1461 = vmatpush1.msra.mxu0 %v5024_v29  ;;  %1532 = vmatpush1.msra.mxu1 %v5025_v31 }
 0x2ad   :  { %1462 = vmatprep.subr.mxu0 %v5026_v33  ;;  %1533 = vmatprep.subr.mxu1 %v5027_v36 }
 0x2ae   :  { %1463 = vmatpush1.msra.mxu0 %v5028_v38  ;;  %1534 = vmatpush1.msra.mxu1 %v5029_v42 }
 0x2af   :  { %1464 = vmatprep.subr.mxu0 %v5030_v44  ;;  %1535 = vmatprep.subr.mxu1 %v5031_v46 }
 0x2b0   :  { %1465 = vmatpush1.msra.mxu0 %v5032_v47  ;;  %1536 = vmatpush1.msra.mxu1 %v5033_v49 }
 0x2b1   :  { %1466 = vmatprep.subr.mxu0 %v5034_v57  ;;  %1537 = vmatprep.subr.mxu1 %v5035_v59  ;;  %v1420_v59 = vrot.slane %v4102_v26, 7 }
 0x2b2   :  { %1467 = vmatpush1.msra.mxu0 %v5036_v61  ;;  %1538 = vmatpush1.msra.mxu1 %v5037_v63 }
 0x2b3   :  { %1468 = vmatprep.subr.mxu0 %v5038_v2  ;;  %1539 = vmatprep.subr.mxu1 %v5039_v4  ;;  %v1421_v2 = vrot.slane %v4100_v55, 7 }
 0x2b4   :  { %1469 = vmatpush1.msra.mxu0 %v5040_v6  ;;  %1540 = vmatpush1.msra.mxu1 %v5041_v8 }
 0x2b5   :  { %1470 = vmatprep.subr.mxu0 %v5042_v10  ;;  %1541 = vmatprep.subr.mxu1 %v5043_v12 }
 0x2b6   :  { %1471 = vmatpush1.msra.mxu0 %v5044_v14  ;;  %1504 = vmatprep.mubr.f32.mxu0 %v5045_v16 }
 0x2b7   :  { %1542 = vmatpush1.msra.mxu1 %v5046_v11  ;;  %1575 = vmatprep.mubr.f32.mxu1 %v5045_v16 }
 0x2b8   :  { %1670 = vmatprep.subr.mxu0 %v4171_v37  ;;  %1741 = vmatprep.subr.mxu1 %v4174_v45 }
 0x357   :  { %v1276_v34 = vpop.f32.mrf.mxu0  ;;  %v1347_v60 = vpop.f32.mrf.mxu1 }
 0x358   :  { %v1356_v48 = vrot.slane %v1276_v34, 6  ;;  %v1360_v19 = vrot.slane %v1276_v34, 7  ;;  %v1358_v28 = vrot.slane %v1347_v60, 6  ;;  %v1362_v54 = vrot.slane %v1347_v60, 7 }
 0x359   :  { %v1278_v62 = vpop.f32.mrf.mxu0  ;;  %v1349_v30 = vpop.f32.mrf.mxu1 }
 0x35a   :  { %v1372_v1 = vadd.f32 %v1356_v48, %v3993_v52  ;;  %v1376_v58 = vadd.f32 %v1360_v19, %v5049_v7  ;;  %v1357_v13 = vrot.slane %v1278_v62, 6  ;;  %v1361_v15 = vrot.slane %v1278_v62, 7 }
 0x35b   :  { %v1359_v51 = vrot.slane %v1349_v30, 6  ;;  %v1363_v3 = vrot.slane %v1349_v30, 7  ;;  %v1374_v23 = vadd.f32 %v1358_v28, %v5051_v41  ;;  %v1378_v32 = vadd.f32 %v1362_v54, %v5052_v53  ;;  %v4209_v30 = vld [vmem:[#allocation11 + $0x1d0] sm:$0xff]  ;;  %v4224_v28 = vld [vmem:[#allocation11 + $0x188] sm:$0xff]  ;;  %v4227_v54 = vld [vmem:[#allocation11 + $0x198] sm:$0xff] }
 0x35c   :  { %v2891_v17 = vmul.f32 -1.442695, %v1372_v1  ;;  %v2892_v21 = vmul.f32 -1.442695, %v1376_v58  ;;  %v1373_v22 = vadd.f32 %v1357_v13, %v3995_v20  ;;  %v1377_v25 = vadd.f32 %v1361_v15, %v5050_v24  ;;  %v4194_v15 = vld [vmem:[#allocation11 + $0x1e0] sm:$0xff] }
 0x35d   :  { %v1375_v9 = vadd.f32 %v1359_v51, %v4012_v43  ;;  %v1379_v35 = vadd.f32 %v1363_v3, %v4005_v40  ;;  %v4218_v51 = vld [vmem:[#allocation11 + $0x1a0] sm:$0xff]  ;;  %v4221_v3 = vld [vmem:[#allocation11 + $0x1b0] sm:$0xff] }
 0x35e   :  { %3093 = vpow2.f32 %v2891_v17  ;;  %v2893_v39 = vmul.f32 -1.442695, %v1373_v22  ;;  %v2894_v5 = vmul.f32 -1.442695, %v1377_v25  ;;  %v4197_v17 = vld [vmem:[#allocation11 + $0x1f0] sm:$0xff]  ;;  %v4203_v22 = vld [vmem:[#allocation11 + $0x1d8] sm:$0xff] }
 0x35f   :  { %3095 = vpow2.f32 %v2892_v21  ;;  %v2895_v18 = vmul.f32 -1.442695, %v1375_v9  ;;  %v2896_v50 = vmul.f32 -1.442695, %v1379_v35  ;;  %v4200_v21 = vld [vmem:[#allocation11 + $0x1c8] sm:$0xff]  ;;  %v4206_v25 = vld [vmem:[#allocation11 + $0x1c0] sm:$0xff] }
 0x360   :  { %3097 = vpow2.f32 %v2893_v39  ;;  %v4212_v39 = vld [vmem:[#allocation11 + $0x1a8] sm:$0xff]  ;;  %v4230_v9 = vld [vmem:[#allocation11 + $0x180] sm:$0xff]  ;;  %v4233_v35 = vld [vmem:[#allocation11 + $0x190] sm:$0xff] }
 0x361   :  { %3099 = vpow2.f32 %v2894_v5  ;;  %v4215_v5 = vld [vmem:[#allocation11 + $0x1b8] sm:$0xff] }
 0x362   :  { %3101 = vtanh.f32 %v1374_v23  ;;  %v4236_v23 = vld [vmem:[#allocation11 + $0x168] sm:$0xff] }
 0x363   :  { %3103 = vtanh.f32 %v1378_v32  ;;  %v4239_v32 = vld [vmem:[#allocation11 + $0x178] sm:$0xff] }
 0x364   :  { %3105 = vpow2.f32 %v2895_v18  ;;  %v4242_v18 = vld [vmem:[#allocation11 + $0x160] sm:$0xff] }
 0x365   :  { %3107 = vpow2.f32 %v2896_v50  ;;  %v4245_v50 = vld [vmem:[#allocation11 + $0x170] sm:$0xff] }
 0x36b   :  { %v3094_v0 = vpop.eup %3093 }
 0x36c   :  { %v3096_v56 = vpop.eup %3095  ;;  %v1386_v27 = vadd.f32 1.0, %v3094_v0  ;;  %v4248_v0 = vld [vmem:[#allocation11 + $0x148] sm:$0xff] }
 0x36d   :  { %v1387_v29 = vadd.f32 1.0, %v3096_v56  ;;  %v3098_v31 = vpop.eup %3097  ;;  %v4251_v56 = vld [vmem:[#allocation11 + $0x158] sm:$0xff] }
 0x36e   :  { %v3100_v33 = vpop.eup %3099  ;;  %3109 = vrcp.f32 %v1386_v27  ;;  %v1398_v36 = vadd.f32 1.0, %v3098_v31  ;;  %v4254_v27 = vld [vmem:[#allocation11 + $0x140] sm:$0xff]  ;;  %v4260_v31 = vld [vmem:[#allocation11 + $0x128] sm:$0xff] }
 0x36f   :  { %3111 = vrcp.f32 %v1387_v29  ;;  %v1399_v38 = vadd.f32 1.0, %v3100_v33  ;;  %v3102_v42 = vpop.eup %3101  ;;  %v4257_v29 = vld [vmem:[#allocation11 + $0x150] sm:$0xff]  ;;  %v4263_v33 = vld [vmem:[#allocation11 + $0x138] sm:$0xff] }
 0x370   :  { %3113 = vrcp.f32 %v1398_v36  ;;  %v3104_v44 = vpop.eup %3103  ;;  %v4266_v36 = vld [vmem:[#allocation11 + $0x120] sm:$0xff] }
 0x371   :  { %3115 = vrcp.f32 %v1399_v38  ;;  %v3106_v46 = vpop.eup %3105  ;;  %v4269_v38 = vld [vmem:[#allocation11 + $0x130] sm:$0xff] }
 0x372   :  { %v3108_v47 = vpop.eup %3107  ;;  %v1412_v61 = vadd.f32 1.0, %v3106_v46  ;;  %v4278_v46 = vld [vmem:[#allocation11 + $0x100] sm:$0xff] }
 0x373   :  { %v1413_v4 = vadd.f32 1.0, %v3108_v47  ;;  %v4281_v47 = vld [vmem:[#allocation11 + $0x110] sm:$0xff] }
 0x374   :  { %3117 = vrcp.f32 %v1412_v61  ;;  %v4293_v61 = vld [vmem:[#allocation11 + $0xf0] sm:$0xff] }
 0x375   :  { %3119 = vrcp.f32 %v1413_v4  ;;  %v4302_v4 = vld [vmem:[#allocation11 + $0xc0] sm:$0xff] }
 0x37b   :  { %v3110_v49 = vpop.eup %3109 }
 0x37c   :  { %v3112_v57 = vpop.eup %3111  ;;  %v1426_v8 = vmul.f32 %v3110_v49, %v3102_v42  ;;  %v4272_v42 = vld [vmem:[#allocation11 + $0x108] sm:$0xff] }
 0x37d   :  { %v3114_v63 = vpop.eup %3113  ;;  %v1427_v12 = vmul.f32 %v3112_v57, %v3104_v44  ;;  %v4275_v44 = vld [vmem:[#allocation11 + $0x118] sm:$0xff]  ;;  %v4284_v49 = vld [vmem:[#allocation11 + $0xe8] sm:$0xff] }
 0x37e   :  { %v3116_v6 = vpop.eup %3115  ;;  %v1424_v10 = vmul.f32 %v3114_v63, %v1420_v59  ;;  %v4287_v57 = vld [vmem:[#allocation11 + $0xf8] sm:$0xff]  ;;  %v4290_v59 = vld [vmem:[#allocation11 + $0xe0] sm:$0xff]  ;;  %v4296_v63 = vld [vmem:[#allocation11 + $0xc8] sm:$0xff] }
 0x37f   :  { %v1425_v14 = vmul.f32 %v3116_v6, %v1421_v2  ;;  %v4299_v2 = vld [vmem:[#allocation11 + $0xd8] sm:$0xff]  ;;  %v4305_v6 = vld [vmem:[#allocation11 + $0xd0] sm:$0xff] }
 0x380   :  { %v4187_v11 = vadd.f32 %v1426_v8, %v1424_v10  ;;  %v4308_v8 = vld [vmem:[#allocation11 + $0xa8] sm:$0xff]  ;;  %v4311_v10 = vld [vmem:[#allocation11 + $0xb8] sm:$0xff] }
 0x381   :  { %v4189_v34 = vadd.f32 %v1427_v12, %v1425_v14  ;;  %v3118_v26 = vpop.eup %3117  ;;  %5053 = vst [vmem:[#allocation22_spill] sm:$0xff] %v4308_v8  ;;  %5054 = vst [vmem:[#allocation41_spill] sm:$0xff] %v4311_v10  ;;  %v4314_v12 = vld [vmem:[#allocation11 + $0xa0] sm:$0xff]  ;;  %v4317_v14 = vld [vmem:[#allocation11 + $0xb0] sm:$0xff] }
 0x382   :  { %3121 = vtanh.f32 %v4187_v11  ;;  %v3120_v48 = vpop.eup %3119  ;;  %5055 = vst [vmem:[#allocation23_spill] sm:$0xff] %v4314_v12  ;;  %5056 = vst [vmem:[#allocation43_spill] sm:$0xff] %v4317_v14 }
 0x383   :  { %3123 = vtanh.f32 %v4189_v34 }
 0x38f   :  { %v3122_v19 = vpop.eup %3121 }
 0x390   :  { %v3124_v55 = vpop.eup %3123  ;;  %v1432_v62 = vmul.f32 %v3122_v19, %v3118_v26  ;;  %v4320_v26 = vld [vmem:[#allocation11 + $0x88] sm:$0xff]  ;;  %v4326_v19 = vld [vmem:[#allocation11 + $0x80] sm:$0xff] }
 0x391   :  { %v1433_v1 = vmul.f32 %v3124_v55, %v3120_v48  ;;  %5057 = vst [vmem:[#allocation24_spill] sm:$0xff] %v4320_v26  ;;  %v4323_v48 = vld [vmem:[#allocation11 + $0x98] sm:$0xff]  ;;  %5059 = vst [vmem:[#allocation26_spill] sm:$0xff] %v4326_v19  ;;  %v4329_v55 = vld [vmem:[#allocation11 + $0x90] sm:$0xff] }
 0x392   :  { %v1436_v58 = vrot.slane %v1432_v62, 2  ;;  %5058 = vst [vmem:[#allocation45_spill] sm:$0xff] %v4323_v48  ;;  %5060 = vst [vmem:[#allocation46_spill] sm:$0xff] %v4329_v55  ;;  %v4332_v62 = vld [vmem:[#allocation11 + $0x68] sm:$0xff] }
 0x393   :  { %v1437_v60 = vrot.slane %v1433_v1, 1  ;;  %5061 = vst [vmem:[#allocation27_spill] sm:$0xff] %v4332_v62  ;;  %v4335_v1 = vld [vmem:[#allocation11 + $0x78] sm:$0xff] }
 0x394   :  { %5062 = vst [vmem:[#allocation47_spill] sm:$0xff] %v4335_v1 }
 0x395   :  { %v1438_v13 = vsel %vm982_vm2, %v1437_v60, %v1436_v58  ;;  %v4338_v58 = vld [vmem:[#allocation11 + $0x60] sm:$0xff]  ;;  %v4341_v60 = vld [vmem:[#allocation11 + $0x70] sm:$0xff] }
 0x396   :  { %1505 = vmatmul.mubr.f32.vlgmr.msra.gmra.mxu0 %v1438_v13  ;;  %1576 = vmatmul.mubr.f32.vlgmr.msra.gmra.mxu1 %v1438_v13  ;;  %5063 = vst [vmem:[#allocation28_spill] sm:$0xff] %v4338_v58  ;;  %5064 = vst [vmem:[#allocation48_spill] sm:$0xff] %v4341_v60  ;;  %v4344_v13 = vld [vmem:[#allocation11 + $0x48] sm:$0xff] }
 0x397   :  { %1671 = vmatpush1.msra.mxu0 %v4194_v15  ;;  %1742 = vmatpush1.msra.mxu1 %v4197_v17  ;;  %5065 = vst [vmem:[#allocation29_spill] sm:$0xff] %v4344_v13 }
 0x398   :  { %1672 = vmatprep.subr.mxu0 %v4200_v21  ;;  %1743 = vmatprep.subr.mxu1 %v4203_v22 }
 0x399   :  { %1673 = vmatpush1.msra.mxu0 %v4206_v25  ;;  %1744 = vmatpush1.msra.mxu1 %v4209_v30 }
 0x39a   :  { %1674 = vmatprep.subr.mxu0 %v4212_v39  ;;  %1745 = vmatprep.subr.mxu1 %v4215_v5 }
 0x39b   :  { %1675 = vmatpush1.msra.mxu0 %v4218_v51  ;;  %1746 = vmatpush1.msra.mxu1 %v4221_v3 }
 0x39c   :  { %1676 = vmatprep.subr.mxu0 %v4224_v28  ;;  %1747 = vmatprep.subr.mxu1 %v4227_v54 }
 0x39d   :  { %1677 = vmatpush1.msra.mxu0 %v4230_v9  ;;  %1748 = vmatpush1.msra.mxu1 %v4233_v35 }
 0x39e   :  { %1678 = vmatprep.subr.mxu0 %v4236_v23  ;;  %1749 = vmatprep.subr.mxu1 %v4239_v32 }
 0x39f   :  { %1679 = vmatpush1.msra.mxu0 %v4242_v18  ;;  %1750 = vmatpush1.msra.mxu1 %v4245_v50 }
 0x3a0   :  { %1680 = vmatprep.subr.mxu0 %v4248_v0  ;;  %1751 = vmatprep.subr.mxu1 %v4251_v56 }
 0x3a1   :  { %1681 = vmatpush1.msra.mxu0 %v4254_v27  ;;  %1752 = vmatpush1.msra.mxu1 %v4257_v29 }
 0x3a2   :  { %1682 = vmatprep.subr.mxu0 %v4260_v31  ;;  %1753 = vmatprep.subr.mxu1 %v4263_v33 }
 0x3a3   :  { %1683 = vmatpush1.msra.mxu0 %v4266_v36  ;;  %1754 = vmatpush1.msra.mxu1 %v4269_v38 }
 0x3a4   :  { %1684 = vmatprep.subr.mxu0 %v4272_v42  ;;  %1755 = vmatprep.subr.mxu1 %v4275_v44 }
 0x3a5   :  { %1685 = vmatpush1.msra.mxu0 %v4278_v46  ;;  %1756 = vmatpush1.msra.mxu1 %v4281_v47 }
 0x3a6   :  { %1686 = vmatprep.subr.mxu0 %v4284_v49  ;;  %1757 = vmatprep.subr.mxu1 %v4287_v57 }
 0x3a7   :  { %1687 = vmatpush1.msra.mxu0 %v4290_v59  ;;  %1758 = vmatpush1.msra.mxu1 %v4293_v61 }
 0x3a8   :  { %1688 = vmatprep.subr.mxu0 %v4296_v63  ;;  %1759 = vmatprep.subr.mxu1 %v4299_v2 }
 0x3a9   :  { %1689 = vmatpush1.msra.mxu0 %v4302_v4  ;;  %1760 = vmatpush1.msra.mxu1 %v4305_v6 }
 0x3aa   :  { %1690 = vmatprep.subr.mxu0 %v4308_v8  ;;  %1761 = vmatprep.subr.mxu1 %v4311_v10 }
 0x3ab   :  { %1691 = vmatpush1.msra.mxu0 %v4314_v12  ;;  %1762 = vmatpush1.msra.mxu1 %v4317_v14 }
 0x3ac   :  { %1692 = vmatprep.subr.mxu0 %v4320_v26  ;;  %1763 = vmatprep.subr.mxu1 %v4323_v48 }
 0x3ad   :  { %1693 = vmatpush1.msra.mxu0 %v4326_v19  ;;  %1764 = vmatpush1.msra.mxu1 %v4329_v55  ;;  %v4347_v55 = vld [vmem:[#allocation11 + $0x58] sm:$0xff] }
 0x3ae   :  { %1694 = vmatprep.subr.mxu0 %v4332_v62  ;;  %1765 = vmatprep.subr.mxu1 %v4335_v1  ;;  %5066 = vst [vmem:[#allocation49_spill] sm:$0xff] %v4347_v55  ;;  %v4350_v62 = vld [vmem:[#allocation11 + $0x40] sm:$0xff]  ;;  %v4353_v1 = vld [vmem:[#allocation11 + $0x50] sm:$0xff] }
 0x3af   :  { %1695 = vmatpush1.msra.mxu0 %v4338_v58  ;;  %1766 = vmatpush1.msra.mxu1 %v4341_v60  ;;  %5067 = vst [vmem:[#allocation25_spill] sm:$0xff] %v4350_v62  ;;  %5068 = vst [vmem:[#allocation20_spill] sm:$0xff] %v4353_v1  ;;  %v4356_v58 = vld [vmem:[#allocation11 + $0x28] sm:$0xff]  ;;  %v4359_v60 = vld [vmem:[#allocation11 + $0x38] sm:$0xff] }
 0x3b0   :  { %1696 = vmatprep.subr.mxu0 %v4344_v13  ;;  %1767 = vmatprep.subr.mxu1 %v4347_v55  ;;  %5069 = vst [vmem:[#allocation30_spill] sm:$0xff] %v4356_v58  ;;  %5070 = vst [vmem:[#allocation50_spill] sm:$0xff] %v4359_v60  ;;  %v4362_v13 = vld [vmem:[#allocation11 + $0x20] sm:$0xff]  ;;  %v4365_v55 = vld [vmem:[#allocation11 + $0x30] sm:$0xff] }
 0x3b1   :  { %1697 = vmatpush1.msra.mxu0 %v4350_v62  ;;  %1768 = vmatpush1.msra.mxu1 %v4353_v1  ;;  %5071 = vst [vmem:[#allocation31_spill] sm:$0xff] %v4362_v13  ;;  %5072 = vst [vmem:[#allocation51_spill] sm:$0xff] %v4365_v55  ;;  %v4368_v62 = vld [vmem:[#allocation11 + $0x8] sm:$0xff]  ;;  %v4371_v1 = vld [vmem:[#allocation11 + $0x18] sm:$0xff] }
 0x3b2   :  { %1698 = vmatprep.subr.mxu0 %v4356_v58  ;;  %1769 = vmatprep.subr.mxu1 %v4359_v60  ;;  %5073 = vst [vmem:[#allocation32_spill] sm:$0xff] %v4368_v62  ;;  %5074 = vst [vmem:[#allocation52_spill] sm:$0xff] %v4371_v1  ;;  %v4374_v58 = vld [vmem:[#allocation11] sm:$0xff]  ;;  %v4378_v60 = vld [vmem:[#allocation11 + $0x10] sm:$0xff] }
 0x3b3   :  { %1699 = vmatpush1.msra.mxu0 %v4362_v13  ;;  %1770 = vmatpush1.msra.mxu1 %v4365_v55  ;;  %5075 = vst [vmem:[#allocation33_spill] sm:$0xff] %v4374_v58  ;;  %5076 = vst [vmem:[#allocation53_spill] sm:$0xff] %v4378_v60 }
 0x3b4   :  { %1700 = vmatprep.subr.mxu0 %v4368_v62  ;;  %1771 = vmatprep.subr.mxu1 %v4371_v1 }
 0x3b5   :  { %1701 = vmatpush1.msra.mxu0 %v4374_v58  ;;  %1734 = vmatprep.mubr.f32.mxu0 %v5045_v16 }
 0x3b6   :  { %1772 = vmatpush1.msra.mxu1 %v4378_v60  ;;  %1805 = vmatprep.mubr.f32.mxu1 %v5045_v16 }
 0x3b7   :  { %1900 = vmatprep.subr.mxu0 %v4171_v37  ;;  %1971 = vmatprep.subr.mxu1 %v4174_v45 }
 0x456   :  { %v1506_v62 = vpop.f32.mrf.mxu0  ;;  %v1577_v48 = vpop.f32.mrf.mxu1 }
 0x457   :  { %v1586_v55 = vrot.slane %v1506_v62, 5  ;;  %v1590_v13 = vrot.slane %v1506_v62, 6 }
 0x458   :  { %v1508_v1 = vpop.f32.mrf.mxu0  ;;  %v1579_v37 = vpop.f32.mrf.mxu1 }
 0x459   :  { %v1602_v19 = vadd.f32 %v1586_v55, %v3993_v52  ;;  %v1606_v58 = vadd.f32 %v1590_v13, %v5049_v7  ;;  %v1587_v26 = vrot.slane %v1508_v1, 5  ;;  %v1591_v14 = vrot.slane %v1508_v1, 6 }
 0x45a   :  { %v1589_v62 = vrot.slane %v1579_v37, 5  ;;  %v1593_v55 = vrot.slane %v1579_v37, 6  ;;  %v1588_v52 = vrot.slane %v1577_v48, 5  ;;  %v1592_v13 = vrot.slane %v1577_v48, 6 }
 0x45b   :  { %v2897_v12 = vmul.f32 -1.442695, %v1602_v19  ;;  %v2898_v10 = vmul.f32 -1.442695, %v1606_v58  ;;  %v1603_v60 = vadd.f32 %v1587_v26, %v3995_v20  ;;  %v1607_v16 = vadd.f32 %v1591_v14, %v5050_v24 }
 0x45c   :  { %v1605_v7 = vadd.f32 %v1589_v62, %v4012_v43  ;;  %v1609_v19 = vadd.f32 %v1593_v55, %v4005_v40  ;;  %v1604_v1 = vadd.f32 %v1588_v52, %v5051_v41  ;;  %v1608_v26 = vadd.f32 %v1592_v13, %v5052_v53 }
 0x45d   :  { %3125 = vpow2.f32 %v2897_v12  ;;  %v2899_v45 = vmul.f32 -1.442695, %v1603_v60  ;;  %v2900_v8 = vmul.f32 -1.442695, %v1607_v16 }
 0x45e   :  { %3127 = vpow2.f32 %v2898_v10  ;;  %v2901_v14 = vmul.f32 -1.442695, %v1605_v7  ;;  %v2902_v12 = vmul.f32 -1.442695, %v1609_v19 }
 0x45f   :  { %3129 = vpow2.f32 %v2899_v45 }
 0x460   :  { %3131 = vpow2.f32 %v2900_v8 }
 0x461   :  { %3133 = vtanh.f32 %v1604_v1  ;;  %v1650_v1 = vrot.slane %v4187_v11, 7 }
 0x462   :  { %3135 = vtanh.f32 %v1608_v26 }
 0x463   :  { %3137 = vpow2.f32 %v2901_v14  ;;  %v1651_v14 = vrot.slane %v4189_v34, 7 }
 0x464   :  { %3139 = vpow2.f32 %v2902_v12 }
 0x46a   :  { %v3126_v58 = vpop.eup %3125 }
 0x46b   :  { %v3128_v10 = vpop.eup %3127  ;;  %v1616_v16 = vadd.f32 1.0, %v3126_v58 }
 0x46c   :  { %v1617_v45 = vadd.f32 1.0, %v3128_v10  ;;  %v3130_v37 = vpop.eup %3129 }
 0x46d   :  { %v3132_v8 = vpop.eup %3131  ;;  %3141 = vrcp.f32 %v1616_v16  ;;  %v1628_v48 = vadd.f32 1.0, %v3130_v37 }
 0x46e   :  { %3143 = vrcp.f32 %v1617_v45  ;;  %v1629_v60 = vadd.f32 1.0, %v3132_v8  ;;  %v3134_v52 = vpop.eup %3133 }
 0x46f   :  { %3145 = vrcp.f32 %v1628_v48  ;;  %v3136_v62 = vpop.eup %3135 }
 0x470   :  { %3147 = vrcp.f32 %v1629_v60  ;;  %v3138_v7 = vpop.eup %3137 }
 0x471   :  { %v3140_v55 = vpop.eup %3139  ;;  %v1642_v26 = vadd.f32 1.0, %v3138_v7 }
 0x472   :  { %v1643_v12 = vadd.f32 1.0, %v3140_v55 }
 0x473   :  { %3149 = vrcp.f32 %v1642_v26  ;;  %v5081_v26 = vld [vmem:[#allocation24_spill] sm:$0xff] }
 0x474   :  { %3151 = vrcp.f32 %v1643_v12  ;;  %v5084_v12 = vld [vmem:[#allocation46_spill] sm:$0xff] }
 0x47a   :  { %v3142_v13 = vpop.eup %3141 }
 0x47b   :  { %v3144_v19 = vpop.eup %3143  ;;  %v1656_v16 = vmul.f32 %v3142_v13, %v3134_v52 }
 0x47c   :  { %v3146_v58 = vpop.eup %3145  ;;  %v1657_v45 = vmul.f32 %v3144_v19, %v3136_v62  ;;  %v5079_v19 = vld [vmem:[#allocation23_spill] sm:$0xff] }
 0x47d   :  { %v3148_v10 = vpop.eup %3147  ;;  %v1654_v37 = vmul.f32 %v3146_v58, %v1650_v1  ;;  %v5080_v1 = vld [vmem:[#allocation43_spill] sm:$0xff]  ;;  %v5082_v58 = vld [vmem:[#allocation45_spill] sm:$0xff] }
 0x47e   :  { %v1655_v8 = vmul.f32 %v3148_v10, %v1651_v14  ;;  %v5083_v14 = vld [vmem:[#allocation26_spill] sm:$0xff]  ;;  %v5085_v10 = vld [vmem:[#allocation27_spill] sm:$0xff] }
 0x47f   :  { %v4394_v48 = vadd.f32 %v1656_v16, %v1654_v37  ;;  %v5086_v16 = vld [vmem:[#allocation47_spill] sm:$0xff]  ;;  %v5087_v37 = vld [vmem:[#allocation28_spill] sm:$0xff] }
 0x480   :  { %v4396_v60 = vadd.f32 %v1657_v45, %v1655_v8  ;;  %v3150_v11 = vpop.eup %3149  ;;  %v5088_v45 = vld [vmem:[#allocation48_spill] sm:$0xff]  ;;  %v5089_v8 = vld [vmem:[#allocation29_spill] sm:$0xff] }
 0x481   :  { %3153 = vtanh.f32 %v4394_v48  ;;  %v3152_v7 = vpop.eup %3151 }
 0x482   :  { %3155 = vtanh.f32 %v4396_v60 }
 0x48e   :  { %v3154_v53 = vpop.eup %3153 }
 0x48f   :  { %v3156_v34 = vpop.eup %3155  ;;  %v1662_v55 = vmul.f32 %v3154_v53, %v3150_v11  ;;  %v5078_v53 = vld [vmem:[#allocation41_spill] sm:$0xff] }
 0x490   :  { %v1663_v41 = vmul.f32 %v3156_v34, %v3152_v7  ;;  %v5090_v11 = vld [vmem:[#allocation49_spill] sm:$0xff]  ;;  %v5092_v34 = vld [vmem:[#allocation20_spill] sm:$0xff] }
 0x491   :  { %v1666_v52 = vrot.slane %v1662_v55, 3  ;;  %v5091_v7 = vld [vmem:[#allocation25_spill] sm:$0xff]  ;;  %v5093_v55 = vld [vmem:[#allocation30_spill] sm:$0xff] }
 0x492   :  { %v1667_v13 = vrot.slane %v1663_v41, 2  ;;  %v5077_v41 = vld [vmem:[#allocation22_spill] sm:$0xff] }
 0x494   :  { %v1668_v62 = vsel %vm982_vm2, %v1667_v13, %v1666_v52  ;;  %v5094_v52 = vld [vmem:[#allocation50_spill] sm:$0xff]  ;;  %v5095_v13 = vld [vmem:[#allocation31_spill] sm:$0xff] }
 0x495   :  { %1735 = vmatmul.mubr.f32.vlgmr.msra.gmra.mxu0 %v1668_v62  ;;  %1806 = vmatmul.mubr.f32.vlgmr.msra.gmra.mxu1 %v1668_v62  ;;  %v5096_v62 = vld [vmem:[#allocation51_spill] sm:$0xff] }
 0x496   :  { %1901 = vmatpush1.msra.mxu0 %v4194_v15  ;;  %1972 = vmatpush1.msra.mxu1 %v4197_v17 }
 0x497   :  { %1902 = vmatprep.subr.mxu0 %v4200_v21  ;;  %1973 = vmatprep.subr.mxu1 %v4203_v22 }
 0x498   :  { %1903 = vmatpush1.msra.mxu0 %v4206_v25  ;;  %1974 = vmatpush1.msra.mxu1 %v4209_v30 }
 0x499   :  { %1904 = vmatprep.subr.mxu0 %v4212_v39  ;;  %1975 = vmatprep.subr.mxu1 %v4215_v5 }
 0x49a   :  { %1905 = vmatpush1.msra.mxu0 %v4218_v51  ;;  %1976 = vmatpush1.msra.mxu1 %v4221_v3 }
 0x49b   :  { %1906 = vmatprep.subr.mxu0 %v4224_v28  ;;  %1977 = vmatprep.subr.mxu1 %v4227_v54 }
 0x49c   :  { %1907 = vmatpush1.msra.mxu0 %v4230_v9  ;;  %1978 = vmatpush1.msra.mxu1 %v4233_v35 }
 0x49d   :  { %1908 = vmatprep.subr.mxu0 %v4236_v23  ;;  %1979 = vmatprep.subr.mxu1 %v4239_v32 }
 0x49e   :  { %1909 = vmatpush1.msra.mxu0 %v4242_v18  ;;  %1980 = vmatpush1.msra.mxu1 %v4245_v50 }
 0x49f   :  { %1910 = vmatprep.subr.mxu0 %v4248_v0  ;;  %1981 = vmatprep.subr.mxu1 %v4251_v56 }
 0x4a0   :  { %1911 = vmatpush1.msra.mxu0 %v4254_v27  ;;  %1982 = vmatpush1.msra.mxu1 %v4257_v29 }
 0x4a1   :  { %1912 = vmatprep.subr.mxu0 %v4260_v31  ;;  %1983 = vmatprep.subr.mxu1 %v4263_v33 }
 0x4a2   :  { %1913 = vmatpush1.msra.mxu0 %v4266_v36  ;;  %1984 = vmatpush1.msra.mxu1 %v4269_v38 }
 0x4a3   :  { %1914 = vmatprep.subr.mxu0 %v4272_v42  ;;  %1985 = vmatprep.subr.mxu1 %v4275_v44 }
 0x4a4   :  { %1915 = vmatpush1.msra.mxu0 %v4278_v46  ;;  %1986 = vmatpush1.msra.mxu1 %v4281_v47 }
 0x4a5   :  { %1916 = vmatprep.subr.mxu0 %v4284_v49  ;;  %1987 = vmatprep.subr.mxu1 %v4287_v57 }
 0x4a6   :  { %1917 = vmatpush1.msra.mxu0 %v4290_v59  ;;  %1988 = vmatpush1.msra.mxu1 %v4293_v61 }
 0x4a7   :  { %1918 = vmatprep.subr.mxu0 %v4296_v63  ;;  %1989 = vmatprep.subr.mxu1 %v4299_v2 }
 0x4a8   :  { %1919 = vmatpush1.msra.mxu0 %v4302_v4  ;;  %1990 = vmatpush1.msra.mxu1 %v4305_v6 }
 0x4a9   :  { %1920 = vmatprep.subr.mxu0 %v5077_v41  ;;  %1991 = vmatprep.subr.mxu1 %v5078_v53 }
 0x4aa   :  { %1921 = vmatpush1.msra.mxu0 %v5079_v19  ;;  %1992 = vmatpush1.msra.mxu1 %v5080_v1 }
 0x4ab   :  { %1922 = vmatprep.subr.mxu0 %v5081_v26  ;;  %1993 = vmatprep.subr.mxu1 %v5082_v58 }
 0x4ac   :  { %1923 = vmatpush1.msra.mxu0 %v5083_v14  ;;  %1994 = vmatpush1.msra.mxu1 %v5084_v12  ;;  %v5105_v12 = vld [vmem:[#allocation63_spill] sm:$0xff] }
 0x4ad   :  { %1924 = vmatprep.subr.mxu0 %v5085_v10  ;;  %1995 = vmatprep.subr.mxu1 %v5086_v16  ;;  %v5097_v16 = vld [vmem:[#allocation32_spill] sm:$0xff]  ;;  %v5104_v10 = vld [vmem:[#allocation61_spill] sm:$0xff] }
 0x4ae   :  { %1925 = vmatpush1.msra.mxu0 %v5087_v37  ;;  %1996 = vmatpush1.msra.mxu1 %v5088_v45  ;;  %v5098_v37 = vld [vmem:[#allocation52_spill] sm:$0xff]  ;;  %v5099_v45 = vld [vmem:[#allocation33_spill] sm:$0xff] }
 0x4af   :  { %1926 = vmatprep.subr.mxu0 %v5089_v8  ;;  %1997 = vmatprep.subr.mxu1 %v5090_v11  ;;  %v5100_v8 = vmov 0.0   ;;  %v5101_v11 = vld [vmem:[#allocation53_spill] sm:$0xff] }
 0x4b0   :  { %1927 = vmatpush1.msra.mxu0 %v5091_v7  ;;  %1998 = vmatpush1.msra.mxu1 %v5092_v34  ;;  %v5102_v34 = vld [vmem:[#allocation21_spill] sm:$0xff] }
 0x4b1   :  { %1928 = vmatprep.subr.mxu0 %v5093_v55  ;;  %1999 = vmatprep.subr.mxu1 %v5094_v52  ;;  %v5103_v55 = vld [vmem:[#allocation39_spill] sm:$0xff] }
 0x4b2   :  { %1929 = vmatpush1.msra.mxu0 %v5095_v13  ;;  %2000 = vmatpush1.msra.mxu1 %v5096_v62 }
 0x4b3   :  { %1930 = vmatprep.subr.mxu0 %v5097_v16  ;;  %2001 = vmatprep.subr.mxu1 %v5098_v37 }
 0x4b4   :  { %1931 = vmatpush1.msra.mxu0 %v5099_v45  ;;  %1964 = vmatprep.mubr.f32.mxu0 %v5100_v8 }
 0x4b5   :  { %2002 = vmatpush1.msra.mxu1 %v5101_v11  ;;  %2035 = vmatprep.mubr.f32.mxu1 %v5100_v8 }
 0x4b6   :  { %2130 = vmatprep.subr.mxu0 %v5102_v34  ;;  %2201 = vmatprep.subr.mxu1 %v5103_v55 }
 0x555   :  { %v1736_v52 = vpop.f32.mrf.mxu0  ;;  %v1807_v14 = vpop.f32.mrf.mxu1 }
 0x556   :  { %v1816_v13 = vrot.slane %v1736_v52, 4  ;;  %v1820_v7 = vrot.slane %v1736_v52, 5 }
 0x557   :  { %v1738_v62 = vpop.f32.mrf.mxu0  ;;  %v1809_v34 = vpop.f32.mrf.mxu1 }
 0x558   :  { %v1832_v16 = vadd.f32 %v1816_v13, %v5104_v10  ;;  %v1836_v37 = vadd.f32 %v1820_v7, %v5105_v12  ;;  %v1817_v45 = vrot.slane %v1738_v62, 4  ;;  %v1821_v58 = vrot.slane %v1738_v62, 5 }
 0x559   :  { %v1819_v52 = vrot.slane %v1809_v34, 4  ;;  %v1823_v13 = vrot.slane %v1809_v34, 5  ;;  %v1818_v10 = vrot.slane %v1807_v14, 4  ;;  %v1822_v7 = vrot.slane %v1807_v14, 5 }
 0x55a   :  { %v2903_v26 = vmul.f32 -1.442695, %v1832_v16  ;;  %v2904_v1 = vmul.f32 -1.442695, %v1836_v37  ;;  %v1833_v11 = vadd.f32 %v1817_v45, %v3995_v20  ;;  %v1837_v8 = vadd.f32 %v1821_v58, %v5050_v24  ;;  %v5106_v37 = vld [vmem:[#allocation65_spill] sm:$0xff]  ;;  %v5107_v45 = vld [vmem:[#allocation66_spill] sm:$0xff] }
 0x55b   :  { %v1835_v12 = vadd.f32 %v1819_v52, %v4012_v43  ;;  %v1839_v16 = vadd.f32 %v1823_v13, %v4005_v40  ;;  %v1834_v62 = vadd.f32 %v1818_v10, %v5106_v37  ;;  %v1838_v20 = vadd.f32 %v1822_v7, %v5107_v45 }
 0x55c   :  { %3157 = vpow2.f32 %v2903_v26  ;;  %v2905_v55 = vmul.f32 -1.442695, %v1833_v11  ;;  %v2906_v19 = vmul.f32 -1.442695, %v1837_v8 }
 0x55d   :  { %3159 = vpow2.f32 %v2904_v1  ;;  %v2907_v58 = vmul.f32 -1.442695, %v1835_v12  ;;  %v2908_v26 = vmul.f32 -1.442695, %v1839_v16 }
 0x55e   :  { %3161 = vpow2.f32 %v2905_v55 }
 0x55f   :  { %3163 = vpow2.f32 %v2906_v19 }
 0x560   :  { %3165 = vtanh.f32 %v1834_v62 }
 0x561   :  { %3167 = vtanh.f32 %v1838_v20 }
 0x562   :  { %3169 = vpow2.f32 %v2907_v58  ;;  %v1881_v58 = vrot.slane %v4396_v60, 7 }
 0x563   :  { %3171 = vpow2.f32 %v2908_v26 }
 0x569   :  { %v3158_v24 = vpop.eup %3157 }
 0x56a   :  { %v3160_v1 = vpop.eup %3159  ;;  %v1846_v8 = vadd.f32 1.0, %v3158_v24  ;;  %v1880_v24 = vrot.slane %v4394_v48, 7 }
 0x56b   :  { %v1847_v11 = vadd.f32 1.0, %v3160_v1  ;;  %v3162_v19 = vpop.eup %3161 }
 0x56c   :  { %v3164_v14 = vpop.eup %3163  ;;  %3173 = vrcp.f32 %v1846_v8  ;;  %v1858_v34 = vadd.f32 1.0, %v3162_v19 }
 0x56d   :  { %3175 = vrcp.f32 %v1847_v11  ;;  %v1859_v55 = vadd.f32 1.0, %v3164_v14  ;;  %v3166_v10 = vpop.eup %3165 }
 0x56e   :  { %3177 = vrcp.f32 %v1858_v34  ;;  %v3168_v52 = vpop.eup %3167 }
 0x56f   :  { %3179 = vrcp.f32 %v1859_v55  ;;  %v3170_v12 = vpop.eup %3169 }
 0x570   :  { %v3172_v13 = vpop.eup %3171  ;;  %v1872_v20 = vadd.f32 1.0, %v3170_v12 }
 0x571   :  { %v1873_v26 = vadd.f32 1.0, %v3172_v13 }
 0x572   :  { %3181 = vrcp.f32 %v1872_v20  ;;  %v5112_v20 = vld [vmem:[#allocation26_spill] sm:$0xff] }
 0x573   :  { %3183 = vrcp.f32 %v1873_v26  ;;  %v5115_v26 = vld [vmem:[#allocation47_spill] sm:$0xff] }
 0x579   :  { %v3174_v7 = vpop.eup %3173 }
 0x57a   :  { %v3176_v16 = vpop.eup %3175  ;;  %v1886_v8 = vmul.f32 %v3174_v7, %v3166_v10 }
 0x57b   :  { %v3178_v62 = vpop.eup %3177  ;;  %v1887_v11 = vmul.f32 %v3176_v16, %v3168_v52  ;;  %v5110_v16 = vld [vmem:[#allocation24_spill] sm:$0xff] }
 0x57c   :  { %v3180_v1 = vpop.eup %3179  ;;  %v1884_v19 = vmul.f32 %v3178_v62, %v1880_v24  ;;  %v5111_v24 = vld [vmem:[#allocation45_spill] sm:$0xff]  ;;  %v5113_v62 = vld [vmem:[#allocation46_spill] sm:$0xff] }
 0x57d   :  { %v1885_v14 = vmul.f32 %v3180_v1, %v1881_v58  ;;  %v5114_v58 = vld [vmem:[#allocation27_spill] sm:$0xff]  ;;  %v5116_v1 = vld [vmem:[#allocation28_spill] sm:$0xff] }
 0x57e   :  { %v4477_v34 = vadd.f32 %v1886_v8, %v1884_v19  ;;  %v5117_v8 = vld [vmem:[#allocation48_spill] sm:$0xff]  ;;  %v5118_v19 = vld [vmem:[#allocation29_spill] sm:$0xff] }
 0x57f   :  { %v4479_v55 = vadd.f32 %v1887_v11, %v1885_v14  ;;  %v3182_v48 = vpop.eup %3181  ;;  %v5119_v11 = vld [vmem:[#allocation49_spill] sm:$0xff] }
 0x580   :  { %3185 = vtanh.f32 %v4477_v34  ;;  %v3184_v12 = vpop.eup %3183  ;;  %v5120_v14 = vld [vmem:[#allocation25_spill] sm:$0xff] }
 0x581   :  { %3187 = vtanh.f32 %v4479_v55 }
 0x58d   :  { %v3186_v45 = vpop.eup %3185 }
 0x58e   :  { %v3188_v60 = vpop.eup %3187  ;;  %v1892_v13 = vmul.f32 %v3186_v45, %v3182_v48  ;;  %v5109_v45 = vld [vmem:[#allocation43_spill] sm:$0xff]  ;;  %v5121_v48 = vld [vmem:[#allocation20_spill] sm:$0xff] }
 0x58f   :  { %v1893_v37 = vmul.f32 %v3188_v60, %v3184_v12  ;;  %v5122_v12 = vld [vmem:[#allocation30_spill] sm:$0xff] }
 0x590   :  { %v1896_v10 = vrot.slane %v1892_v13, 4  ;;  %v5123_v60 = vld [vmem:[#allocation50_spill] sm:$0xff]  ;;  %v5124_v13 = vld [vmem:[#allocation31_spill] sm:$0xff] }
 0x591   :  { %v1897_v7 = vrot.slane %v1893_v37, 3  ;;  %v5108_v37 = vld [vmem:[#allocation23_spill] sm:$0xff] }
 0x593   :  { %v1898_v52 = vsel %vm982_vm2, %v1897_v7, %v1896_v10  ;;  %v5125_v10 = vld [vmem:[#allocation51_spill] sm:$0xff]  ;;  %v5126_v7 = vld [vmem:[#allocation32_spill] sm:$0xff] }
 0x594   :  { %1965 = vmatmul.mubr.f32.vlgmr.msra.gmra.mxu0 %v1898_v52  ;;  %2036 = vmatmul.mubr.f32.vlgmr.msra.gmra.mxu1 %v1898_v52  ;;  %v5127_v52 = vld [vmem:[#allocation52_spill] sm:$0xff] }
 0x595   :  { %2131 = vmatpush1.msra.mxu0 %v4194_v15  ;;  %2202 = vmatpush1.msra.mxu1 %v4197_v17 }
 0x596   :  { %2132 = vmatprep.subr.mxu0 %v4200_v21  ;;  %2203 = vmatprep.subr.mxu1 %v4203_v22 }
 0x597   :  { %2133 = vmatpush1.msra.mxu0 %v4206_v25  ;;  %2204 = vmatpush1.msra.mxu1 %v4209_v30 }
 0x598   :  { %2134 = vmatprep.subr.mxu0 %v4212_v39  ;;  %2205 = vmatprep.subr.mxu1 %v4215_v5 }
 0x599   :  { %2135 = vmatpush1.msra.mxu0 %v4218_v51  ;;  %2206 = vmatpush1.msra.mxu1 %v4221_v3 }
 0x59a   :  { %2136 = vmatprep.subr.mxu0 %v4224_v28  ;;  %2207 = vmatprep.subr.mxu1 %v4227_v54 }
 0x59b   :  { %2137 = vmatpush1.msra.mxu0 %v4230_v9  ;;  %2208 = vmatpush1.msra.mxu1 %v4233_v35 }
 0x59c   :  { %2138 = vmatprep.subr.mxu0 %v4236_v23  ;;  %2209 = vmatprep.subr.mxu1 %v4239_v32 }
 0x59d   :  { %2139 = vmatpush1.msra.mxu0 %v4242_v18  ;;  %2210 = vmatpush1.msra.mxu1 %v4245_v50 }
 0x59e   :  { %2140 = vmatprep.subr.mxu0 %v4248_v0  ;;  %2211 = vmatprep.subr.mxu1 %v4251_v56 }
 0x59f   :  { %2141 = vmatpush1.msra.mxu0 %v4254_v27  ;;  %2212 = vmatpush1.msra.mxu1 %v4257_v29 }
 0x5a0   :  { %2142 = vmatprep.subr.mxu0 %v4260_v31  ;;  %2213 = vmatprep.subr.mxu1 %v4263_v33 }
 0x5a1   :  { %2143 = vmatpush1.msra.mxu0 %v4266_v36  ;;  %2214 = vmatpush1.msra.mxu1 %v4269_v38 }
 0x5a2   :  { %2144 = vmatprep.subr.mxu0 %v4272_v42  ;;  %2215 = vmatprep.subr.mxu1 %v4275_v44 }
 0x5a3   :  { %2145 = vmatpush1.msra.mxu0 %v4278_v46  ;;  %2216 = vmatpush1.msra.mxu1 %v4281_v47 }
 0x5a4   :  { %2146 = vmatprep.subr.mxu0 %v4284_v49  ;;  %2217 = vmatprep.subr.mxu1 %v4287_v57 }
 0x5a5   :  { %2147 = vmatpush1.msra.mxu0 %v4290_v59  ;;  %2218 = vmatpush1.msra.mxu1 %v4293_v61 }
 0x5a6   :  { %2148 = vmatprep.subr.mxu0 %v4296_v63  ;;  %2219 = vmatprep.subr.mxu1 %v4299_v2 }
 0x5a7   :  { %2149 = vmatpush1.msra.mxu0 %v4302_v4  ;;  %2220 = vmatpush1.msra.mxu1 %v4305_v6 }
 0x5a8   :  { %2150 = vmatprep.subr.mxu0 %v5077_v41  ;;  %2221 = vmatprep.subr.mxu1 %v5078_v53 }
 0x5a9   :  { %2151 = vmatpush1.msra.mxu0 %v5108_v37  ;;  %2222 = vmatpush1.msra.mxu1 %v5109_v45 }
 0x5aa   :  { %2152 = vmatprep.subr.mxu0 %v5110_v16  ;;  %2223 = vmatprep.subr.mxu1 %v5111_v24 }
 0x5ab   :  { %2153 = vmatpush1.msra.mxu0 %v5112_v20  ;;  %2224 = vmatpush1.msra.mxu1 %v5113_v62 }
 0x5ac   :  { %2154 = vmatprep.subr.mxu0 %v5114_v58  ;;  %2225 = vmatprep.subr.mxu1 %v5115_v26  ;;  %v5134_v26 = vld [vmem:[#allocation63_spill] sm:$0xff] }
 0x5ad   :  { %2155 = vmatpush1.msra.mxu0 %v5116_v1  ;;  %2226 = vmatpush1.msra.mxu1 %v5117_v8  ;;  %v5128_v8 = vld [vmem:[#allocation33_spill] sm:$0xff] }
 0x5ae   :  { %2156 = vmatprep.subr.mxu0 %v5118_v19  ;;  %2227 = vmatprep.subr.mxu1 %v5119_v11  ;;  %v5129_v19 = vmov 0.0   ;;  %v5130_v11 = vld [vmem:[#allocation53_spill] sm:$0xff] }
 0x5af   :  { %2157 = vmatpush1.msra.mxu0 %v5120_v14  ;;  %2228 = vmatpush1.msra.mxu1 %v5121_v48  ;;  %v5131_v48 = vld [vmem:[#allocation21_spill] sm:$0xff] }
 0x5b0   :  { %2158 = vmatprep.subr.mxu0 %v5122_v12  ;;  %2229 = vmatprep.subr.mxu1 %v5123_v60  ;;  %v5132_v12 = vld [vmem:[#allocation39_spill] sm:$0xff]  ;;  %v5133_v1 = vld [vmem:[#allocation61_spill] sm:$0xff] }
 0x5b1   :  { %2159 = vmatpush1.msra.mxu0 %v5124_v13  ;;  %2230 = vmatpush1.msra.mxu1 %v5125_v10 }
 0x5b2   :  { %2160 = vmatprep.subr.mxu0 %v5126_v7  ;;  %2231 = vmatprep.subr.mxu1 %v5127_v52 }
 0x5b3   :  { %2161 = vmatpush1.msra.mxu0 %v5128_v8  ;;  %2194 = vmatprep.mubr.f32.mxu0 %v5129_v19 }
 0x5b4   :  { %2232 = vmatpush1.msra.mxu1 %v5130_v11  ;;  %2265 = vmatprep.mubr.f32.mxu1 %v5129_v19  ;;  %v5135_v11 = vld [vmem:[#allocation62_spill] sm:$0xff]  ;;  %v5136_v19 = vld [vmem:[#allocation64_spill] sm:$0xff] }
 0x5b5   :  { %2360 = vmatprep.subr.mxu0 %v5131_v48  ;;  %2431 = vmatprep.subr.mxu1 %v5132_v12 }
 0x654   :  { %v1966_v60 = vpop.f32.mrf.mxu0  ;;  %v2037_v58 = vpop.f32.mrf.mxu1 }
 0x655   :  { %v2046_v13 = vrot.slane %v1966_v60, 3  ;;  %v2050_v14 = vrot.slane %v1966_v60, 4 }
 0x656   :  { %v1968_v10 = vpop.f32.mrf.mxu0  ;;  %v2039_v48 = vpop.f32.mrf.mxu1 }
 0x657   :  { %v2062_v7 = vadd.f32 %v2046_v13, %v5133_v1  ;;  %v2066_v52 = vadd.f32 %v2050_v14, %v5134_v26  ;;  %v2047_v8 = vrot.slane %v1968_v10, 3  ;;  %v2051_v62 = vrot.slane %v1968_v10, 4 }
 0x658   :  { %v2049_v60 = vrot.slane %v2039_v48, 3  ;;  %v2053_v13 = vrot.slane %v2039_v48, 4  ;;  %v2048_v1 = vrot.slane %v2037_v58, 3  ;;  %v2052_v14 = vrot.slane %v2037_v58, 4 }
 0x659   :  { %v2909_v20 = vmul.f32 -1.442695, %v2062_v7  ;;  %v2910_v24 = vmul.f32 -1.442695, %v2066_v52  ;;  %v2063_v16 = vadd.f32 %v2047_v8, %v5135_v11  ;;  %v2067_v45 = vadd.f32 %v2051_v62, %v5136_v19  ;;  %v5137_v7 = vld [vmem:[#allocation65_spill] sm:$0xff]  ;;  %v5138_v8 = vld [vmem:[#allocation66_spill] sm:$0xff] }
 0x65a   :  { %v2065_v26 = vadd.f32 %v2049_v60, %v4012_v43  ;;  %v2069_v10 = vadd.f32 %v2053_v13, %v4005_v40  ;;  %v2064_v52 = vadd.f32 %v2048_v1, %v5137_v7  ;;  %v2068_v11 = vadd.f32 %v2052_v14, %v5138_v8 }
 0x65b   :  { %3189 = vpow2.f32 %v2909_v20  ;;  %v2911_v12 = vmul.f32 -1.442695, %v2063_v16  ;;  %v2912_v37 = vmul.f32 -1.442695, %v2067_v45 }
 0x65c   :  { %3191 = vpow2.f32 %v2910_v24  ;;  %v2913_v62 = vmul.f32 -1.442695, %v2065_v26  ;;  %v2914_v20 = vmul.f32 -1.442695, %v2069_v10 }
 0x65d   :  { %3193 = vpow2.f32 %v2911_v12 }
 0x65e   :  { %3195 = vpow2.f32 %v2912_v37 }
 0x65f   :  { %3197 = vtanh.f32 %v2064_v52 }
 0x660   :  { %3199 = vtanh.f32 %v2068_v11 }
 0x661   :  { %3201 = vpow2.f32 %v2913_v62  ;;  %v2111_v62 = vrot.slane %v4479_v55, 7 }
 0x662   :  { %3203 = vpow2.f32 %v2914_v20 }
 0x668   :  { %v3190_v19 = vpop.eup %3189 }
 0x669   :  { %v3192_v16 = vpop.eup %3191  ;;  %v2076_v45 = vadd.f32 1.0, %v3190_v19  ;;  %v2110_v19 = vrot.slane %v4477_v34, 7 }
 0x66a   :  { %v2077_v24 = vadd.f32 1.0, %v3192_v16  ;;  %v3194_v37 = vpop.eup %3193 }
 0x66b   :  { %v3196_v58 = vpop.eup %3195  ;;  %3205 = vrcp.f32 %v2076_v45  ;;  %v2088_v48 = vadd.f32 1.0, %v3194_v37 }
 0x66c   :  { %3207 = vrcp.f32 %v2077_v24  ;;  %v2089_v12 = vadd.f32 1.0, %v3196_v58  ;;  %v3198_v1 = vpop.eup %3197 }
 0x66d   :  { %3209 = vrcp.f32 %v2088_v48  ;;  %v3200_v60 = vpop.eup %3199 }
 0x66e   :  { %3211 = vrcp.f32 %v2089_v12  ;;  %v3202_v26 = vpop.eup %3201 }
 0x66f   :  { %v3204_v13 = vpop.eup %3203  ;;  %v2102_v11 = vadd.f32 1.0, %v3202_v26 }
 0x670   :  { %v2103_v20 = vadd.f32 1.0, %v3204_v13 }
 0x671   :  { %3213 = vrcp.f32 %v2102_v11 }
 0x672   :  { %3215 = vrcp.f32 %v2103_v20 }
 0x678   :  { %v3206_v14 = vpop.eup %3205 }
 0x679   :  { %v3208_v10 = vpop.eup %3207  ;;  %v2116_v45 = vmul.f32 %v3206_v14, %v3198_v1 }
 0x67a   :  { %v3210_v52 = vpop.eup %3209  ;;  %v2117_v24 = vmul.f32 %v3208_v10, %v3200_v60 }
 0x67b   :  { %v3212_v16 = vpop.eup %3211  ;;  %v2114_v37 = vmul.f32 %v3210_v52, %v2110_v19 }
 0x67c   :  { %v2115_v58 = vmul.f32 %v3212_v16, %v2111_v62 }
 0x67d   :  { %v4560_v48 = vadd.f32 %v2116_v45, %v2114_v37  ;;  %v5166_v45 = vld [vmem:[#allocation65_spill] sm:$0xff] }
 0x67e   :  { %v4562_v12 = vadd.f32 %v2117_v24, %v2115_v58  ;;  %v3214_v34 = vpop.eup %3213  ;;  %v5167_v24 = vld [vmem:[#allocation66_spill] sm:$0xff] }
 0x67f   :  { %3217 = vtanh.f32 %v4560_v48  ;;  %v3216_v26 = vpop.eup %3215 }
 0x680   :  { %3219 = vtanh.f32 %v4562_v12 }
 0x68c   :  { %v3218_v8 = vpop.eup %3217 }
 0x68d   :  { %v3220_v55 = vpop.eup %3219  ;;  %v2122_v13 = vmul.f32 %v3218_v8, %v3214_v34 }
 0x68e   :  { %v2123_v7 = vmul.f32 %v3220_v55, %v3216_v26 }
 0x68f   :  { %v2126_v1 = vrot.slane %v2122_v13, 5 }
 0x690   :  { %v2127_v14 = vrot.slane %v2123_v7, 4 }
 0x692   :  { %v2128_v60 = vsel %vm982_vm2, %v2127_v14, %v2126_v1 }
 0x693   :  { %2195 = vmatmul.mubr.f32.vlgmr.msra.gmra.mxu0 %v2128_v60  ;;  %2266 = vmatmul.mubr.f32.vlgmr.msra.gmra.mxu1 %v2128_v60 }
 0x694   :  { %2361 = vmatpush1.msra.mxu0 %v4194_v15  ;;  %2432 = vmatpush1.msra.mxu1 %v4197_v17  ;;  %v5139_v15 = vld [vmem:[#allocation23_spill] sm:$0xff] }
 0x695   :  { %2362 = vmatprep.subr.mxu0 %v4200_v21  ;;  %2433 = vmatprep.subr.mxu1 %v4203_v22  ;;  %v5140_v17 = vld [vmem:[#allocation43_spill] sm:$0xff]  ;;  %v5141_v21 = vld [vmem:[#allocation24_spill] sm:$0xff]  ;;  %v5142_v22 = vld [vmem:[#allocation45_spill] sm:$0xff] }
 0x696   :  { %2363 = vmatpush1.msra.mxu0 %v4206_v25  ;;  %2434 = vmatpush1.msra.mxu1 %v4209_v30  ;;  %v5143_v25 = vld [vmem:[#allocation26_spill] sm:$0xff] }
 0x697   :  { %2364 = vmatprep.subr.mxu0 %v4212_v39  ;;  %2435 = vmatprep.subr.mxu1 %v4215_v5  ;;  %v5144_v30 = vld [vmem:[#allocation46_spill] sm:$0xff]  ;;  %v5145_v39 = vld [vmem:[#allocation27_spill] sm:$0xff] }
 0x698   :  { %2365 = vmatpush1.msra.mxu0 %v4218_v51  ;;  %2436 = vmatpush1.msra.mxu1 %v4221_v3  ;;  %v5146_v5 = vld [vmem:[#allocation47_spill] sm:$0xff]  ;;  %v5147_v51 = vld [vmem:[#allocation28_spill] sm:$0xff] }
 0x699   :  { %2366 = vmatprep.subr.mxu0 %v4224_v28  ;;  %2437 = vmatprep.subr.mxu1 %v4227_v54  ;;  %v5148_v3 = vld [vmem:[#allocation48_spill] sm:$0xff]  ;;  %v5149_v28 = vld [vmem:[#allocation29_spill] sm:$0xff] }
 0x69a   :  { %2367 = vmatpush1.msra.mxu0 %v4230_v9  ;;  %2438 = vmatpush1.msra.mxu1 %v4233_v35  ;;  %v5150_v54 = vld [vmem:[#allocation49_spill] sm:$0xff]  ;;  %v5152_v35 = vld [vmem:[#allocation20_spill] sm:$0xff] }
 0x69b   :  { %2368 = vmatprep.subr.mxu0 %v4236_v23  ;;  %2439 = vmatprep.subr.mxu1 %v4239_v32  ;;  %v5151_v9 = vld [vmem:[#allocation25_spill] sm:$0xff]  ;;  %v5153_v23 = vld [vmem:[#allocation30_spill] sm:$0xff] }
 0x69c   :  { %2369 = vmatpush1.msra.mxu0 %v4242_v18  ;;  %2440 = vmatpush1.msra.mxu1 %v4245_v50  ;;  %v5154_v32 = vld [vmem:[#allocation50_spill] sm:$0xff]  ;;  %v5155_v18 = vld [vmem:[#allocation31_spill] sm:$0xff] }
 0x69d   :  { %2370 = vmatprep.subr.mxu0 %v4248_v0  ;;  %2441 = vmatprep.subr.mxu1 %v4251_v56  ;;  %v5156_v50 = vld [vmem:[#allocation51_spill] sm:$0xff]  ;;  %v5157_v0 = vld [vmem:[#allocation32_spill] sm:$0xff] }
 0x69e   :  { %2371 = vmatpush1.msra.mxu0 %v4254_v27  ;;  %2442 = vmatpush1.msra.mxu1 %v4257_v29  ;;  %v5158_v56 = vld [vmem:[#allocation52_spill] sm:$0xff]  ;;  %v5159_v27 = vld [vmem:[#allocation33_spill] sm:$0xff]  ;;  %v5160_v29 = vmov 0.0  }
 0x69f   :  { %2372 = vmatprep.subr.mxu0 %v4260_v31  ;;  %2443 = vmatprep.subr.mxu1 %v4263_v33  ;;  %v5161_v31 = vld [vmem:[#allocation53_spill] sm:$0xff] }
 0x6a0   :  { %2373 = vmatpush1.msra.mxu0 %v4266_v36  ;;  %2444 = vmatpush1.msra.mxu1 %v4269_v38 }
 0x6a1   :  { %2374 = vmatprep.subr.mxu0 %v4272_v42  ;;  %2445 = vmatprep.subr.mxu1 %v4275_v44  ;;  %v5162_v44 = vld [vmem:[#allocation61_spill] sm:$0xff] }
 0x6a2   :  { %2375 = vmatpush1.msra.mxu0 %v4278_v46  ;;  %2446 = vmatpush1.msra.mxu1 %v4281_v47  ;;  %v5163_v47 = vld [vmem:[#allocation63_spill] sm:$0xff] }
 0x6a3   :  { %2376 = vmatprep.subr.mxu0 %v4284_v49  ;;  %2447 = vmatprep.subr.mxu1 %v4287_v57 }
 0x6a4   :  { %2377 = vmatpush1.msra.mxu0 %v4290_v59  ;;  %2448 = vmatpush1.msra.mxu1 %v4293_v61 }
 0x6a5   :  { %2378 = vmatprep.subr.mxu0 %v4296_v63  ;;  %2449 = vmatprep.subr.mxu1 %v4299_v2 }
 0x6a6   :  { %2379 = vmatpush1.msra.mxu0 %v4302_v4  ;;  %2450 = vmatpush1.msra.mxu1 %v4305_v6  ;;  %v5164_v4 = vld [vmem:[#allocation62_spill] sm:$0xff] }
 0x6a7   :  { %2380 = vmatprep.subr.mxu0 %v5077_v41  ;;  %2451 = vmatprep.subr.mxu1 %v5078_v53  ;;  %v5165_v41 = vld [vmem:[#allocation64_spill] sm:$0xff] }
 0x6a8   :  { %2381 = vmatpush1.msra.mxu0 %v5139_v15  ;;  %2452 = vmatpush1.msra.mxu1 %v5140_v17 }
 0x6a9   :  { %2382 = vmatprep.subr.mxu0 %v5141_v21  ;;  %2453 = vmatprep.subr.mxu1 %v5142_v22 }
 0x6aa   :  { %2383 = vmatpush1.msra.mxu0 %v5143_v25  ;;  %2454 = vmatpush1.msra.mxu1 %v5144_v30 }
 0x6ab   :  { %2384 = vmatprep.subr.mxu0 %v5145_v39  ;;  %2455 = vmatprep.subr.mxu1 %v5146_v5 }
 0x6ac   :  { %2385 = vmatpush1.msra.mxu0 %v5147_v51  ;;  %2456 = vmatpush1.msra.mxu1 %v5148_v3  ;;  %v2340_v3 = vrot.slane %v4560_v48, 7 }
 0x6ad   :  { %2386 = vmatprep.subr.mxu0 %v5149_v28  ;;  %2457 = vmatprep.subr.mxu1 %v5150_v54 }
 0x6ae   :  { %2387 = vmatpush1.msra.mxu0 %v5151_v9  ;;  %2458 = vmatpush1.msra.mxu1 %v5152_v35  ;;  %v2341_v9 = vrot.slane %v4562_v12, 7 }
 0x6af   :  { %2388 = vmatprep.subr.mxu0 %v5153_v23  ;;  %2459 = vmatprep.subr.mxu1 %v5154_v32 }
 0x6b0   :  { %2389 = vmatpush1.msra.mxu0 %v5155_v18  ;;  %2460 = vmatpush1.msra.mxu1 %v5156_v50 }
 0x6b1   :  { %2390 = vmatprep.subr.mxu0 %v5157_v0  ;;  %2461 = vmatprep.subr.mxu1 %v5158_v56 }
 0x6b2   :  { %2391 = vmatpush1.msra.mxu0 %v5159_v27  ;;  %2424 = vmatprep.mubr.f32.mxu0 %v5160_v29 }
 0x6b3   :  { %2462 = vmatpush1.msra.mxu1 %v5161_v31  ;;  %2495 = vmatprep.mubr.f32.mxu1 %v5160_v29 }
 0x6b4   :  { %2969 = vmatprep.subr.mxu1 %v5160_v29  ;;  %2958 = vmatprep.subr.mxu0 %v5160_v29 }
 0x753   :  { %v2196_v33 = vpop.f32.mrf.mxu0  ;;  %v2267_v57 = vpop.f32.mrf.mxu1 }
 0x754   :  { %v2276_v36 = vrot.slane %v2196_v33, 2  ;;  %v2280_v38 = vrot.slane %v2196_v33, 3  ;;  %v2278_v52 = vrot.slane %v2267_v57, 2  ;;  %v2282_v62 = vrot.slane %v2267_v57, 3  ;;  %v2599_v57 = vld [vmem:[%s4772_s9 + $0x78] sm:$0xff] }
 0x755   :  { %v2198_v42 = vpop.f32.mrf.mxu0  ;;  %v2269_v7 = vpop.f32.mrf.mxu1 }
 0x756   :  { %v2292_v46 = vadd.f32 %v2276_v36, %v5162_v44  ;;  %v2296_v49 = vadd.f32 %v2280_v38, %v5163_v47  ;;  %v2277_v59 = vrot.slane %v2198_v42, 2  ;;  %v2281_v61 = vrot.slane %v2198_v42, 3 }
 0x757   :  { %v2279_v19 = vrot.slane %v2269_v7, 2  ;;  %v2283_v11 = vrot.slane %v2269_v7, 3  ;;  %v2294_v37 = vadd.f32 %v2278_v52, %v5166_v45  ;;  %v2298_v58 = vadd.f32 %v2282_v62, %v5167_v24  ;;  %v2593_v7 = vld [vmem:[%s4772_s9 + $0x48] sm:$0xff]  ;;  %v2591_v52 = vld [vmem:[%s4772_s9 + $0x38] sm:$0xff]  ;;  %v2600_v62 = vld [vmem:[%s4766_s3] sm:$0x3] }
 0x758   :  { %v2915_v63 = vmul.f32 -1.442695, %v2292_v46  ;;  %v2916_v2 = vmul.f32 -1.442695, %v2296_v49  ;;  %v2293_v6 = vadd.f32 %v2277_v59, %v5164_v4  ;;  %v2297_v53 = vadd.f32 %v2281_v61, %v5165_v41  ;;  %v2598_v59 = vld [vmem:[%s4772_s9 + $0x70] sm:$0xff]  ;;  %v2597_v61 = vld [vmem:[%s4772_s9 + $0x68] sm:$0xff] }
 0x759   :  { %v2295_v20 = vadd.f32 %v2279_v19, %v4012_v43  ;;  %v2299_v16 = vadd.f32 %v2283_v11, %v4005_v40  ;;  %v2592_v19 = vld [vmem:[%s4772_s9 + $0x40] sm:$0xff] }
 0x75a   :  { %3221 = vpow2.f32 %v2915_v63  ;;  %v2917_v8 = vmul.f32 -1.442695, %v2293_v6  ;;  %v2918_v10 = vmul.f32 -1.442695, %v2297_v53  ;;  %v2596_v63 = vld [vmem:[%s4772_s9 + $0x60] sm:$0xff]  ;;  %v2594_v6 = vld [vmem:[%s4772_s9 + $0x50] sm:$0xff] }
 0x75b   :  { %3223 = vpow2.f32 %v2916_v2  ;;  %v2919_v34 = vmul.f32 -1.442695, %v2295_v20  ;;  %v2920_v26 = vmul.f32 -1.442695, %v2299_v16  ;;  %v2595_v2 = vld [vmem:[%s4772_s9 + $0x58] sm:$0xff]  ;;  %v2601_v11 = vld [vmem:[%s4773_s10] sm:$0xff] }
 0x75c   :  { %3225 = vpow2.f32 %v2917_v8  ;;  %v2604_v53 = vld [vmem:[%s4773_s10 + $0x18] sm:$0xff]  ;;  %v2603_v8 = vld [vmem:[%s4773_s10 + $0x10] sm:$0xff]  ;;  %v2589_v16 = vld [vmem:[%s4772_s9 + $0x28] sm:$0xff] }
 0x75d   :  { %3227 = vpow2.f32 %v2918_v10  ;;  %v2602_v10 = vld [vmem:[%s4773_s10 + $0x8] sm:$0xff]  ;;  %v2590_v20 = vld [vmem:[%s4772_s9 + $0x30] sm:$0xff] }
 0x75e   :  { %3229 = vtanh.f32 %v2294_v37  ;;  %v2588_v37 = vld [vmem:[%s4772_s9 + $0x20] sm:$0xff] }
 0x75f   :  { %3231 = vtanh.f32 %v2298_v58  ;;  %v2587_v58 = vld [vmem:[%s4772_s9 + $0x18] sm:$0xff] }
 0x760   :  { %3233 = vpow2.f32 %v2919_v34  ;;  %v2586_v34 = vld [vmem:[%s4772_s9 + $0x10] sm:$0xff] }
 0x761   :  { %3235 = vpow2.f32 %v2920_v26  ;;  %v2585_v26 = vld [vmem:[%s4772_s9 + $0x8] sm:$0xff] }
 0x767   :  { %v3222_v55 = vpop.eup %3221 }
 0x768   :  { %v3224_v13 = vpop.eup %3223  ;;  %v2306_v1 = vadd.f32 1.0, %v3222_v55  ;;  %v2584_v55 = vld [vmem:[%s4772_s9] sm:$0xff] }
 0x769   :  { %v2307_v14 = vadd.f32 1.0, %v3224_v13  ;;  %v3226_v60 = vpop.eup %3225 }
 0x76a   :  { %v3228_v15 = vpop.eup %3227  ;;  %3237 = vrcp.f32 %v2306_v1  ;;  %v2318_v17 = vadd.f32 1.0, %v3226_v60 }
 0x76b   :  { %3239 = vrcp.f32 %v2307_v14  ;;  %v2319_v21 = vadd.f32 1.0, %v3228_v15  ;;  %v3230_v22 = vpop.eup %3229 }
 0x76c   :  { %3241 = vrcp.f32 %v2318_v17  ;;  %v3232_v25 = vpop.eup %3231 }
 0x76d   :  { %3243 = vrcp.f32 %v2319_v21  ;;  %v3234_v30 = vpop.eup %3233 }
 0x76e   :  { %v3236_v39 = vpop.eup %3235  ;;  %v2332_v28 = vadd.f32 1.0, %v3234_v30 }
 0x76f   :  { %v2333_v35 = vadd.f32 1.0, %v3236_v39 }
 0x770   :  { %3245 = vrcp.f32 %v2332_v28 }
 0x771   :  { %3247 = vrcp.f32 %v2333_v35 }
 0x777   :  { %v3238_v5 = vpop.eup %3237 }
 0x778   :  { %v3240_v51 = vpop.eup %3239  ;;  %v2346_v32 = vmul.f32 %v3238_v5, %v3230_v22 }
 0x779   :  { %v3242_v54 = vpop.eup %3241  ;;  %v2347_v50 = vmul.f32 %v3240_v51, %v3232_v25 }
 0x77a   :  { %v3244_v23 = vpop.eup %3243  ;;  %v2344_v18 = vmul.f32 %v3242_v54, %v2340_v3 }
 0x77b   :  { %v2345_v0 = vmul.f32 %v3244_v23, %v2341_v9 }
 0x77c   :  { %v4643_v56 = vadd.f32 %v2346_v32, %v2344_v18 }
 0x77d   :  { %v4645_v27 = vadd.f32 %v2347_v50, %v2345_v0  ;;  %v3246_v48 = vpop.eup %3245 }
 0x77e   :  { %3249 = vtanh.f32 %v4643_v56  ;;  %v3248_v31 = vpop.eup %3247 }
 0x77f   :  { %3251 = vtanh.f32 %v4645_v27 }
 0x78b   :  { %v3250_v33 = vpop.eup %3249 }
 0x78c   :  { %v3252_v12 = vpop.eup %3251  ;;  %v2352_v36 = vmul.f32 %v3250_v33, %v3246_v48 }
 0x78d   :  { %v2353_v38 = vmul.f32 %v3252_v12, %v3248_v31 }
 0x78e   :  { %v2356_v42 = vrot.slane %v2352_v36, 6 }
 0x78f   :  { %v2357_v46 = vrot.slane %v2353_v38, 5 }
 0x791   :  { %v2358_v49 = vsel %vm982_vm2, %v2357_v46, %v2356_v42 }
 0x792   :  { %2425 = vmatmul.mubr.f32.vlgmr.msra.gmra.mxu0 %v2358_v49  ;;  %2496 = vmatmul.mubr.f32.vlgmr.msra.gmra.mxu1 %v2358_v49 }
 0x793   :  { %2970 = vmatpush3.msra.mxu1 %v2599_v57  ;;  %2966 = vmatprep.mubr.msk.f32.mxu0 %vm3531_vm3, %v5160_v29  ;;  %v2570_v57 = vrot.slane %v4643_v56, 7 }
 0x794   :  { %2971 = vmatprep.subr.mxu1 %v5160_v29  ;;  %3001 = vmatprep.mubr.msk.f32.mxu1 %vm3531_vm3, %v5160_v29 }
 0x795   :  { %2972 = vmatpush3.msra.mxu1 %v2598_v59  ;;  %2959 = vmatpush3.msra.mxu0 %v2604_v53 }
 0x796   :  { %2973 = vmatprep.subr.mxu1 %v5160_v29  ;;  %2960 = vmatprep.subr.mxu0 %v5160_v29 }
 0x797   :  { %2974 = vmatpush3.msra.mxu1 %v2597_v61  ;;  %2961 = vmatpush3.msra.mxu0 %v2603_v8 }
 0x798   :  { %2975 = vmatprep.subr.mxu1 %v5160_v29  ;;  %2962 = vmatprep.subr.mxu0 %v5160_v29 }
 0x799   :  { %2976 = vmatpush3.msra.mxu1 %v2596_v63  ;;  %2963 = vmatpush3.msra.mxu0 %v2602_v10  ;;  %v2571_v63 = vrot.slane %v4645_v27, 7 }
 0x79a   :  { %2977 = vmatprep.subr.mxu1 %v5160_v29  ;;  %2964 = vmatprep.subr.mxu0 %v5160_v29 }
 0x79b   :  { %2978 = vmatpush3.msra.mxu1 %v2595_v2  ;;  %2965 = vmatpush3.msra.mxu0 %v2601_v11 }
 0x79c   :  { %2979 = vmatprep.subr.mxu1 %v5160_v29  ;;  %2967 = vmatmul.mubr.msk.f32.vlgmr.msra.gmra.mxu0 %vm398_vm1, %v2600_v62 }
 0x79d   :  { %2980 = vmatpush3.msra.mxu1 %v2594_v6  ;;  %3004 = vmatprep.subr.mxu0 %v5160_v29 }
 0x79e   :  { %2981 = vmatprep.subr.mxu1 %v5160_v29  ;;  %3012 = vmatprep.mubr.msk.f32.mxu0 %vm3531_vm3, %v5160_v29 }
 0x79f   :  { %2982 = vmatpush3.msra.mxu1 %v2593_v7 }
 0x7a0   :  { %2983 = vmatprep.subr.mxu1 %v5160_v29 }
 0x7a1   :  { %2984 = vmatpush3.msra.mxu1 %v2592_v19 }
 0x7a2   :  { %2985 = vmatprep.subr.mxu1 %v5160_v29 }
 0x7a3   :  { %2986 = vmatpush3.msra.mxu1 %v2591_v52 }
 0x7a4   :  { %2987 = vmatprep.subr.mxu1 %v5160_v29 }
 0x7a5   :  { %2988 = vmatpush3.msra.mxu1 %v2590_v20 }
 0x7a6   :  { %2989 = vmatprep.subr.mxu1 %v5160_v29 }
 0x7a7   :  { %2990 = vmatpush3.msra.mxu1 %v2589_v16 }
 0x7a8   :  { %2991 = vmatprep.subr.mxu1 %v5160_v29 }
 0x7a9   :  { %2992 = vmatpush3.msra.mxu1 %v2588_v37 }
 0x7aa   :  { %2993 = vmatprep.subr.mxu1 %v5160_v29 }
 0x7ab   :  { %2994 = vmatpush3.msra.mxu1 %v2587_v58 }
 0x7ac   :  { %2995 = vmatprep.subr.mxu1 %v5160_v29 }
 0x7ad   :  { %2996 = vmatpush3.msra.mxu1 %v2586_v34 }
 0x7ae   :  { %2997 = vmatprep.subr.mxu1 %v5160_v29 }
 0x7af   :  { %2998 = vmatpush3.msra.mxu1 %v2585_v26 }
 0x7b0   :  { %2999 = vmatprep.subr.mxu1 %v5160_v29 }
 0x7b1   :  { %3000 = vmatpush3.msra.mxu1 %v2584_v55 }
 0x852   :  { %v2426_v13 = vpop.f32.mrf.mxu0  ;;  %v2497_v21 = vpop.f32.mrf.mxu1 }
 0x853   :  { %v2506_v1 = vrot.slane %v2426_v13, 1  ;;  %v2510_v14 = vrot.slane %v2426_v13, 2  ;;  %v2508_v35 = vrot.slane %v2497_v21, 1  ;;  %v2766_v13 = vld [vmem:[#allocation13 + $0x18] sm:$0xff] }
 0x854   :  { %v2428_v60 = vpop.f32.mrf.mxu0  ;;  %v2499_v3 = vpop.f32.mrf.mxu1  ;;  %3005 = vmatpush3.msra.mxu0 %v2766_v13 }
 0x855   :  { %v2522_v15 = vadd.f32 %v2506_v1, %v5162_v44  ;;  %v2526_v17 = vadd.f32 %v2510_v14, %v5163_v47  ;;  %v2507_v22 = vrot.slane %v2428_v60, 1  ;;  %v2511_v25 = vrot.slane %v2428_v60, 2  ;;  %3006 = vmatprep.subr.mxu0 %v5160_v29  ;;  %v2765_v1 = vld [vmem:[#allocation13 + $0x10] sm:$0xff]  ;;  %v2764_v14 = vld [vmem:[#allocation13 + $0x8] sm:$0xff]  ;;  %v2763_v60 = vld [vmem:[#allocation13] sm:$0xff] }
 0x856   :  { %v2509_v9 = vrot.slane %v2499_v3, 1  ;;  %v2513_v44 = vrot.slane %v2499_v3, 2  ;;  %v2512_v47 = vrot.slane %v2497_v21, 2  ;;  %v2524_v18 = vadd.f32 %v2508_v35, %v5166_v45  ;;  %3007 = vmatpush3.msra.mxu0 %v2765_v1 }
 0x857   :  { %v2921_v30 = vmul.f32 -1.442695, %v2522_v15  ;;  %v2922_v39 = vmul.f32 -1.442695, %v2526_v17  ;;  %v2523_v5 = vadd.f32 %v2507_v22, %v5164_v4  ;;  %v2527_v51 = vadd.f32 %v2511_v25, %v5165_v41  ;;  %3008 = vmatprep.subr.mxu0 %v5160_v29  ;;  %v2928_v17 = vld [vmem:[%s4774_s11] ss:$0 sm:$0xff] }
 0x858   :  { %v2525_v23 = vadd.f32 %v2509_v9, %v4012_v43  ;;  %v2529_v32 = vadd.f32 %v2513_v44, %v4005_v40  ;;  %v2528_v4 = vadd.f32 %v2512_v47, %v5167_v24  ;;  %3009 = vmatpush3.msra.mxu0 %v2764_v14 }
 0x859   :  { %3253 = vpow2.f32 %v2921_v30  ;;  %v2923_v28 = vmul.f32 -1.442695, %v2523_v5  ;;  %v2924_v54 = vmul.f32 -1.442695, %v2527_v51  ;;  %3010 = vmatprep.subr.mxu0 %v5160_v29 }
 0x85a   :  { %3255 = vpow2.f32 %v2922_v39  ;;  %v2925_v41 = vmul.f32 -1.442695, %v2525_v23  ;;  %v2926_v50 = vmul.f32 -1.442695, %v2529_v32  ;;  %3011 = vmatpush3.msra.mxu0 %v2763_v60  ;;  %v2929_v39 = vld [vmem:[%s4776_s13] ss:$0 sm:$0xff] }
 0x85b   :  { %3257 = vpow2.f32 %v2923_v28 }
 0x85c   :  { %3259 = vpow2.f32 %v2924_v54  ;;  %v2674_v26 = vpop.f32.mrf.mxu0 }
 0x85d   :  { %3261 = vtanh.f32 %v2524_v18 }
 0x85e   :  { %3263 = vtanh.f32 %v2528_v4  ;;  %v2968_v55 = vpop.f32.mrf.mxu0 }
 0x85f   :  { %3265 = vpow2.f32 %v2925_v41 }
 0x860   :  { %3267 = vpow2.f32 %v2926_v50 }
 0x866   :  { %v3254_v0 = vpop.eup %3253 }
 0x867   :  { %v3256_v48 = vpop.eup %3255  ;;  %v2536_v31 = vadd.f32 1.0, %v3254_v0 }
 0x868   :  { %v2537_v33 = vadd.f32 1.0, %v3256_v48  ;;  %v3258_v12 = vpop.eup %3257 }
 0x869   :  { %v3260_v36 = vpop.eup %3259  ;;  %3269 = vrcp.f32 %v2536_v31  ;;  %v2548_v43 = vadd.f32 1.0, %v3258_v12 }
 0x86a   :  { %3271 = vrcp.f32 %v2537_v33  ;;  %v2549_v40 = vadd.f32 1.0, %v3260_v36  ;;  %v3262_v45 = vpop.eup %3261 }
 0x86b   :  { %3273 = vrcp.f32 %v2548_v43  ;;  %v3264_v24 = vpop.eup %3263 }
 0x86c   :  { %3275 = vrcp.f32 %v2549_v40  ;;  %v3266_v38 = vpop.eup %3265 }
 0x86d   :  { %v3268_v42 = vpop.eup %3267  ;;  %v2562_v59 = vadd.f32 1.0, %v3266_v38 }
 0x86e   :  { %v2563_v2 = vadd.f32 1.0, %v3268_v42 }
 0x86f   :  { %3277 = vrcp.f32 %v2562_v59 }
 0x870   :  { %3279 = vrcp.f32 %v2563_v2 }
 0x876   :  { %v3270_v46 = vpop.eup %3269 }
 0x877   :  { %v3272_v49 = vpop.eup %3271  ;;  %v2576_v53 = vmul.f32 %v3270_v46, %v3262_v45 }
 0x878   :  { %v3274_v61 = vpop.eup %3273  ;;  %v2577_v8 = vmul.f32 %v3272_v49, %v3264_v24 }
 0x879   :  { %v3276_v6 = vpop.eup %3275  ;;  %v2574_v7 = vmul.f32 %v3274_v61, %v2570_v57 }
 0x87a   :  { %v2575_v10 = vmul.f32 %v3276_v6, %v2571_v63 }
 0x87b   :  { %v2578_v19 = vadd.f32 %v2576_v53, %v2574_v7 }
 0x87c   :  { %v2579_v11 = vadd.f32 %v2577_v8, %v2575_v10  ;;  %v3278_v52 = vpop.eup %3277 }
 0x87d   :  { %3281 = vtanh.f32 %v2578_v19  ;;  %v3280_v62 = vpop.eup %3279 }
 0x87e   :  { %3283 = vtanh.f32 %v2579_v11 }
 0x88a   :  { %v3282_v20 = vpop.eup %3281 }
 0x88b   :  { %v3284_v56 = vpop.eup %3283  ;;  %v2582_v16 = vmul.f32 %v3282_v20, %v3278_v52 }
 0x88c   :  { %v2583_v37 = vmul.f32 %v3284_v56, %v3280_v62 }
 0x88d   :  { %v2680_v58 = vrot.slane %v2582_v16, 7 }
 0x88e   :  { %v2681_v27 = vrot.slane %v2583_v37, 6 }
 0x890   :  { %v2682_v34 = vsel %vm982_vm2, %v2681_v27, %v2680_v58 }
 0x891   :  { %3002 = vmatmul.mubr.f32.vlgmr.msra.gmra.mxu1 %v2682_v34 }
 0x951   :  { %v2750_v15 = vpop.f32.mrf.mxu1 }
 0x952   :  { %v2751_v21 = vadd.f32 %v2750_v15, %v2674_v26 }
 0x953   :  { %v3003_v22 = vpop.f32.mrf.mxu1 }
 0x954   :  { %v2761_v25 = vadd.f32 %v2928_v17, %v2751_v21 }
 0x956   :  { %v2762_v30 = vmax.f32 %v2761_v25, 0.0 }
 0x958   :  { %3013 = vmatmul.mubr.msk.f32.vlgmr.msra.gmra.mxu0 %vm398_vm1, %v2762_v30 }
 0xa18   :  { %v2843_v5 = vpop.f32.mrf.mxu0 }
 0xa19   :  { %v2844_v29 = vadd.f32 %v2929_v39, %v2843_v5 }
 0xa1a   :  { %v3014_v51 = vpop.f32.mrf.mxu0 }
 0xa1b   :  { %2848 = vst.msk [vmem:[#allocation14] sm:$0x3] %vm2847_vm4, %v2844_v29 }
 0xa1c   :  { %3500 = shalt.err (!%p3497_p11)
}
 0xa1d   :  { %2858 = dma.vmem_to_hbm [thread:$0]  %s2856_s24, 32, %s4777_s14, [#allocation4]  }
 0xa1e   :  { %3517 = dma.done.wait [#allocation4], 32  }
 0xa1f   :  { %3518 = vsyncadd [#allocation4], 4294967264 }
 0xa20   :  { %2862 = vsyncpa [#allocation3], 1 }
 0xa21   :  { %2863 = vsyncpa [#allocation6], 1 }
 0xa22   :  { %2864 = vsyncpa [#allocation9], 1 }
 0xa23   :  { %2865 = vsyncpa [#allocation12], 1 }
 0xa24   :  { %2866 = vsyncpa [#allocation4], 1 }

</bundles_post_ra>
